<compile_context>
chip_gen: v7x
topology: tpu7x:2x2x1
jax: 0.10.0
libtpu: 0.0.40
codegen_flags: <defaults>
</compile_context>

<pallas_src>
import functools

import jax
import jax.numpy as jnp
from jax.experimental import pallas as pl
from jax.experimental.pallas import tpu as pltpu


def _vae_kernel(x_ref, eps_ref,
                w_e0, b_e0, w_e1, b_e1, w_mv, b_mv,
                w_d0, b_d0, w_d1, b_d1, w_lg, b_lg,
                out_ref):
    """One batch tile of the full VAE forward pass.

    Weight refs arrive pre-cast to bf16 (grid-invariant, cast hoisted to the
    wrapper); biases are f32.  Matmuls run on the MXU in bf16 with f32
    accumulation; every elementwise op (ReLU / softplus / rsample) stays f32.
    """

    def dense(act, w_ref, b_ref):
        # bf16 MXU matmul, f32 accumulation; bias add in f32 on the VPU.
        return jnp.dot(act.astype(jnp.bfloat16), w_ref[...],
                       preferred_element_type=jnp.float32) + b_ref[...]

    zd = eps_ref.shape[-1]

    # ---- encoder ----
    h = jnp.maximum(dense(x_ref[...], w_e0, b_e0), 0.0)      # 784 -> 2*h_dim
    h = jnp.maximum(dense(h, w_e1, b_e1), 0.0)               # 2*h_dim -> h_dim

    # Fused mean|var head: one (h_dim, 2*z_dim) matmul instead of two narrow ones.
    mv = dense(h, w_mv, b_mv)
    z_mean = mv[:, :zd]
    z_var_pre = mv[:, zd:]
    # Stable softplus: max(x,0) + log1p(exp(-|x|)); exp lands in the EUP slot.
    z_var = jnp.maximum(z_var_pre, 0.0) + jnp.log1p(jnp.exp(-jnp.abs(z_var_pre)))

    # ---- reparameterize: Normal(z_mean, z_var).rsample() ----
    z = z_mean + z_var * eps_ref[...]

    # ---- decoder ----
    d = jnp.maximum(dense(z, w_d0, b_d0), 0.0)                # z_dim -> h_dim
    d = jnp.maximum(dense(d, w_d1, b_d1), 0.0)                # h_dim -> 2*h_dim
    x_logits = dense(d, w_lg, b_lg)                           # 2*h_dim -> 784

    # Single packed output slab [x_logits | z_mean | z_var | z]:
    # one writeback DMA per step; x_logits stays lane-0 aligned and the three
    # 8-lane z pieces ride along instead of forming a separate 24-lane
    # masked-store output.
    out_ref[...] = jnp.concatenate([x_logits, z_mean, z_var, z],
                                   axis=-1).astype(out_ref.dtype)


def _is_single_core_tpu():
    """True for known single-TensorCore chips (v5e / v6e)."""
    try:
        kind = jax.devices()[0].device_kind.lower()
    except Exception:
        return False
    return any(t in kind for t in ("v5e", "v5 lite", "v5litepod", "v6e", "v6 lite"))


def _pick_batch_tile(B, max_tile=512):
    """MXU-row-aligned batch tile.

    Single-core chips (v5e/v6e): largest tile dividing B (grid=(1,) when
    possible) -- extra grid steps are pure serial overhead there.  Cap at 512
    so f32 in/out double-buffers stay inside v5e's 16 MiB scoped-VMEM default.
    Multi-TensorCore chips (v7x / megacore): keep >= 2 grid steps so the
    'parallel' batch axis is sharded across cores."""
    candidates = [t for t in (512, 256, 128, 64, 32, 16, 8)
                  if t <= max_tile and B % t == 0]
    if not candidates:
        return B                      # ragged batch: single full-array tile
    if _is_single_core_tpu():
        return candidates[0]          # biggest tile, fewest grid steps
    for t in candidates:              # candidates sorted descending
        if B // t >= 2:
            return t
    return candidates[0]


def pack_params(params):
    """One-time param packing: fuse mean|var head and pre-cast weights to bf16
    (biases stay f32).  Done outside the jitted forward so the pallas_call
    receives fully pre-packed, grid-invariant operands."""
    (w_e0, b_e0, w_e1, b_e1, w_mean, b_mean, w_var, b_var,
     w_d0, b_d0, w_d1, b_d1, w_lg, b_lg) = params
    w_mv = jnp.concatenate([w_mean, w_var], axis=1)
    b_mv = jnp.concatenate([b_mean, b_var], axis=1)
    bf16 = lambda w: w.astype(jnp.bfloat16)
    return (bf16(w_e0), b_e0, bf16(w_e1), b_e1, bf16(w_mv), b_mv,
            bf16(w_d0), b_d0, bf16(w_d1), b_d1, bf16(w_lg), b_lg)


@functools.partial(jax.jit, static_argnames=("batch_tile",))
def vae_forward(x, eps, packed_params, batch_tile=None):
    """x: (B, 784) f32 images, eps: (B, z_dim) f32 standard-normal noise,
    packed_params: output of pack_params().

    Returns (z_mean, z_var, z, x_logits); (z_mean, z_var) parameterize q_z and
    (0, 1) parameterize p_z of the reference model."""
    B, in_dim = x.shape
    z_dim = eps.shape[-1]
    if batch_tile is None:
        batch_tile = _pick_batch_tile(B)
    assert B % batch_tile == 0, (B, batch_tile)

    out_width = in_dim + 3 * z_dim    # [x_logits | z_mean | z_var | z]

    def full(arr):
        # Replicated operand: constant index_map -> DMA'd once, stays resident.
        return pl.BlockSpec(arr.shape, lambda i: (0, 0))

    grid = (B // batch_tile,)
    in_specs = ([pl.BlockSpec((batch_tile, in_dim), lambda i: (i, 0)),   # x
                 pl.BlockSpec((batch_tile, z_dim), lambda i: (i, 0))]    # eps
                + [full(w) for w in packed_params])
    out_specs = pl.BlockSpec((batch_tile, out_width), lambda i: (i, 0))
    out_shape = jax.ShapeDtypeStruct((B, out_width), jnp.float32)

    out = pl.pallas_call(
        _vae_kernel,
        out_shape=out_shape,
        grid_spec=pltpu.PrefetchScalarGridSpec(
            num_scalar_prefetch=0,
            grid=grid,
            in_specs=in_specs,
            out_specs=out_specs,
        ),
        compiler_params=pltpu.CompilerParams(
            dimension_semantics=("parallel",)),
    )(x, eps, *packed_params)

    x_logits = out[:, :in_dim]
    z_mean = out[:, in_dim:in_dim + z_dim]
    z_var = out[:, in_dim + z_dim:in_dim + 2 * z_dim]
    z = out[:, in_dim + 2 * z_dim:]
    return z_mean, z_var, z, x_logits


def init_params(key, in_dim, h_dim, z_dim):
    """Deterministic init mimicking nn.Linear (uniform +/- 1/sqrt(fan_in)).
    Weights stored as (in, out); biases as (1, out)."""
    dims = [
        (in_dim, 2 * h_dim),   # fc_e0
        (2 * h_dim, h_dim),    # fc_e1
        (h_dim, z_dim),        # fc_mean
        (h_dim, z_dim),        # fc_var   (distribution='normal')
        (z_dim, h_dim),        # fc_d0
        (h_dim, 2 * h_dim),    # fc_d1
        (2 * h_dim, in_dim),   # fc_logits
    ]
    params = []
    for (fi, fo) in dims:
        key, kw, kb = jax.random.split(key, 3)
        bound = 1.0 / jnp.sqrt(fi)
        w = jax.random.uniform(kw, (fi, fo), jnp.float32, -bound, bound)
        b = jax.random.uniform(kb, (1, fo), jnp.float32, -bound, bound)
        params += [w, b]
    return tuple(params)


def vae_reference(x, eps, params):
    """Pure-JAX f32 reference for correctness checking."""
    (w_e0, b_e0, w_e1, b_e1, w_mean, b_mean, w_var, b_var,
     w_d0, b_d0, w_d1, b_d1, w_lg, b_lg) = params
    h = jax.nn.relu(x @ w_e0 + b_e0)
    h = jax.nn.relu(h @ w_e1 + b_e1)
    z_mean = h @ w_mean + b_mean
    z_var = jax.nn.softplus(h @ w_var + b_var)
    z = z_mean + z_var * eps
    d = jax.nn.relu(z @ w_d0 + b_d0)
    d = jax.nn.relu(d @ w_d1 + b_d1)
    x_logits = d @ w_lg + b_lg
    return z_mean, z_var, z, x_logits


if __name__ == "__main__":
    # MNIST input dim 784, h_dim=32, z_dim=8.  B=256 -> batch_tile=256 (grid=(1,))
    # on single-core v5e/v6e, batch_tile=128 (grid=(2,)) on multi-core v7x.
    B, IN_DIM, H_DIM, Z_DIM = 256, 784, 32, 8

    key = jax.random.PRNGKey(0)
    key, kx, ke, kp = jax.random.split(key, 4)
    x = jax.random.uniform(kx, (B, IN_DIM), jnp.float32)          # "images"
    eps = jax.random.normal(ke, (B, Z_DIM), jnp.float32)          # rsample noise
    params = init_params(kp, IN_DIM, H_DIM, Z_DIM)
    packed = pack_params(params)                                   # one-time packing

    outs = vae_forward(x, eps, packed)
    outs = jax.block_until_ready(outs)

    refs = vae_reference(x, eps, params)
    # bf16 MXU operands (f32 accumulation) -> compare against the pure-f32
    # reference with a correspondingly loosened tolerance.
    for o, r in zip(outs, refs):
        assert o.shape == r.shape and o.dtype == r.dtype
        err = float(jnp.max(jnp.abs(o - r)))
        assert err < 5e-2, err

    # TODO(synk): torch.distributions Normal objects (q_z, p_z) have no Pallas
    # equivalent; they are represented by their parameters (z_mean, z_var) / (0, 1).
    print("KERNEL_OK")
</pallas_src>

<mosaic_0001>
module attributes {stable_mosaic.version = 11 : i64} {
  func.func @_vae_kernel(%arg0: i32, %arg1: memref<128x784xf32, #tpu.memory_space<vmem>>, %arg2: memref<128x8xf32, #tpu.memory_space<vmem>>, %arg3: memref<784x64xbf16, #tpu.memory_space<vmem>>, %arg4: memref<1x64xf32, #tpu.memory_space<vmem>>, %arg5: memref<64x32xbf16, #tpu.memory_space<vmem>>, %arg6: memref<1x32xf32, #tpu.memory_space<vmem>>, %arg7: memref<32x16xbf16, #tpu.memory_space<vmem>>, %arg8: memref<1x16xf32, #tpu.memory_space<vmem>>, %arg9: memref<8x32xbf16, #tpu.memory_space<vmem>>, %arg10: memref<1x32xf32, #tpu.memory_space<vmem>>, %arg11: memref<32x64xbf16, #tpu.memory_space<vmem>>, %arg12: memref<1x64xf32, #tpu.memory_space<vmem>>, %arg13: memref<64x784xbf16, #tpu.memory_space<vmem>>, %arg14: memref<1x784xf32, #tpu.memory_space<vmem>>, %arg15: memref<128x808xf32, #tpu.memory_space<vmem>>) attributes {dimension_semantics = [#tpu.dimension_semantics<parallel>], iteration_bounds = array<i64: 2>, scalar_prefetch = 0 : i64, scratch_operands = 0 : i64, tpu.core_type = #tpu.core_type<tc>, window_params = [{transform_indices = @transform_0, window_bounds = array<i64: 128, 784>}, {transform_indices = @transform_1, window_bounds = array<i64: 128, 8>}, {pipeline_mode = #tpu.pipeline_mode<synchronous>, transform_indices = @transform_2, window_bounds = array<i64: 784, 64>}, {pipeline_mode = #tpu.pipeline_mode<synchronous>, transform_indices = @transform_3, window_bounds = array<i64: 1, 64>}, {pipeline_mode = #tpu.pipeline_mode<synchronous>, transform_indices = @transform_4, window_bounds = array<i64: 64, 32>}, {pipeline_mode = #tpu.pipeline_mode<synchronous>, transform_indices = @transform_5, window_bounds = array<i64: 1, 32>}, {pipeline_mode = #tpu.pipeline_mode<synchronous>, transform_indices = @transform_6, window_bounds = array<i64: 32, 16>}, {pipeline_mode = #tpu.pipeline_mode<synchronous>, transform_indices = @transform_7, window_bounds = array<i64: 1, 16>}, {pipeline_mode = #tpu.pipeline_mode<synchronous>, transform_indices = @transform_8, window_bounds = array<i64: 8, 32>}, {pipeline_mode = #tpu.pipeline_mode<synchronous>, transform_indices = @transform_9, window_bounds = array<i64: 1, 32>}, {pipeline_mode = #tpu.pipeline_mode<synchronous>, transform_indices = @transform_10, window_bounds = array<i64: 32, 64>}, {pipeline_mode = #tpu.pipeline_mode<synchronous>, transform_indices = @transform_11, window_bounds = array<i64: 1, 64>}, {pipeline_mode = #tpu.pipeline_mode<synchronous>, transform_indices = @transform_12, window_bounds = array<i64: 64, 784>}, {pipeline_mode = #tpu.pipeline_mode<synchronous>, transform_indices = @transform_13, window_bounds = array<i64: 1, 784>}, {transform_indices = @transform_14, window_bounds = array<i64: 128, 808>}]} {
    %c0 = arith.constant 0 : index
    %c0_0 = arith.constant 0 : index
    %0 = vector.load %arg1[%c0, %c0_0] : memref<128x784xf32, #tpu.memory_space<vmem>>, vector<128x784xf32>
    %1 = arith.truncf %0 : vector<128x784xf32> to vector<128x784xbf16>
    %c0_1 = arith.constant 0 : index
    %c0_2 = arith.constant 0 : index
    %2 = vector.load %arg3[%c0_1, %c0_2] : memref<784x64xbf16, #tpu.memory_space<vmem>>, vector<784x64xbf16>
    %cst = arith.constant dense<0.000000e+00> : vector<128x64xf32>
    %3 = tpu.matmul %1, %2, %cst {dimension_numbers = #tpu.dot_dimension_numbers<[1], [0], [0], [1], [0, 0, 1, 1], [], []>} : vector<128x784xbf16>, vector<784x64xbf16>, vector<128x64xf32> -> vector<128x64xf32>
    %c0_3 = arith.constant 0 : index
    %c0_4 = arith.constant 0 : index
    %4 = vector.load %arg4[%c0_3, %c0_4] : memref<1x64xf32, #tpu.memory_space<vmem>>, vector<1x64xf32>
    %5 = vector.broadcast %4 : vector<1x64xf32> to vector<128x64xf32>
    %6 = arith.addf %3, %5 : vector<128x64xf32>
    %cst_5 = arith.constant 0.000000e+00 : f32
    %7 = vector.broadcast %cst_5 : f32 to vector<128x64xf32>
    %8 = arith.maximumf %6, %7 : vector<128x64xf32>
    %9 = arith.truncf %8 : vector<128x64xf32> to vector<128x64xbf16>
    %c0_6 = arith.constant 0 : index
    %c0_7 = arith.constant 0 : index
    %10 = vector.load %arg5[%c0_6, %c0_7] : memref<64x32xbf16, #tpu.memory_space<vmem>>, vector<64x32xbf16>
    %cst_8 = arith.constant dense<0.000000e+00> : vector<128x32xf32>
    %11 = tpu.matmul %9, %10, %cst_8 {dimension_numbers = #tpu.dot_dimension_numbers<[1], [0], [0], [1], [0, 0, 1, 1], [], []>} : vector<128x64xbf16>, vector<64x32xbf16>, vector<128x32xf32> -> vector<128x32xf32>
    %c0_9 = arith.constant 0 : index
    %c0_10 = arith.constant 0 : index
    %12 = vector.load %arg6[%c0_9, %c0_10] : memref<1x32xf32, #tpu.memory_space<vmem>>, vector<1x32xf32>
    %13 = vector.broadcast %12 : vector<1x32xf32> to vector<128x32xf32>
    %14 = arith.addf %11, %13 : vector<128x32xf32>
    %cst_11 = arith.constant 0.000000e+00 : f32
    %15 = vector.broadcast %cst_11 : f32 to vector<128x32xf32>
    %16 = arith.maximumf %14, %15 : vector<128x32xf32>
    %17 = arith.truncf %16 : vector<128x32xf32> to vector<128x32xbf16>
    %c0_12 = arith.constant 0 : index
    %c0_13 = arith.constant 0 : index
    %18 = vector.load %arg7[%c0_12, %c0_13] : memref<32x16xbf16, #tpu.memory_space<vmem>>, vector<32x16xbf16>
    %cst_14 = arith.constant dense<0.000000e+00> : vector<128x16xf32>
    %19 = tpu.matmul %17, %18, %cst_14 {dimension_numbers = #tpu.dot_dimension_numbers<[1], [0], [0], [1], [0, 0, 1, 1], [], []>} : vector<128x32xbf16>, vector<32x16xbf16>, vector<128x16xf32> -> vector<128x16xf32>
    %c0_15 = arith.constant 0 : index
    %c0_16 = arith.constant 0 : index
    %20 = vector.load %arg8[%c0_15, %c0_16] : memref<1x16xf32, #tpu.memory_space<vmem>>, vector<1x16xf32>
    %21 = vector.broadcast %20 : vector<1x16xf32> to vector<128x16xf32>
    %22 = arith.addf %19, %21 : vector<128x16xf32>
    %23 = vector.extract_strided_slice %22 {offsets = [0, 0], sizes = [128, 8], strides = [1, 1]} : vector<128x16xf32> to vector<128x8xf32>
    %24 = vector.extract_strided_slice %22 {offsets = [0, 8], sizes = [128, 8], strides = [1, 1]} : vector<128x16xf32> to vector<128x8xf32>
    %cst_17 = arith.constant 0.000000e+00 : f32
    %25 = vector.broadcast %cst_17 : f32 to vector<128x8xf32>
    %26 = arith.maximumf %24, %25 : vector<128x8xf32>
    %27 = math.absf %24 : vector<128x8xf32>
    %cst_18 = arith.constant 0.000000e+00 : f32
    %28 = vector.broadcast %cst_18 : f32 to vector<128x8xf32>
    %29 = arith.subf %28, %27 : vector<128x8xf32>
    %30 = math.exp %29 : vector<128x8xf32>
    %31 = math.log1p %30 : vector<128x8xf32>
    %32 = arith.addf %26, %31 : vector<128x8xf32>
    %c0_19 = arith.constant 0 : index
    %c0_20 = arith.constant 0 : index
    %33 = vector.load %arg2[%c0_19, %c0_20] : memref<128x8xf32, #tpu.memory_space<vmem>>, vector<128x8xf32>
    %34 = arith.mulf %32, %33 : vector<128x8xf32>
    %35 = arith.addf %23, %34 : vector<128x8xf32>
    %36 = arith.truncf %35 : vector<128x8xf32> to vector<128x8xbf16>
    %c0_21 = arith.constant 0 : index
    %c0_22 = arith.constant 0 : index
    %37 = vector.load %arg9[%c0_21, %c0_22] : memref<8x32xbf16, #tpu.memory_space<vmem>>, vector<8x32xbf16>
    %cst_23 = arith.constant dense<0.000000e+00> : vector<128x32xf32>
    %38 = tpu.matmul %36, %37, %cst_23 {dimension_numbers = #tpu.dot_dimension_numbers<[1], [0], [0], [1], [0, 0, 1, 1], [], []>} : vector<128x8xbf16>, vector<8x32xbf16>, vector<128x32xf32> -> vector<128x32xf32>
    %c0_24 = arith.constant 0 : index
    %c0_25 = arith.constant 0 : index
    %39 = vector.load %arg10[%c0_24, %c0_25] : memref<1x32xf32, #tpu.memory_space<vmem>>, vector<1x32xf32>
    %40 = vector.broadcast %39 : vector<1x32xf32> to vector<128x32xf32>
    %41 = arith.addf %38, %40 : vector<128x32xf32>
    %cst_26 = arith.constant 0.000000e+00 : f32
    %42 = vector.broadcast %cst_26 : f32 to vector<128x32xf32>
    %43 = arith.maximumf %41, %42 : vector<128x32xf32>
    %44 = arith.truncf %43 : vector<128x32xf32> to vector<128x32xbf16>
    %c0_27 = arith.constant 0 : index
    %c0_28 = arith.constant 0 : index
    %45 = vector.load %arg11[%c0_27, %c0_28] : memref<32x64xbf16, #tpu.memory_space<vmem>>, vector<32x64xbf16>
    %cst_29 = arith.constant dense<0.000000e+00> : vector<128x64xf32>
    %46 = tpu.matmul %44, %45, %cst_29 {dimension_numbers = #tpu.dot_dimension_numbers<[1], [0], [0], [1], [0, 0, 1, 1], [], []>} : vector<128x32xbf16>, vector<32x64xbf16>, vector<128x64xf32> -> vector<128x64xf32>
    %c0_30 = arith.constant 0 : index
    %c0_31 = arith.constant 0 : index
    %47 = vector.load %arg12[%c0_30, %c0_31] : memref<1x64xf32, #tpu.memory_space<vmem>>, vector<1x64xf32>
    %48 = vector.broadcast %47 : vector<1x64xf32> to vector<128x64xf32>
    %49 = arith.addf %46, %48 : vector<128x64xf32>
    %cst_32 = arith.constant 0.000000e+00 : f32
    %50 = vector.broadcast %cst_32 : f32 to vector<128x64xf32>
    %51 = arith.maximumf %49, %50 : vector<128x64xf32>
    %52 = arith.truncf %51 : vector<128x64xf32> to vector<128x64xbf16>
    %c0_33 = arith.constant 0 : index
    %c0_34 = arith.constant 0 : index
    %53 = vector.load %arg13[%c0_33, %c0_34] : memref<64x784xbf16, #tpu.memory_space<vmem>>, vector<64x784xbf16>
    %cst_35 = arith.constant dense<0.000000e+00> : vector<128x784xf32>
    %54 = tpu.matmul %52, %53, %cst_35 {dimension_numbers = #tpu.dot_dimension_numbers<[1], [0], [0], [1], [0, 0, 1, 1], [], []>} : vector<128x64xbf16>, vector<64x784xbf16>, vector<128x784xf32> -> vector<128x784xf32>
    %c0_36 = arith.constant 0 : index
    %c0_37 = arith.constant 0 : index
    %55 = vector.load %arg14[%c0_36, %c0_37] : memref<1x784xf32, #tpu.memory_space<vmem>>, vector<1x784xf32>
    %56 = vector.broadcast %55 : vector<1x784xf32> to vector<128x784xf32>
    %57 = arith.addf %54, %56 : vector<128x784xf32>
    %58 = tpu.concatenate %57, %23, %32, %35 in 1 : vector<128x784xf32>, vector<128x8xf32>, vector<128x8xf32>, vector<128x8xf32> -> vector<128x808xf32>
    %c0_38 = arith.constant 0 : index
    %c0_39 = arith.constant 0 : index
    %59 = vector.load %arg15[%c0_38, %c0_39] : memref<128x808xf32, #tpu.memory_space<vmem>>, vector<128x808xf32>
    tpu.vector_store %arg15[%c0_38, %c0_39], %58 {strides = array<i32>} : memref<128x808xf32, #tpu.memory_space<vmem>>, vector<128x808xf32>,
    return
  }
  func.func @transform_0(%arg0: i32) -> (i32, i32) {
    %c0_i32 = arith.constant 0 : i32
    %c0_i32_0 = arith.constant 0 : i32
    return %arg0, %c0_i32 : i32, i32
  }
  func.func @transform_1(%arg0: i32) -> (i32, i32) {
    %c0_i32 = arith.constant 0 : i32
    %c0_i32_0 = arith.constant 0 : i32
    return %arg0, %c0_i32 : i32, i32
  }
  func.func @transform_2(%arg0: i32) -> (i32, i32) {
    %c0_i32 = arith.constant 0 : i32
    %c0_i32_0 = arith.constant 0 : i32
    %c0_i32_1 = arith.constant 0 : i32
    return %c0_i32, %c0_i32_0 : i32, i32
  }
  func.func @transform_3(%arg0: i32) -> (i32, i32) {
    %c0_i32 = arith.constant 0 : i32
    %c0_i32_0 = arith.constant 0 : i32
    %c0_i32_1 = arith.constant 0 : i32
    return %c0_i32, %c0_i32_0 : i32, i32
  }
  func.func @transform_4(%arg0: i32) -> (i32, i32) {
    %c0_i32 = arith.constant 0 : i32
    %c0_i32_0 = arith.constant 0 : i32
    %c0_i32_1 = arith.constant 0 : i32
    return %c0_i32, %c0_i32_0 : i32, i32
  }
  func.func @transform_5(%arg0: i32) -> (i32, i32) {
    %c0_i32 = arith.constant 0 : i32
    %c0_i32_0 = arith.constant 0 : i32
    %c0_i32_1 = arith.constant 0 : i32
    return %c0_i32, %c0_i32_0 : i32, i32
  }
  func.func @transform_6(%arg0: i32) -> (i32, i32) {
    %c0_i32 = arith.constant 0 : i32
    %c0_i32_0 = arith.constant 0 : i32
    %c0_i32_1 = arith.constant 0 : i32
    return %c0_i32, %c0_i32_0 : i32, i32
  }
  func.func @transform_7(%arg0: i32) -> (i32, i32) {
    %c0_i32 = arith.constant 0 : i32
    %c0_i32_0 = arith.constant 0 : i32
    %c0_i32_1 = arith.constant 0 : i32
    return %c0_i32, %c0_i32_0 : i32, i32
  }
  func.func @transform_8(%arg0: i32) -> (i32, i32) {
    %c0_i32 = arith.constant 0 : i32
    %c0_i32_0 = arith.constant 0 : i32
    %c0_i32_1 = arith.constant 0 : i32
    return %c0_i32, %c0_i32_0 : i32, i32
  }
  func.func @transform_9(%arg0: i32) -> (i32, i32) {
    %c0_i32 = arith.constant 0 : i32
    %c0_i32_0 = arith.constant 0 : i32
    %c0_i32_1 = arith.constant 0 : i32
    return %c0_i32, %c0_i32_0 : i32, i32
  }
  func.func @transform_10(%arg0: i32) -> (i32, i32) {
    %c0_i32 = arith.constant 0 : i32
    %c0_i32_0 = arith.constant 0 : i32
    %c0_i32_1 = arith.constant 0 : i32
    return %c0_i32, %c0_i32_0 : i32, i32
  }
  func.func @transform_11(%arg0: i32) -> (i32, i32) {
    %c0_i32 = arith.constant 0 : i32
    %c0_i32_0 = arith.constant 0 : i32
    %c0_i32_1 = arith.constant 0 : i32
    return %c0_i32, %c0_i32_0 : i32, i32
  }
  func.func @transform_12(%arg0: i32) -> (i32, i32) {
    %c0_i32 = arith.constant 0 : i32
    %c0_i32_0 = arith.constant 0 : i32
    %c0_i32_1 = arith.constant 0 : i32
    return %c0_i32, %c0_i32_0 : i32, i32
  }
  func.func @transform_13(%arg0: i32) -> (i32, i32) {
    %c0_i32 = arith.constant 0 : i32
    %c0_i32_0 = arith.constant 0 : i32
    %c0_i32_1 = arith.constant 0 : i32
    return %c0_i32, %c0_i32_0 : i32, i32
  }
  func.func @transform_14(%arg0: i32) -> (i32, i32) {
    %c0_i32 = arith.constant 0 : i32
    %c0_i32_0 = arith.constant 0 : i32
    return %arg0, %c0_i32 : i32, i32
  }
}

</mosaic_0001>

<bundles_post_ra>
// kernel: vae_forward.1
= control target key start
LH: loop header
LB: loop body
LE: loop exit
PB: predicated region body
PF: predicated region fallthrough
CT: control target
= control target key end

     0   :  { %s4497_s29 = smov 0   ;;  %s5940_s0 = inlined_call_operand.vmem [shape: f32[256,784], index: 0, kind: input, shape index: {}]   ;;  %s5941_s1 = inlined_call_operand.vmem [shape: f32[256,8], index: 1, kind: input, shape index: {}]   ;;  %s5942_s2 = inlined_call_operand.vmem [shape: bf16[784,64], index: 2, kind: input, shape index: {}]   ;;  %s5943_s3 = inlined_call_operand.vmem [shape: f32[1,64], index: 3, kind: input, shape index: {}]   ;;  %s5944_s4 = inlined_call_operand.vmem [shape: bf16[64,32], index: 4, kind: input, shape index: {}]   ;;  %s5945_s5 = inlined_call_operand.vmem [shape: f32[1,32], index: 5, kind: input, shape index: {}]   ;;  %s5946_s6 = inlined_call_operand.vmem [shape: bf16[32,16], index: 6, kind: input, shape index: {}]   ;;  %s5947_s7 = inlined_call_operand.vmem [shape: f32[1,16], index: 7, kind: input, shape index: {}]   ;;  %s5948_s8 = inlined_call_operand.vmem [shape: bf16[8,32], index: 8, kind: input, shape index: {}]   ;;  %s5949_s9 = inlined_call_operand.vmem [shape: f32[1,32], index: 9, kind: input, shape index: {}]   ;;  %s5950_s10 = inlined_call_operand.vmem [shape: bf16[32,64], index: 10, kind: input, shape index: {}]   ;;  %s5951_s11 = inlined_call_operand.vmem [shape: f32[1,64], index: 11, kind: input, shape index: {}]   ;;  %s5952_s12 = inlined_call_operand.vmem [shape: bf16[64,784], index: 12, kind: input, shape index: {}]   ;;  %s5953_s13 = inlined_call_operand.vmem [shape: f32[1,784], index: 13, kind: input, shape index: {}]   ;;  %s5954_s14 = inlined_call_operand.vmem [shape: f32[256,808], index: 14, kind: output, shape index: {}]  }
   0x1 LB: > { %s3680_s30 = sadd.s32 4294967295, %s4415_s29   ;;  %p3684_p0 = scmp.ge.s32.totalorder %s4415_s29, 1  ;;  %s4415_s29 = sphi %s4497_s29, %s24_s29  }
   0x2   : > { %p425_p1 = scmp.lt.s32.totalorder %s4415_s29, 3 }
   0x4   : > { %p426_p2 = pnand %p3684_p0, %p425_p1 }
   0x5   : > { %v4248_v0 = vld [vmem:[%s5942_s2 + $0x40] sm:$0xff] (!%p426_p2)   ;;  %v4252_v4 = vld [vmem:[%s5942_s2 + $0x48] sm:$0xff] (!%p426_p2)   ;;  %v4256_v8 = vld [vmem:[%s5942_s2 + $0x50] sm:$0xff] (!%p426_p2)   ;;  %s3685_s15 = sshll.u32 (!%p426_p2), %s3680_s30, 4  ;;  %vm1066_vm0 = vcmask (!%p426_p2), 130048   ;;  %vm1542_vm1 = vcmask (!%p426_p2), 523264  }
   0x6   : > { %429 = sbr.rel (%p426_p2) target bundleno = 1719 (0x6b7), region = 76  ;;  %v4249_v1 = vld [vmem:[%s5942_s2] sm:$0xff] (!%p426_p2)   ;;  %3855 = vmatprep.subr.bf16.mxu0 (!%p426_p2), %v4248_v0  ;;  %v4253_v5 = vld [vmem:[%s5942_s2 + $0x8] sm:$0xff] (!%p426_p2)   ;;  %v4257_v9 = vld [vmem:[%s5942_s2 + $0x10] sm:$0xff] (!%p426_p2)   ;;  %p479_p3 = scmp.lt.s32.totalorder (!%p426_p2), %s3685_s15, 31  ;;  %vm1711_vm2 = vcmask (!%p426_p2), 261120  }
   0x7   : > { %v4250_v2 = vld [vmem:[%s5942_s2 + $0xc0] sm:$0xff] (!%p426_p2)   ;;  %3856 = vmatpush3.bf16.msra.mxu0 (!%p426_p2), %v4249_v1  ;;  %v4254_v6 = vld [vmem:[%s5942_s2 + $0xc8] sm:$0xff] (!%p426_p2)   ;;  %v4258_v10 = vld [vmem:[%s5942_s2 + $0xd0] sm:$0xff] (!%p426_p2)   ;;  %s4417_s18 = smov (!%p426_p2), 8   ;;  %vm2290_vm3 = vcmask (!%p426_p2), 1043456   ;;  %s4418_s25 = smov (!%p426_p2), 120  }
   0x8   : > { %v4251_v3 = vld [vmem:[%s5942_s2 + $0x80] sm:$0xff] (!%p426_p2)   ;;  %3919 = vmatprep.subr.bf16.mxu1 (!%p426_p2), %v4250_v2  ;;  %3857 = vmatprep.subr.bf16.mxu0 (!%p426_p2), %v4252_v4  ;;  %v4255_v7 = vld [vmem:[%s5942_s2 + $0x88] sm:$0xff] (!%p426_p2)   ;;  %v4259_v11 = vld [vmem:[%s5942_s2 + $0x90] sm:$0xff] (!%p426_p2)   ;;  %s4419_s26 = smov (!%p426_p2), 16  }
   0x9   : > { %3920 = vmatpush3.bf16.msra.mxu1 (!%p426_p2), %v4251_v3  ;;  %v4260_v12 = vld [vmem:[%s5942_s2 + $0x58] sm:$0xff] (!%p426_p2)   ;;  %v4264_v16 = vld [vmem:[%s5942_s2 + $0x60] sm:$0xff] (!%p426_p2)   ;;  %v4268_v20 = vld [vmem:[%s5942_s2 + $0x68] sm:$0xff] (!%p426_p2)  }
   0xa   : > { %3921 = vmatprep.subr.bf16.mxu1 (!%p426_p2), %v4254_v6  ;;  %v4261_v13 = vld [vmem:[%s5942_s2 + $0x18] sm:$0xff] (!%p426_p2)   ;;  %v4265_v17 = vld [vmem:[%s5942_s2 + $0x20] sm:$0xff] (!%p426_p2)   ;;  %v4269_v21 = vld [vmem:[%s5942_s2 + $0x28] sm:$0xff] (!%p426_p2)  }
   0xb   : > { %3858 = vmatpush3.bf16.msra.mxu0 (!%p426_p2), %v4253_v5  ;;  %v4262_v14 = vld [vmem:[%s5942_s2 + $0xd8] sm:$0xff] (!%p426_p2)   ;;  %v4266_v18 = vld [vmem:[%s5942_s2 + $0xe0] sm:$0xff] (!%p426_p2)   ;;  %v4270_v22 = vld [vmem:[%s5942_s2 + $0xe8] sm:$0xff] (!%p426_p2)  }
   0xc   : > { %3859 = vmatprep.subr.bf16.mxu0 (!%p426_p2), %v4256_v8  ;;  %v4263_v15 = vld [vmem:[%s5942_s2 + $0x98] sm:$0xff] (!%p426_p2)   ;;  %v4267_v19 = vld [vmem:[%s5942_s2 + $0xa0] sm:$0xff] (!%p426_p2)   ;;  %v4271_v23 = vld [vmem:[%s5942_s2 + $0xa8] sm:$0xff] (!%p426_p2)  }
   0xd   : > { %3922 = vmatpush3.bf16.msra.mxu1 %v4255_v7  ;;  %s5966_s15 = smov (!%p479_p3, %s3685_s15), 31  ;;  %v4272_v24 = vld [vmem:[%s5942_s2 + $0x70] sm:$0xff]   ;;  %v4276_v28 = vld [vmem:[%s5942_s2 + $0x78] sm:$0xff]   ;;  %v4280_v38 = vld [vmem:[%s5942_s2 + $0x140] sm:$0xff]  }
   0xe   : > { %3923 = vmatprep.subr.bf16.mxu1 %v4258_v10  ;;  %s4234_s30 = smul.u32 56, %s5966_s15  ;;  %v4273_v25 = vld [vmem:[%s5942_s2 + $0x30] sm:$0xff]   ;;  %v4277_v29 = vld [vmem:[%s5942_s2 + $0x38] sm:$0xff]   ;;  %v4281_v42 = vld [vmem:[%s5942_s2 + $0x100] sm:$0xff]   ;;  %s3688_s27 = sshll.u32 %s5966_s15, 3 }
   0xf   : > { %3860 = vmatpush3.bf16.msra.mxu0 %v4257_v9  ;;  %v4274_v26 = vld [vmem:[%s5942_s2 + $0xf0] sm:$0xff]   ;;  %v4278_v30 = vld [vmem:[%s5942_s2 + $0xf8] sm:$0xff]   ;;  %v4282_v51 = vld [vmem:[%s5942_s2 + $0x148] sm:$0xff]   ;;  %s4886_s17 = scalar_lea.vmem %s5941_s1, %s3688_s27  ;;  %s4420_s27 = smov 32  }
  0x10   : > { %3861 = vmatprep.subr.bf16.mxu0 %v4260_v12  ;;  %v4275_v27 = vld [vmem:[%s5942_s2 + $0xb0] sm:$0xff]   ;;  %s4602_s21 = scalar_lea.vmem %s5940_s0, %s4234_s30  ;;  %v4279_v34 = vld [vmem:[%s5942_s2 + $0xb8] sm:$0xff]   ;;  %v4283_v56 = vld [vmem:[%s5942_s2 + $0x108] sm:$0xff]  }
  0x11   : > { %3924 = vmatpush3.bf16.msra.mxu1 %v4259_v11  ;;  %v500_v31 = vld [vmem:[%s4602_s21 + $0x8] sm:$0xff]  ;;  %v507_v32 = vld [vmem:[%s4602_s21 + $0x40] sm:$0xff]  ;;  %v506_v36 = vld [vmem:[%s4602_s21 + $0x38] sm:$0xff] }
  0x12   : > { %3925 = vmatprep.subr.bf16.mxu1 %v4262_v14  ;;  %v612_v33 = vpack.c.bf16 %v507_v32, %v500_v31  ;;  %v499_v35 = vld [vmem:[%s4602_s21] sm:$0xff]  ;;  %v502_v39 = vld [vmem:[%s4602_s21 + $0x18] sm:$0xff]  ;;  %v509_v40 = vld [vmem:[%s4602_s21 + $0x50] sm:$0xff] }
  0x13   : > { %3862 = vmatpush3.bf16.msra.mxu0 %v4261_v13  ;;  %v611_v37 = vpack.c.bf16 %v506_v36, %v499_v35  ;;  %v614_v41 = vpack.c.bf16 %v509_v40, %v502_v39  ;;  %v501_v43 = vld [vmem:[%s4602_s21 + $0x10] sm:$0xff]  ;;  %v508_v44 = vld [vmem:[%s4602_s21 + $0x48] sm:$0xff]  ;;  %v514_v45 = vld [vmem:[%s4602_s21 + $0x78] sm:$0xff] }
  0x14   : > { %3863 = vmatprep.subr.bf16.mxu0 %v4264_v16  ;;  %1123 = vmatprep.mubr.bf16.mxu0 %v612_v33  ;;  %v613_v46 = vpack.c.bf16 %v508_v44, %v501_v43  ;;  %v521_v47 = vld [vmem:[%s4602_s21 + $0xb0] sm:$0xff]  ;;  %v520_v49 = vld [vmem:[%s4602_s21 + $0xa8] sm:$0xff]  ;;  %v523_v53 = vld [vmem:[%s4602_s21 + $0xc0] sm:$0xff] }
  0x15   : > { %3926 = vmatpush3.bf16.msra.mxu1 %v4263_v15  ;;  %1220 = vmatprep.mubr.bf16.mxu1 %v614_v41  ;;  %v513_v48 = vld [vmem:[%s4602_s21 + $0x70] sm:$0xff]  ;;  %v619_v50 = vpack.c.bf16 %v521_v47, %v514_v45  ;;  %v516_v52 = vld [vmem:[%s4602_s21 + $0x88] sm:$0xff]  ;;  %v515_v57 = vld [vmem:[%s4602_s21 + $0x80] sm:$0xff] }
  0x16   : > { %3927 = vmatprep.subr.bf16.mxu1 %v4266_v18  ;;  %v618_v54 = vpack.c.bf16 %v520_v49, %v513_v48  ;;  %v621_v55 = vpack.c.bf16 %v523_v53, %v516_v52  ;;  %v522_v58 = vld [vmem:[%s4602_s21 + $0xb8] sm:$0xff]  ;;  %v4284_v59 = vld [vmem:[%s5942_s2 + $0x180] sm:$0xff]   ;;  %v528_v60 = vld [vmem:[%s4602_s21 + $0xe8] sm:$0xff] }
  0x17   : > { %3864 = vmatpush3.bf16.msra.mxu0 %v4265_v17  ;;  %v535_v61 = vld [vmem:[%s4602_s21 + $0x120] sm:$0xff]  ;;  %v620_v62 = vpack.c.bf16 %v522_v58, %v515_v57  ;;  %v534_v1 = vld [vmem:[%s4602_s21 + $0x118] sm:$0xff]  ;;  %v4285_v2 = vld [vmem:[%s5942_s2 + $0x150] sm:$0xff]  }
  0x18   : > { %3865 = vmatprep.subr.bf16.mxu0 %v4268_v20  ;;  %v626_v63 = vpack.c.bf16 %v535_v61, %v528_v60  ;;  %v527_v0 = vld [vmem:[%s4602_s21 + $0xe0] sm:$0xff]  ;;  %v530_v3 = vld [vmem:[%s4602_s21 + $0xf8] sm:$0xff]  ;;  %v537_v4 = vld [vmem:[%s4602_s21 + $0x130] sm:$0xff] }
  0x19   : > { %3928 = vmatpush3.bf16.msra.mxu1 %v4267_v19  ;;  %v628_v5 = vpack.c.bf16 %v537_v4, %v530_v3  ;;  %v4286_v6 = vld [vmem:[%s5942_s2 + $0x110] sm:$0xff]   ;;  %v542_v8 = vld [vmem:[%s4602_s21 + $0x158] sm:$0xff]  ;;  %v625_v10 = vpack.c.bf16 %v534_v1, %v527_v0  ;;  %v536_v11 = vld [vmem:[%s4602_s21 + $0x128] sm:$0xff] }
  0x1a   : > { %3929 = vmatprep.subr.bf16.mxu1 %v4270_v22  ;;  %v529_v7 = vld [vmem:[%s4602_s21 + $0xf0] sm:$0xff]  ;;  %v4287_v13 = vld [vmem:[%s5942_s2 + $0x158] sm:$0xff]   ;;  %v544_v14 = vld [vmem:[%s4602_s21 + $0x168] sm:$0xff] }
  0x1b   : > { %3866 = vmatpush3.bf16.msra.mxu0 %v4269_v21  ;;  %v549_v9 = vld [vmem:[%s4602_s21 + $0x190] sm:$0xff]  ;;  %v551_v15 = vld [vmem:[%s4602_s21 + $0x1a0] sm:$0xff]  ;;  %v4288_v16 = vld [vmem:[%s5942_s2 + $0x118] sm:$0xff]   ;;  %v627_v17 = vpack.c.bf16 %v536_v11, %v529_v7 }
  0x1c   : > { %3867 = vmatprep.subr.bf16.mxu0 %v4272_v24  ;;  %v633_v12 = vpack.c.bf16 %v549_v9, %v542_v8  ;;  %v541_v18 = vld [vmem:[%s4602_s21 + $0x150] sm:$0xff]  ;;  %v548_v19 = vld [vmem:[%s4602_s21 + $0x188] sm:$0xff]  ;;  %v635_v20 = vpack.c.bf16 %v551_v15, %v544_v14  ;;  %v4289_v21 = vld [vmem:[%s5942_s2 + $0x160] sm:$0xff]  }
  0x1d   : > { %3930 = vmatpush3.bf16.msra.mxu1 %v4271_v23  ;;  %v556_v22 = vld [vmem:[%s4602_s21 + $0x1c8] sm:$0xff]  ;;  %v563_v23 = vld [vmem:[%s4602_s21 + $0x200] sm:$0xff]  ;;  %v562_v36 = vld [vmem:[%s4602_s21 + $0x1f8] sm:$0xff] }
  0x1e   : > { %3931 = vmatprep.subr.bf16.mxu1 %v4274_v26  ;;  %v4290_v24 = vld [vmem:[%s5942_s2 + $0x120] sm:$0xff]   ;;  %v4291_v31 = vld [vmem:[%s5942_s2 + $0x168] sm:$0xff]   ;;  %v557_v39 = vld [vmem:[%s4602_s21 + $0x1d0] sm:$0xff] }
  0x1f   : > { %3868 = vmatpush3.bf16.msra.mxu0 %v4273_v25  ;;  %v632_v25 = vpack.c.bf16 %v548_v19, %v541_v18  ;;  %v543_v26 = vld [vmem:[%s4602_s21 + $0x160] sm:$0xff]  ;;  %v564_v40 = vld [vmem:[%s4602_s21 + $0x208] sm:$0xff]  ;;  %v4293_v41 = vld [vmem:[%s5942_s2 + $0x170] sm:$0xff]  }
  0x20   : > { %3869 = vmatprep.subr.bf16.mxu0 %v4276_v28  ;;  %v640_v28 = vpack.c.bf16 %v563_v23, %v556_v22  ;;  %v555_v35 = vld [vmem:[%s4602_s21 + $0x1c0] sm:$0xff]  ;;  %v4294_v43 = vld [vmem:[%s5942_s2 + $0x130] sm:$0xff]   ;;  %v572_v45 = vld [vmem:[%s4602_s21 + $0x248] sm:$0xff]  ;;  %v641_v47 = vpack.c.bf16 %v564_v40, %v557_v39 }
  0x21   : > { %3932 = vmatpush3.bf16.msra.mxu1 %v4275_v27  ;;  %v550_v27 = vld [vmem:[%s4602_s21 + $0x198] sm:$0xff]  ;;  %v569_v49 = vld [vmem:[%s4602_s21 + $0x230] sm:$0xff]  ;;  %v584_v53 = vld [vmem:[%s4602_s21 + $0x2a8] sm:$0xff] }
  0x22   : > { %3933 = vmatprep.subr.bf16.mxu1 %v4278_v30  ;;  %v565_v30 = vld [vmem:[%s4602_s21 + $0x210] sm:$0xff]  ;;  %v634_v32 = vpack.c.bf16 %v550_v27, %v543_v26  ;;  %v4295_v48 = vld [vmem:[%s5942_s2 + $0x178] sm:$0xff]   ;;  %v600_v7 = vld [vmem:[%s4602_s21 + $0x328] sm:$0xff] }
  0x23   : > { %3870 = vmatpush3.bf16.msra.mxu0 %v4277_v29  ;;  %v558_v29 = vld [vmem:[%s4602_s21 + $0x1d8] sm:$0xff]  ;;  %v593_v60 = vld [vmem:[%s4602_s21 + $0x2f0] sm:$0xff]  ;;  %v607_v8 = vld [vmem:[%s4602_s21 + $0x360] sm:$0xff] }
  0x24   : > { %3983 = vmatprep.subr.bf16.mxu0 %v4280_v38  ;;  %v642_v33 = vpack.c.bf16 %v565_v30, %v558_v29  ;;  %v577_v38 = vld [vmem:[%s4602_s21 + $0x270] sm:$0xff]  ;;  %v4296_v52 = vld [vmem:[%s5942_s2 + $0x138] sm:$0xff]   ;;  %v599_v14 = vld [vmem:[%s4602_s21 + $0x320] sm:$0xff] }
  0x25   : > { %3934 = vmatpush3.bf16.msra.mxu1 %v4279_v34  ;;  %v4292_v34 = vld [vmem:[%s5942_s2 + $0x128] sm:$0xff]   ;;  %v578_v57 = vld [vmem:[%s4602_s21 + $0x278] sm:$0xff]  ;;  %v585_v4 = vld [vmem:[%s4602_s21 + $0x2b0] sm:$0xff] }
  0x26   : > { %1124 = vmatmul.mubr.bf16.vlgmr.msra.gmra.mrb[0].mxu0 %v611_v37  ;;  %4109 = vmatprep.subr.bf16.mxu1 %v4284_v59  ;;  %v570_v37 = vld [vmem:[%s4602_s21 + $0x238] sm:$0xff]  ;;  %v597_v11 = vld [vmem:[%s4602_s21 + $0x310] sm:$0xff]  ;;  %v512_v18 = vld [vmem:[%s4602_s21 + $0x68] sm:$0xff] }
  0x27   : > { %3984 = vmatpush3.bf16.msra.mxu0 %v4281_v42  ;;  %1131 = vmatprep.mubr.bf16.mxu0 %v619_v50  ;;  %v639_v42 = vpack.c.bf16 %v562_v36, %v555_v35  ;;  %v647_v44 = vpack.c.bf16 %v577_v38, %v570_v37  ;;  %v590_v0 = vld [vmem:[%s4602_s21 + $0x2d8] sm:$0xff]  ;;  %v503_v22 = vld [vmem:[%s4602_s21 + $0x20] sm:$0xff]  ;;  %v525_v26 = vld [vmem:[%s4602_s21 + $0xd0] sm:$0xff] }
  0x28   : > { %1221 = vmatmul.mubr.bf16.vlgmr.msra.gmra.mrb[0].mxu1 %v613_v46  ;;  %3985 = vmatprep.subr.bf16.mxu0 %v4282_v51  ;;  %v579_v46 = vld [vmem:[%s4602_s21 + $0x280] sm:$0xff]  ;;  %v576_v51 = vld [vmem:[%s4602_s21 + $0x268] sm:$0xff]  ;;  %v598_v1 = vld [vmem:[%s4602_s21 + $0x318] sm:$0xff] }
  0x29   : > { %1228 = vmatprep.mubr.bf16.mxu1 %v621_v55  ;;  %4110 = vmatpush3.bf16.msra.mxu1 %v4284_v59  ;;  %v649_v50 = vpack.c.bf16 %v579_v46, %v572_v45  ;;  %v646_v55 = vpack.c.bf16 %v576_v51, %v569_v49  ;;  %v586_v59 = vld [vmem:[%s4602_s21 + $0x2b8] sm:$0xff]  ;;  %v519_v27 = vld [vmem:[%s4602_s21 + $0xa0] sm:$0xff]  ;;  %v533_v29 = vld [vmem:[%s4602_s21 + $0x110] sm:$0xff] }
  0x2a   : > { %v606_v15 = vld [vmem:[%s4602_s21 + $0x358] sm:$0xff]  ;;  %v540_v30 = vld [vmem:[%s4602_s21 + $0x148] sm:$0xff]  ;;  %v539_v38 = vld [vmem:[%s4602_s21 + $0x140] sm:$0xff] }
  0x2b   : > { %3986 = vmatpush3.bf16.msra.mxu0 %v4283_v56  ;;  %v571_v56 = vld [vmem:[%s4602_s21 + $0x240] sm:$0xff]  ;;  %v510_v23 = vld [vmem:[%s4602_s21 + $0x58] sm:$0xff]  ;;  %v524_v35 = vld [vmem:[%s4602_s21 + $0xc8] sm:$0xff]  ;;  %v631_v36 = vpack.c.bf16 %v540_v30, %v533_v29 }
  0x2c   : > { %3987 = vmatprep.subr.bf16.mxu0 %v4285_v2  ;;  %v648_v61 = vpack.c.bf16 %v578_v57, %v571_v56  ;;  %v605_v2 = vld [vmem:[%s4602_s21 + $0x350] sm:$0xff]  ;;  %v532_v37 = vld [vmem:[%s4602_s21 + $0x108] sm:$0xff]  ;;  %v547_v40 = vld [vmem:[%s4602_s21 + $0x180] sm:$0xff] }
  0x2d   : > { %v546_v49 = vld [vmem:[%s4602_s21 + $0x178] sm:$0xff]  ;;  %v596_v56 = vld [vmem:[%s4602_s21 + $0x308] sm:$0xff]  ;;  %v4799_v30 = vld [vmem:[%s5943_s3] ss:$0 sm:$0xff] }
  0x2e   : > { %1132 = vmatmul.mubr.bf16.gmra.mrb[4].mxu0 %v618_v54  ;;  %v591_v54 = vld [vmem:[%s4602_s21 + $0x2e0] sm:$0xff] }
  0x2f   : > { %1139 = vmatprep.mubr.bf16.mxu0 %v626_v63  ;;  %3988 = vmatpush3.bf16.msra.mxu0 %v4286_v6  ;;  %v654_v58 = vpack.c.bf16 %v591_v54, %v584_v53  ;;  %v583_v63 = vld [vmem:[%s4602_s21 + $0x2a0] sm:$0xff]  ;;  %v661_v6 = vpack.c.bf16 %v605_v2, %v598_v1  ;;  %v582_v53 = vld [vmem:[%s4602_s21 + $0x298] sm:$0xff] }
  0x30   : > { %1229 = vmatmul.mubr.bf16.gmra.mrb[4].mxu1 %v620_v62  ;;  %3989 = vmatprep.subr.bf16.mxu0 %v4287_v13  ;;  %v656_v62 = vpack.c.bf16 %v593_v60, %v586_v59  ;;  %v653_v3 = vpack.c.bf16 %v590_v0, %v583_v63  ;;  %v504_v13 = vld [vmem:[%s4602_s21 + $0x28] sm:$0xff]  ;;  %v545_v59 = vld [vmem:[%s4602_s21 + $0x170] sm:$0xff]  ;;  %v603_v0 = vld [vmem:[%s4602_s21 + $0x340] sm:$0xff] }
  0x31   : > { %1236 = vmatprep.mubr.bf16.mxu1 %v628_v5  ;;  %v592_v5 = vld [vmem:[%s4602_s21 + $0x2e8] sm:$0xff]  ;;  %v610_v1 = vld [vmem:[%s4602_s21 + $0x378] sm:$0xff] }
  0x32   : > { %v655_v9 = vpack.c.bf16 %v592_v5, %v585_v4  ;;  %v552_v60 = vld [vmem:[%s4602_s21 + $0x1a8] sm:$0xff]  ;;  %v559_v4 = vld [vmem:[%s4602_s21 + $0x1e0] sm:$0xff]  ;;  %v566_v5 = vld [vmem:[%s4602_s21 + $0x218] sm:$0xff] }
  0x33   : > { %3990 = vmatpush3.bf16.msra.mxu0 %v4288_v16  ;;  %v511_v16 = vld [vmem:[%s4602_s21 + $0x60] sm:$0xff]  ;;  %v636_v63 = vpack.c.bf16 %v552_v60, %v545_v59 }
  0x34   : > { %3991 = vmatprep.subr.bf16.mxu0 %v4289_v21  ;;  %v662_v21 = vpack.c.bf16 %v606_v15, %v599_v14 }
  0x36   : > { %1140 = vmatmul.mubr.bf16.gmra.mrb[8].mxu0 %v625_v10  ;;  %v663_v10 = vpack.c.bf16 %v607_v8, %v600_v7  ;;  %v581_v7 = vld [vmem:[%s4602_s21 + $0x290] sm:$0xff]  ;;  %v643_v8 = vpack.c.bf16 %v566_v5, %v559_v4 }
  0x37   : > { %1147 = vmatprep.mubr.bf16.mxu0 %v633_v12  ;;  %3992 = vmatpush3.bf16.msra.mxu0 %v4290_v24  ;;  %v604_v12 = vld [vmem:[%s4602_s21 + $0x348] sm:$0xff] }
  0x38   : > { %1237 = vmatmul.mubr.bf16.gmra.mrb[8].mxu1 %v627_v17  ;;  %3993 = vmatprep.subr.bf16.mxu0 %v4291_v31  ;;  %v505_v17 = vld [vmem:[%s4602_s21 + $0x30] sm:$0xff]  ;;  %v660_v19 = vpack.c.bf16 %v604_v12, %v597_v11  ;;  %v615_v31 = vpack.c.bf16 %v510_v23, %v503_v22  ;;  %v580_v11 = vld [vmem:[%s4602_s21 + $0x288] sm:$0xff] }
  0x39   : > { %1244 = vmatprep.mubr.bf16.mxu1 %v635_v20  ;;  %v616_v20 = vpack.c.bf16 %v511_v16, %v504_v13  ;;  %v617_v24 = vpack.c.bf16 %v512_v18, %v505_v17  ;;  %v588_v12 = vld [vmem:[%s4602_s21 + $0x2c8] sm:$0xff]  ;;  %v595_v13 = vld [vmem:[%s4602_s21 + $0x300] sm:$0xff]  ;;  %v594_v17 = vld [vmem:[%s4602_s21 + $0x2f8] sm:$0xff] }
  0x3a   : > { %v658_v15 = vpack.c.bf16 %v595_v13, %v588_v12  ;;  %v587_v16 = vld [vmem:[%s4602_s21 + $0x2c0] sm:$0xff]  ;;  %v602_v18 = vld [vmem:[%s4602_s21 + $0x338] sm:$0xff]  ;;  %v601_v22 = vld [vmem:[%s4602_s21 + $0x330] sm:$0xff] }
  0x3b   : > { %3994 = vmatpush3.bf16.msra.mxu0 %v4292_v34  ;;  %v517_v34 = vld [vmem:[%s4602_s21 + $0x90] sm:$0xff]  ;;  %v608_v23 = vld [vmem:[%s4602_s21 + $0x368] sm:$0xff] }
  0x3c   : > { %3995 = vmatprep.subr.bf16.mxu0 %v4293_v41  ;;  %v622_v39 = vpack.c.bf16 %v524_v35, %v517_v34  ;;  %v554_v41 = vld [vmem:[%s4602_s21 + $0x1b8] sm:$0xff] }
  0x3d   : > { %v638_v45 = vpack.c.bf16 %v554_v41, %v547_v40 }
  0x3e   : > { %1148 = vmatmul.mubr.bf16.gmra.mrb[12].mxu0 %v632_v25  ;;  %v518_v25 = vld [vmem:[%s4602_s21 + $0x98] sm:$0xff] }
  0x3f   : > { %1155 = vmatprep.mubr.bf16.mxu0 %v640_v28  ;;  %3996 = vmatpush3.bf16.msra.mxu0 %v4294_v43  ;;  %v526_v28 = vld [vmem:[%s4602_s21 + $0xd8] sm:$0xff]  ;;  %v561_v43 = vld [vmem:[%s4602_s21 + $0x1f0] sm:$0xff] }
  0x40   : > { %1245 = vmatmul.mubr.bf16.gmra.mrb[12].mxu1 %v634_v32  ;;  %3997 = vmatprep.subr.bf16.mxu0 %v4295_v48  ;;  %v623_v32 = vpack.c.bf16 %v525_v26, %v518_v25  ;;  %v538_v48 = vld [vmem:[%s4602_s21 + $0x138] sm:$0xff]  ;;  %v4297_v25 = vld [vmem:[%s5944_s4] sm:$0xff]   ;;  %v4298_v26 = vld [vmem:[%s5944_s4 + $0x8] sm:$0xff]  }
  0x41   : > { %1252 = vmatprep.mubr.bf16.mxu1 %v642_v33  ;;  %v624_v33 = vpack.c.bf16 %v526_v28, %v519_v27  ;;  %4127 = vmatprep.subr.bf16.mxu1 %v4297_v25  ;;  %v4299_v27 = vld [vmem:[%s5944_s4 + $0x10] sm:$0xff]   ;;  %v4300_v28 = vld [vmem:[%s5944_s4 + $0x18] sm:$0xff]  }
  0x43   : > { %3998 = vmatpush3.bf16.msra.mxu0 %v4296_v52  ;;  %v575_v52 = vld [vmem:[%s4602_s21 + $0x260] sm:$0xff] }
  0x44   : > { %v652_v57 = vpack.c.bf16 %v582_v53, %v575_v52 }
  0x46   : > { %1156 = vmatmul.mubr.bf16.gmra.mrb[16].mxu0 %v639_v42  ;;  %v630_v42 = vpack.c.bf16 %v539_v38, %v532_v37 }
  0x47   : > { %1163 = vmatprep.mubr.bf16.mxu0 %v647_v44  ;;  %v568_v44 = vld [vmem:[%s4602_s21 + $0x228] sm:$0xff] }
  0x48   : > { %1253 = vmatmul.mubr.bf16.gmra.mrb[16].mxu1 %v641_v47  ;;  %v645_v46 = vpack.c.bf16 %v568_v44, %v561_v43  ;;  %v531_v47 = vld [vmem:[%s4602_s21 + $0x100] sm:$0xff]  ;;  %v4302_v44 = vld [vmem:[%s5946_s6 + $0x8] sm:$0xff]  }
  0x49   : > { %1260 = vmatprep.mubr.bf16.mxu1 %v649_v50  ;;  %v553_v50 = vld [vmem:[%s4602_s21 + $0x1b0] sm:$0xff]  ;;  %v629_v51 = vpack.c.bf16 %v538_v48, %v531_v47  ;;  %v4301_v43 = vld [vmem:[%s5946_s6] sm:$0xff]  }
  0x4a   : > { %v637_v54 = vpack.c.bf16 %v553_v50, %v546_v49  ;;  %4151 = vmatprep.subr.bf16.mxu0 %v4301_v43 }
  0x4e   : > { %1164 = vmatmul.mubr.bf16.gmra.mrb[20].mxu0 %v646_v55  ;;  %v589_v55 = vld [vmem:[%s4602_s21 + $0x2d0] sm:$0xff] }
  0x4f   : > { %1171 = vmatprep.mubr.bf16.mxu0 %v654_v58  ;;  %v659_v58 = vpack.c.bf16 %v596_v56, %v589_v55 }
  0x50   : > { %1261 = vmatmul.mubr.bf16.gmra.mrb[20].mxu1 %v648_v61  ;;  %v560_v61 = vld [vmem:[%s4602_s21 + $0x1e8] sm:$0xff] }
  0x51   : > { %1268 = vmatprep.mubr.bf16.mxu1 %v656_v62  ;;  %v567_v62 = vld [vmem:[%s4602_s21 + $0x220] sm:$0xff] }
  0x52   : > { %v644_v2 = vpack.c.bf16 %v567_v62, %v560_v61 }
  0x56   : > { %1172 = vmatmul.mubr.bf16.gmra.mrb[24].mxu0 %v653_v3  ;;  %v666_v3 = vpack.c.bf16 %v610_v1, %v603_v0 }
  0x57   : > { %1179 = vmatprep.mubr.bf16.mxu0 %v661_v6  ;;  %v574_v6 = vld [vmem:[%s4602_s21 + $0x258] sm:$0xff] }
  0x58   : > { %1269 = vmatmul.mubr.bf16.gmra.mrb[24].mxu1 %v655_v9  ;;  %v651_v9 = vpack.c.bf16 %v581_v7, %v574_v6 }
  0x59   : > { %1276 = vmatprep.mubr.bf16.mxu1 %v663_v10  ;;  %v573_v10 = vld [vmem:[%s4602_s21 + $0x250] sm:$0xff] }
  0x5a   : > { %v650_v14 = vpack.c.bf16 %v580_v11, %v573_v10 }
  0x5e   : > { %1180 = vmatmul.mubr.bf16.gmra.mrb[28].mxu0 %v660_v19  ;;  %v609_v19 = vld [vmem:[%s4602_s21 + $0x370] sm:$0xff] }
  0x5f   : > { %1317 = vmatprep.mubr.bf16.mxu0 %v616_v20  ;;  %v657_v20 = vpack.c.bf16 %v594_v17, %v587_v16 }
  0x60   : > { %1277 = vmatmul.mubr.bf16.gmra.mrb[28].mxu1 %v662_v21  ;;  %v665_v21 = vpack.c.bf16 %v609_v19, %v602_v18 }
  0x61   : > { %4111 = vmatprep.mubr.msk.bf16.mxu1 %vm1066_vm0, %v617_v24  ;;  %v664_v24 = vpack.c.bf16 %v608_v23, %v601_v22 }
  0x66   : > { %1318 = vmatmul.mubr.bf16.vlgmr.msra.gmra.mrb[32].mxu0 %v615_v31 }
  0x67   : > { %1325 = vmatprep.mubr.bf16.mxu0 %v623_v32  ;;  %4152 = vmatpush3.bf16.msra.mxu0 %v4301_v43 }
  0x68   : > { %4112 = vmatmul.mubr.msk.bf16.vlgmr.msra.gmra.mrb[32].mxu1 %vm1066_vm0, %v624_v33  ;;  %4153 = vmatprep.subr.bf16.mxu0 %v4302_v44 }
  0x69   : > { %4115 = vmatprep.mubr.msk.bf16.mxu1 %vm1066_vm0, %v631_v36  ;;  %4128 = vmatpush3.bf16.msra.mxu1 %v4297_v25 }
  0x6a   : > { %4129 = vmatprep.subr.bf16.mxu1 %v4298_v26 }
  0x6b   : > { %4154 = vmatpush3.bf16.msra.mxu0 %v4302_v44 }
  0x6d   : > { %4130 = vmatpush3.bf16.msra.mxu1 %v4298_v26 }
  0x6e   : > { %1326 = vmatmul.mubr.bf16.gmra.mrb[36].mxu0 %v622_v39  ;;  %4131 = vmatprep.subr.bf16.mxu1 %v4299_v27 }
  0x6f   : > { %1333 = vmatprep.mubr.bf16.mxu0 %v630_v42 }
  0x70   : > { %4116 = vmatmul.mubr.msk.bf16.gmra.mrb[36].mxu1 %vm1066_vm0, %v638_v45 }
  0x71   : > { %4119 = vmatprep.mubr.msk.bf16.mxu1 %vm1066_vm0, %v645_v46  ;;  %4132 = vmatpush3.bf16.msra.mxu1 %v4299_v27 }
  0x72   : > { %4133 = vmatprep.subr.bf16.mxu1 %v4300_v28 }
  0x75   : > { %4134 = vmatpush3.bf16.msra.mxu1 %v4300_v28 }
  0x76   : > { %1334 = vmatmul.mubr.bf16.gmra.mrb[40].mxu0 %v629_v51 }
  0x77   : > { %1341 = vmatprep.mubr.bf16.mxu0 %v637_v54 }
  0x78   : > { %4120 = vmatmul.mubr.msk.bf16.gmra.mrb[40].mxu1 %vm1066_vm0, %v652_v57 }
  0x79   : > { %4123 = vmatprep.mubr.msk.bf16.mxu1 %vm1066_vm0, %v659_v58 }
  0x7e   : > { %1342 = vmatmul.mubr.bf16.gmra.mrb[44].mxu0 %v636_v63 }
  0x7f   : > { %1349 = vmatprep.mubr.bf16.mxu0 %v644_v2 }
  0x80   : > { %4124 = vmatmul.mubr.msk.bf16.gmra.mrb[44].mxu1 %vm1066_vm0, %v666_v3 }
  0x86   : > { %1350 = vmatmul.mubr.bf16.gmra.mrb[48].mxu0 %v643_v8 }
  0x87   : > { %1357 = vmatprep.mubr.bf16.mxu0 %v651_v9 }
  0x8e   : > { %1358 = vmatmul.mubr.bf16.gmra.mrb[52].mxu0 %v650_v14 }
  0x8f   : > { %1365 = vmatprep.mubr.bf16.mxu0 %v658_v15 }
  0x96   : > { %1366 = vmatmul.mubr.bf16.gmra.mrb[56].mxu0 %v657_v20 }
  0x97   : > { %1373 = vmatprep.mubr.bf16.mxu0 %v665_v21 }
  0x9e   : > { %1374 = vmatmul.mubr.bf16.gmra.mrb[60].mxu0 %v664_v24 }
  0xf9   : > { %v3871_v29 = vpop.f32.mrb[0].mxu0 }
  0xfa   : > { %v3872_v31 = vpop.f32.mrb[1].mxu0 }
  0xfb   : > { %v3873_v32 = vadd.f32 %v3872_v31, %v3871_v29  ;;  %v3874_v33 = vpop.f32.mrb[2].mxu0  ;;  %v3935_v34 = vpop.f32.mrb[0].mxu1 }
  0xfc   : > { %v3875_v35 = vpop.f32.mrb[3].mxu0  ;;  %v3936_v38 = vpop.f32.mrb[1].mxu1 }
  0xfd   : > { %v1126_v36 = vadd.f32 %v3873_v32, %v4799_v30  ;;  %v3876_v37 = vadd.f32 %v3875_v35, %v3874_v33  ;;  %v3937_v39 = vadd.f32 %v3936_v38, %v3935_v34  ;;  %v3938_v40 = vpop.f32.mrb[2].mxu1 }
  0xfe   : > { %v3939_v42 = vpop.f32.mrb[3].mxu1 }
  0xff   : > { %v1129_v41 = vadd.f32 %v3876_v37, %v4799_v30  ;;  %v4809_v45 = vadd.f32 %v3937_v39, %v1126_v36  ;;  %v3940_v46 = vadd.f32 %v3939_v42, %v3938_v40 }
 0x101   : > { %v3877_v47 = vpop.f32.mrb[4].mxu0  ;;  %v4811_v48 = vadd.f32 %v3940_v46, %v1129_v41 }
 0x102   : > { %v3878_v49 = vpop.f32.mrb[5].mxu0 }
 0x103   : > { %v3879_v50 = vadd.f32 %v3878_v49, %v3877_v47  ;;  %v3880_v51 = vpop.f32.mrb[6].mxu0  ;;  %v3941_v52 = vpop.f32.mrb[4].mxu1 }
 0x104   : > { %v3881_v53 = vpop.f32.mrb[7].mxu0  ;;  %v3942_v56 = vpop.f32.mrb[5].mxu1 }
 0x105   : > { %v1134_v54 = vadd.f32 %v3879_v50, %v4799_v30  ;;  %v3882_v55 = vadd.f32 %v3881_v53, %v3880_v51  ;;  %v3943_v57 = vadd.f32 %v3942_v56, %v3941_v52  ;;  %v3944_v58 = vpop.f32.mrb[6].mxu1 }
 0x106   : > { %v3945_v60 = vpop.f32.mrb[7].mxu1 }
 0x107   : > { %v1137_v59 = vadd.f32 %v3882_v55, %v4799_v30  ;;  %v4815_v61 = vadd.f32 %v3943_v57, %v1134_v54  ;;  %v3946_v62 = vadd.f32 %v3945_v60, %v3944_v58 }
 0x109   : > { %v3883_v63 = vpop.f32.mrb[8].mxu0  ;;  %v4817_v0 = vadd.f32 %v3946_v62, %v1137_v59 }
 0x10a   : > { %v3884_v1 = vpop.f32.mrb[9].mxu0 }
 0x10b   : > { %v3885_v2 = vadd.f32 %v3884_v1, %v3883_v63  ;;  %v3886_v3 = vpop.f32.mrb[10].mxu0  ;;  %v3947_v4 = vpop.f32.mrb[8].mxu1 }
 0x10c   : > { %v3887_v5 = vpop.f32.mrb[11].mxu0  ;;  %v3948_v8 = vpop.f32.mrb[9].mxu1 }
 0x10d   : > { %v1142_v6 = vadd.f32 %v3885_v2, %v4799_v30  ;;  %v3888_v7 = vadd.f32 %v3887_v5, %v3886_v3  ;;  %v3949_v9 = vadd.f32 %v3948_v8, %v3947_v4  ;;  %v3950_v10 = vpop.f32.mrb[10].mxu1 }
 0x10e   : > { %v3951_v12 = vpop.f32.mrb[11].mxu1 }
 0x10f   : > { %v1145_v11 = vadd.f32 %v3888_v7, %v4799_v30  ;;  %v4821_v13 = vadd.f32 %v3949_v9, %v1142_v6  ;;  %v3952_v14 = vadd.f32 %v3951_v12, %v3950_v10 }
 0x111   : > { %v3889_v15 = vpop.f32.mrb[12].mxu0  ;;  %v4823_v16 = vadd.f32 %v3952_v14, %v1145_v11 }
 0x112   : > { %v3890_v17 = vpop.f32.mrb[13].mxu0 }
 0x113   : > { %v3891_v18 = vadd.f32 %v3890_v17, %v3889_v15  ;;  %v3892_v19 = vpop.f32.mrb[14].mxu0  ;;  %v3953_v20 = vpop.f32.mrb[12].mxu1 }
 0x114   : > { %v3893_v21 = vpop.f32.mrb[15].mxu0  ;;  %v3954_v24 = vpop.f32.mrb[13].mxu1 }
 0x115   : > { %v1150_v22 = vadd.f32 %v3891_v18, %v4799_v30  ;;  %v3894_v23 = vadd.f32 %v3893_v21, %v3892_v19  ;;  %v3955_v25 = vadd.f32 %v3954_v24, %v3953_v20  ;;  %v3956_v26 = vpop.f32.mrb[14].mxu1 }
 0x116   : > { %v3957_v28 = vpop.f32.mrb[15].mxu1 }
 0x117   : > { %v1153_v27 = vadd.f32 %v3894_v23, %v4799_v30  ;;  %v4827_v29 = vadd.f32 %v3955_v25, %v1150_v22  ;;  %v3958_v31 = vadd.f32 %v3957_v28, %v3956_v26 }
 0x119   : > { %v3895_v32 = vpop.f32.mrb[16].mxu0  ;;  %v4829_v33 = vadd.f32 %v3958_v31, %v1153_v27 }
 0x11a   : > { %v3896_v34 = vpop.f32.mrb[17].mxu0 }
 0x11b   : > { %v3897_v35 = vadd.f32 %v3896_v34, %v3895_v32  ;;  %v3898_v36 = vpop.f32.mrb[18].mxu0  ;;  %v3959_v37 = vpop.f32.mrb[16].mxu1 }
 0x11c   : > { %v3899_v38 = vpop.f32.mrb[19].mxu0  ;;  %v3960_v41 = vpop.f32.mrb[17].mxu1 }
 0x11d   : > { %v1158_v39 = vadd.f32 %v3897_v35, %v4799_v30  ;;  %v3900_v40 = vadd.f32 %v3899_v38, %v3898_v36  ;;  %v3961_v42 = vadd.f32 %v3960_v41, %v3959_v37  ;;  %v3962_v43 = vpop.f32.mrb[18].mxu1 }
 0x11e   : > { %v3963_v46 = vpop.f32.mrb[19].mxu1 }
 0x11f   : > { %v1161_v44 = vadd.f32 %v3900_v40, %v4799_v30  ;;  %v4833_v47 = vadd.f32 %v3961_v42, %v1158_v39  ;;  %v3964_v49 = vadd.f32 %v3963_v46, %v3962_v43 }
 0x121   : > { %v3901_v50 = vpop.f32.mrb[20].mxu0  ;;  %v4835_v51 = vadd.f32 %v3964_v49, %v1161_v44 }
 0x122   : > { %v3902_v52 = vpop.f32.mrb[21].mxu0 }
 0x123   : > { %v3903_v53 = vadd.f32 %v3902_v52, %v3901_v50  ;;  %v3904_v54 = vpop.f32.mrb[22].mxu0  ;;  %v3965_v55 = vpop.f32.mrb[20].mxu1 }
 0x124   : > { %v3905_v56 = vpop.f32.mrb[23].mxu0  ;;  %v3966_v59 = vpop.f32.mrb[21].mxu1 }
 0x125   : > { %v1166_v57 = vadd.f32 %v3903_v53, %v4799_v30  ;;  %v3906_v58 = vadd.f32 %v3905_v56, %v3904_v54  ;;  %v3967_v60 = vadd.f32 %v3966_v59, %v3965_v55  ;;  %v3968_v62 = vpop.f32.mrb[22].mxu1 }
 0x126   : > { %v3969_v1 = vpop.f32.mrb[23].mxu1 }
 0x127   : > { %v1169_v63 = vadd.f32 %v3906_v58, %v4799_v30  ;;  %v4839_v2 = vadd.f32 %v3967_v60, %v1166_v57  ;;  %v3970_v3 = vadd.f32 %v3969_v1, %v3968_v62 }
 0x129   : > { %v3907_v4 = vpop.f32.mrb[24].mxu0  ;;  %v4841_v5 = vadd.f32 %v3970_v3, %v1169_v63 }
 0x12a   : > { %v3908_v6 = vpop.f32.mrb[25].mxu0 }
 0x12b   : > { %v3909_v7 = vadd.f32 %v3908_v6, %v3907_v4  ;;  %v3910_v8 = vpop.f32.mrb[26].mxu0  ;;  %v3971_v9 = vpop.f32.mrb[24].mxu1 }
 0x12c   : > { %v3911_v10 = vpop.f32.mrb[27].mxu0  ;;  %v3972_v14 = vpop.f32.mrb[25].mxu1 }
 0x12d   : > { %v1174_v11 = vadd.f32 %v3909_v7, %v4799_v30  ;;  %v3912_v12 = vadd.f32 %v3911_v10, %v3910_v8  ;;  %v3973_v15 = vadd.f32 %v3972_v14, %v3971_v9  ;;  %v3974_v17 = vpop.f32.mrb[26].mxu1 }
 0x12e   : > { %v3975_v19 = vpop.f32.mrb[27].mxu1 }
 0x12f   : > { %v1177_v18 = vadd.f32 %v3912_v12, %v4799_v30  ;;  %v4845_v20 = vadd.f32 %v3973_v15, %v1174_v11  ;;  %v3976_v21 = vadd.f32 %v3975_v19, %v3974_v17 }
 0x131   : > { %v3913_v22 = vpop.f32.mrb[28].mxu0  ;;  %v4847_v23 = vadd.f32 %v3976_v21, %v1177_v18 }
 0x132   : > { %v3914_v24 = vpop.f32.mrb[29].mxu0 }
 0x133   : > { %v3915_v25 = vadd.f32 %v3914_v24, %v3913_v22  ;;  %v3916_v26 = vpop.f32.mrb[30].mxu0  ;;  %v3977_v27 = vpop.f32.mrb[28].mxu1 }
 0x134   : > { %v3917_v28 = vpop.f32.mrb[31].mxu0  ;;  %v3978_v34 = vpop.f32.mrb[29].mxu1 }
 0x135   : > { %v1182_v31 = vadd.f32 %v3915_v25, %v4799_v30  ;;  %v3918_v32 = vadd.f32 %v3917_v28, %v3916_v26  ;;  %v3979_v35 = vadd.f32 %v3978_v34, %v3977_v27  ;;  %v3980_v36 = vpop.f32.mrb[30].mxu1 }
 0x136   : > { %v3981_v38 = vpop.f32.mrb[31].mxu1 }
 0x137   : > { %v1185_v37 = vadd.f32 %v3918_v32, %v4799_v30  ;;  %v4851_v39 = vadd.f32 %v3979_v35, %v1182_v31  ;;  %v3982_v40 = vadd.f32 %v3981_v38, %v3980_v36 }
 0x139   : > { %v3999_v41 = vpop.f32.mrb[32].mxu0  ;;  %v4853_v42 = vadd.f32 %v3982_v40, %v1185_v37 }
 0x13a   : > { %v4000_v43 = vpop.f32.mrb[33].mxu0 }
 0x13b   : > { %v4001_v44 = vadd.f32 %v4000_v43, %v3999_v41  ;;  %v4002_v46 = vpop.f32.mrb[34].mxu0  ;;  %v4113_v50 = vpop.f32.mrb[32].mxu1 }
 0x13c   : > { %v4003_v49 = vpop.f32.mrb[35].mxu0  ;;  %v1416_v54 = vpop.f32.mrb[33].mxu1 }
 0x13d   : > { %v4004_v52 = vadd.f32 %v4003_v49, %v4002_v46  ;;  %v1320_v53 = vadd.f32 %v4001_v44, %v4809_v45  ;;  %v4114_v55 = vpop.f32.mrb[34].mxu1 }
 0x13e   : > { %v1419_v57 = vpop.f32.mrb[35].mxu1 }
 0x13f   : > { %v1417_v56 = vadd.f32 %v1416_v54, %v1320_v53  ;;  %v1323_v30 = vadd.f32 %v4004_v52, %v4811_v48 }
 0x141   : > { %v1420_v58 = vadd.f32 %v1419_v57, %v1323_v30  ;;  %v4005_v59 = vpop.f32.mrb[36].mxu0  ;;  %v1479_v62 = vmax.f32 %v1417_v56, 0.0 }
 0x142   : > { %v4006_v60 = vpop.f32.mrb[37].mxu0 }
 0x143   : > { %v1480_v63 = vmax.f32 %v1420_v58, 0.0  ;;  %v4007_v1 = vadd.f32 %v4006_v60, %v4005_v59  ;;  %v4008_v3 = vpop.f32.mrb[38].mxu0  ;;  %v4117_v6 = vpop.f32.mrb[36].mxu1 }
 0x144   : > { %v4009_v4 = vpop.f32.mrb[39].mxu0  ;;  %v1432_v9 = vpop.f32.mrb[37].mxu1 }
 0x145   : > { %v1495_v7 = vpack.c.bf16 %v1480_v63, %v1479_v62  ;;  %v1328_v8 = vadd.f32 %v4007_v1, %v4815_v61  ;;  %v4010_v45 = vadd.f32 %v4009_v4, %v4008_v3  ;;  %v4118_v10 = vpop.f32.mrb[38].mxu1 }
 0x146   : > { %v1435_v12 = vpop.f32.mrb[39].mxu1 }
 0x147   : > { %v1425_v11 = vadd.f32 %v4113_v50, %v1328_v8  ;;  %v1331_v48 = vadd.f32 %v4010_v45, %v4817_v0  ;;  %4135 = vmatprep.mubr.msk.bf16.mxu1 %vm1542_vm1, %v1495_v7 }
 0x149   : > { %v1428_v14 = vadd.f32 %v4114_v55, %v1331_v48  ;;  %v4011_v15 = vpop.f32.mrb[40].mxu0  ;;  %v1481_v18 = vmax.f32 %v1425_v11, 0.0 }
 0x14a   : > { %v4012_v17 = vpop.f32.mrb[41].mxu0 }
 0x14b   : > { %v1482_v19 = vmax.f32 %v1428_v14, 0.0  ;;  %v4013_v21 = vadd.f32 %v4012_v17, %v4011_v15  ;;  %v4014_v22 = vpop.f32.mrb[42].mxu0  ;;  %v4121_v25 = vpop.f32.mrb[40].mxu1 }
 0x14c   : > { %v4015_v24 = vpop.f32.mrb[43].mxu0  ;;  %v1448_v28 = vpop.f32.mrb[41].mxu1 }
 0x14d   : > { %v1496_v26 = vpack.c.bf16 %v1482_v19, %v1481_v18  ;;  %v4016_v61 = vadd.f32 %v4015_v24, %v4014_v22  ;;  %v1336_v27 = vadd.f32 %v4013_v21, %v4821_v13  ;;  %v4122_v31 = vpop.f32.mrb[42].mxu1 }
 0x14e   : > { %v1451_v34 = vpop.f32.mrb[43].mxu1 }
 0x14f   : > { %v1433_v32 = vadd.f32 %v1432_v9, %v1336_v27  ;;  %4136 = vmatmul.mubr.msk.bf16.vlgmr.msra.gmra.mrb[48].mxu1 %vm1542_vm1, %v1496_v26  ;;  %v1339_v0 = vadd.f32 %v4016_v61, %v4823_v16 }
 0x151   : > { %v1436_v35 = vadd.f32 %v1435_v12, %v1339_v0  ;;  %v4017_v36 = vpop.f32.mrb[44].mxu0  ;;  %v1483_v38 = vmax.f32 %v1433_v32, 0.0 }
 0x152   : > { %v4018_v37 = vpop.f32.mrb[45].mxu0 }
 0x153   : > { %v1484_v40 = vmax.f32 %v1436_v35, 0.0  ;;  %v4019_v41 = vadd.f32 %v4018_v37, %v4017_v36  ;;  %v4020_v43 = vpop.f32.mrb[46].mxu0  ;;  %v4863_v46 = vpop.f32.mrb[44].mxu1 }
 0x154   : > { %v4021_v44 = vpop.f32.mrb[47].mxu0  ;;  %v1464_v52 = vpop.f32.mrb[45].mxu1 }
 0x155   : > { %v1497_v49 = vpack.c.bf16 %v1484_v40, %v1483_v38  ;;  %v1344_v13 = vadd.f32 %v4019_v41, %v4827_v29  ;;  %v4022_v50 = vadd.f32 %v4021_v44, %v4020_v43  ;;  %v4126_v53 = vpop.f32.mrb[46].mxu1 }
 0x156   : > { %v1467_v55 = vpop.f32.mrb[47].mxu1 }
 0x157   : > { %v1441_v54 = vadd.f32 %v4117_v6, %v1344_v13  ;;  %v1347_v16 = vadd.f32 %v4022_v50, %v4829_v33  ;;  %4139 = vmatprep.mubr.msk.bf16.mxu1 %vm1542_vm1, %v1497_v49 }
 0x159   : > { %v1444_v56 = vadd.f32 %v4118_v10, %v1347_v16  ;;  %v4023_v30 = vpop.f32.mrb[48].mxu0  ;;  %v1485_v58 = vmax.f32 %v1441_v54, 0.0  ;;  %v2078_v54 = vld [vmem:[%s4886_s17 + $0x28] sm:$0xff]  ;;  %v2079_v16 = vld [vmem:[%s4886_s17 + $0x30] sm:$0xff] }
 0x15a   : > { %v4024_v57 = vpop.f32.mrb[49].mxu0 }
 0x15b   : > { %v1486_v59 = vmax.f32 %v1444_v56, 0.0  ;;  %v4025_v60 = vadd.f32 %v4024_v57, %v4023_v30  ;;  %v4026_v62 = vpop.f32.mrb[50].mxu0  ;;  %v2081_v56 = vld [vmem:[%s4886_s17 + $0x40] sm:$0xff]  ;;  %v2082_v30 = vld [vmem:[%s4886_s17 + $0x48] sm:$0xff]  ;;  %v2083_v57 = vld [vmem:[%s4886_s17 + $0x50] sm:$0xff] }
 0x15c   : > { %v4027_v63 = vpop.f32.mrb[51].mxu0 }
 0x15d   : > { %v1498_v1 = vpack.c.bf16 %v1486_v59, %v1485_v58  ;;  %v4028_v3 = vadd.f32 %v4027_v63, %v4026_v62  ;;  %v1352_v29 = vadd.f32 %v4025_v60, %v4833_v47  ;;  %v2084_v58 = vld [vmem:[%s4886_s17 + $0x58] sm:$0xff]  ;;  %v2085_v59 = vld [vmem:[%s4886_s17 + $0x60] sm:$0xff]  ;;  %v2086_v60 = vld [vmem:[%s4886_s17 + $0x68] sm:$0xff] }
 0x15e   : > { %v2087_v62 = vld [vmem:[%s4886_s17 + $0x70] sm:$0xff]  ;;  %v2088_v63 = vld [vmem:[%s4886_s17 + $0x78] sm:$0xff] }
 0x15f   : > { %v1449_v4 = vadd.f32 %v1448_v28, %v1352_v29  ;;  %4140 = vmatmul.mubr.msk.bf16.gmra.mrb[52].mxu1 %vm1542_vm1, %v1498_v1  ;;  %v1355_v33 = vadd.f32 %v4028_v3, %v4835_v51  ;;  %v3749_v1 = vld [vmem:[%s5945_s5] ss:$0 sm:$0xff] }
 0x161   : > { %v1452_v6 = vadd.f32 %v1451_v34, %v1355_v33  ;;  %v4029_v7 = vpop.f32.mrb[52].mxu0  ;;  %v1487_v45 = vmax.f32 %v1449_v4, 0.0 }
 0x162   : > { %v4030_v8 = vpop.f32.mrb[53].mxu0 }
 0x163   : > { %v1488_v9 = vmax.f32 %v1452_v6, 0.0  ;;  %v4031_v10 = vadd.f32 %v4030_v8, %v4029_v7  ;;  %v4032_v11 = vpop.f32.mrb[54].mxu0 }
 0x164   : > { %v4033_v48 = vpop.f32.mrb[55].mxu0 }
 0x165   : > { %v1499_v12 = vpack.c.bf16 %v1488_v9, %v1487_v45  ;;  %v1360_v14 = vadd.f32 %v4031_v10, %v4839_v2  ;;  %v4034_v15 = vadd.f32 %v4033_v48, %v4032_v11 }
 0x167   : > { %v1457_v17 = vadd.f32 %v4121_v25, %v1360_v14  ;;  %v1363_v47 = vadd.f32 %v4034_v15, %v4841_v5  ;;  %4143 = vmatprep.mubr.msk.bf16.mxu1 %vm1542_vm1, %v1499_v12 }
 0x169   : > { %v1460_v18 = vadd.f32 %v4122_v31, %v1363_v47  ;;  %v4035_v19 = vpop.f32.mrb[56].mxu0  ;;  %v1489_v21 = vmax.f32 %v1457_v17, 0.0 }
 0x16a   : > { %v4036_v51 = vpop.f32.mrb[57].mxu0 }
 0x16b   : > { %v1490_v22 = vmax.f32 %v1460_v18, 0.0  ;;  %v4037_v24 = vadd.f32 %v4036_v51, %v4035_v19  ;;  %v4038_v26 = vpop.f32.mrb[58].mxu0 }
 0x16c   : > { %v4039_v61 = vpop.f32.mrb[59].mxu0 }
 0x16d   : > { %v1500_v27 = vpack.c.bf16 %v1490_v22, %v1489_v21  ;;  %v4040_v28 = vadd.f32 %v4039_v61, %v4038_v26  ;;  %v1368_v32 = vadd.f32 %v4037_v24, %v4845_v20 }
 0x16f   : > { %v1465_v0 = vadd.f32 %v1464_v52, %v1368_v32  ;;  %4144 = vmatmul.mubr.msk.bf16.gmra.mrb[56].mxu1 %vm1542_vm1, %v1500_v27  ;;  %v1371_v2 = vadd.f32 %v4040_v28, %v4847_v23  ;;  %v2074_v52 = vld [vmem:[%s4886_s17 + $0x8] sm:$0xff] }
 0x171   : > { %v1468_v5 = vadd.f32 %v1467_v55, %v1371_v2  ;;  %v4041_v25 = vpop.f32.mrb[60].mxu0  ;;  %v1491_v31 = vmax.f32 %v1465_v0, 0.0  ;;  %v2080_v55 = vld [vmem:[%s4886_s17 + $0x38] sm:$0xff] }
 0x172   : > { %v4042_v34 = vpop.f32.mrb[61].mxu0 }
 0x173   : > { %v1492_v35 = vmax.f32 %v1468_v5, 0.0  ;;  %v4043_v36 = vadd.f32 %v4042_v34, %v4041_v25  ;;  %v4044_v37 = vpop.f32.mrb[62].mxu0 }
 0x174   : > { %v4045_v38 = vpop.f32.mrb[63].mxu0 }
 0x175   : > { %v1501_v40 = vpack.c.bf16 %v1492_v35, %v1491_v31  ;;  %v1376_v41 = vadd.f32 %v4043_v36, %v4851_v39  ;;  %v4046_v43 = vadd.f32 %v4045_v38, %v4044_v37  ;;  %v2075_v39 = vld [vmem:[%s4886_s17 + $0x10] sm:$0xff] }
 0x176   : > { %2109 = vrot.lane.b32.xlu1 %v2075_v39, %s4417_s18 }
 0x177   : > { %v1473_v20 = vadd.f32 %v4863_v46, %v1376_v41  ;;  %v1379_v44 = vadd.f32 %v4046_v43, %v4853_v42  ;;  %4147 = vmatprep.mubr.msk.bf16.mxu1 %vm1542_vm1, %v1501_v40  ;;  %v2073_v42 = vld [vmem:[%s4886_s17] sm:$0xff]  ;;  %v2076_v46 = vld [vmem:[%s4886_s17 + $0x18] sm:$0xff] }
 0x178   : > { %2105 = vrot.lane.b32.xlu0 %v2073_v42, %s4417_s18 }
 0x179   : > { %v1476_v23 = vadd.f32 %v4126_v53, %v1379_v44  ;;  %v1493_v49 = vmax.f32 %v1473_v20, 0.0  ;;  %v2077_v53 = vld [vmem:[%s4886_s17 + $0x20] sm:$0xff] }
 0x17a   : > { %2111 = vrot.lane.b32.xlu1 %v2076_v46, %s4417_s18 }
 0x17b   : > { %v1494_v13 = vmax.f32 %v1476_v23, 0.0 }
 0x17c   : > { %2107 = vrot.lane.b32.xlu0 %v2074_v52, %s4417_s18 }
 0x17d   : > { %v1502_v50 = vpack.c.bf16 %v1494_v13, %v1493_v49 }
 0x17e   : > { %2115 = vrot.lane.b32.xlu1 %v2078_v54, %s4417_s18 }
 0x17f   : > { %4148 = vmatmul.mubr.msk.bf16.gmra.mrb[60].mxu1 %vm1542_vm1, %v1502_v50 }
 0x180   : > { %2113 = vrot.lane.b32.xlu0 %v2077_v53, %s4417_s18 }
 0x182   : > { %2119 = vrot.lane.b32.xlu1 %v2080_v55, %s4417_s18 }
 0x184   : > { %2117 = vrot.lane.b32.xlu0 %v2079_v16, %s4417_s18 }
 0x186   : > { %2123 = vrot.lane.b32.xlu1 %v2082_v30, %s4417_s18  ;;  %v4918_v30 = vld [vmem:[%s5947_s7] ss:$0 sm:$0xff] }
 0x188   : > { %2121 = vrot.lane.b32.xlu0 %v2081_v56, %s4417_s18 }
 0x18a   : > { %2127 = vrot.lane.b32.xlu1 %v2084_v58, %s4417_s18 }
 0x18c   : > { %2125 = vrot.lane.b32.xlu0 %v2083_v57, %s4417_s18 }
 0x18e   : > { %2131 = vrot.lane.b32.xlu1 %v2086_v60, %s4417_s18 }
 0x190   : > { %2129 = vrot.lane.b32.xlu0 %v2085_v59, %s4417_s18 }
 0x192   : > { %2135 = vrot.lane.b32.xlu1 %v2088_v63, %s4417_s18 }
 0x194   : > { %2133 = vrot.lane.b32.xlu0 %v2087_v62, %s4417_s18  ;;  %s5557_s18 = scalar_lea.vmem %s5954_s14, %s4234_s30 }
 0x222   : > { %v4137_v3 = vpop.f32.mrb[48].mxu1 }
 0x223   : > { %v1610_v29 = vadd.f32 %v4137_v3, %v3749_v1  ;;  %v1601_v4 = vpop.f32.mrb[49].mxu1 }
 0x224   : > { %v1602_v33 = vadd.f32 %v3749_v1, %v1601_v4  ;;  %v4138_v6 = vpop.f32.mrb[50].mxu1 }
 0x225   : > { %v1613_v7 = vadd.f32 %v4138_v6, %v3749_v1  ;;  %v1604_v8 = vpop.f32.mrb[51].mxu1  ;;  %v1666_v9 = vmax.f32 %v1610_v29, 0.0 }
 0x226   : > { %v1605_v45 = vadd.f32 %v3749_v1, %v1604_v8  ;;  %v1664_v11 = vmax.f32 %v1602_v33, 0.0 }
 0x227   : > { %v1667_v10 = vmax.f32 %v1613_v7, 0.0  ;;  %v2257_v7 = vld [vmem:[%s5948_s8] sm:$0xf] }
 0x228   : > { %v1665_v48 = vmax.f32 %v1605_v45, 0.0  ;;  %4233 = vmatprep.subr.msk.bf16.mxu1 %vm2290_vm3, %v2257_v7 }
 0x229   : > { %v1681_v12 = vpack.c.bf16 %v1667_v10, %v1666_v9 }
 0x22a   : > { %v1680_v14 = vpack.c.bf16 %v1665_v48, %v1664_v11  ;;  %v2292_v11 = vsel %vm2290_vm3, %v2257_v7, 0 }
 0x22b   : > { %4172 = vmatpush3.bf16.msra.mxu1 %v2292_v11 }
 0x22c   : > { %4155 = vmatprep.mubr.msk.bf16.mxu0 %vm1711_vm2, %v1680_v14 }
 0x22d   : > { %4156 = vmatmul.mubr.msk.bf16.vlgmr.msra.gmra.mrb[64].mxu0 %vm1711_vm2, %v1681_v12 }
 0x232   : > { %v4141_v15 = vpop.f32.mrb[52].mxu1 }
 0x233   : > { %v1626_v17 = vadd.f32 %v4141_v15, %v3749_v1  ;;  %v1617_v47 = vpop.f32.mrb[53].mxu1 }
 0x234   : > { %v1618_v18 = vadd.f32 %v3749_v1, %v1617_v47  ;;  %v4142_v19 = vpop.f32.mrb[54].mxu1 }
 0x235   : > { %v1629_v51 = vadd.f32 %v4142_v19, %v3749_v1  ;;  %v1620_v21 = vpop.f32.mrb[55].mxu1  ;;  %v1670_v24 = vmax.f32 %v1626_v17, 0.0 }
 0x236   : > { %v1621_v22 = vadd.f32 %v3749_v1, %v1620_v21  ;;  %v1668_v61 = vmax.f32 %v1618_v18, 0.0 }
 0x237   : > { %v1671_v26 = vmax.f32 %v1629_v51, 0.0 }
 0x238   : > { %v1669_v27 = vmax.f32 %v1621_v22, 0.0 }
 0x239   : > { %v1683_v28 = vpack.c.bf16 %v1671_v26, %v1670_v24 }
 0x23a   : > { %v1682_v32 = vpack.c.bf16 %v1669_v27, %v1668_v61 }
 0x23c   : > { %4159 = vmatprep.mubr.msk.bf16.mxu0 %vm1711_vm2, %v1682_v32 }
 0x23d   : > { %4160 = vmatmul.mubr.msk.bf16.gmra.mrb[68].mxu0 %vm1711_vm2, %v1683_v28 }
 0x242   : > { %v4145_v0 = vpop.f32.mrb[56].mxu1 }
 0x243   : > { %v1642_v2 = vadd.f32 %v4145_v0, %v3749_v1  ;;  %v1633_v5 = vpop.f32.mrb[57].mxu1 }
 0x244   : > { %v1634_v25 = vadd.f32 %v3749_v1, %v1633_v5  ;;  %v4146_v34 = vpop.f32.mrb[58].mxu1 }
 0x245   : > { %v1645_v31 = vadd.f32 %v4146_v34, %v3749_v1  ;;  %v1636_v35 = vpop.f32.mrb[59].mxu1  ;;  %v1674_v37 = vmax.f32 %v1642_v2, 0.0 }
 0x246   : > { %v1637_v36 = vadd.f32 %v3749_v1, %v1636_v35  ;;  %v1672_v40 = vmax.f32 %v1634_v25, 0.0 }
 0x247   : > { %v1675_v38 = vmax.f32 %v1645_v31, 0.0 }
 0x248   : > { %v1673_v41 = vmax.f32 %v1637_v36, 0.0 }
 0x249   : > { %v1685_v43 = vpack.c.bf16 %v1675_v38, %v1674_v37 }
 0x24a   : > { %v1684_v20 = vpack.c.bf16 %v1673_v41, %v1672_v40 }
 0x24c   : > { %4163 = vmatprep.mubr.msk.bf16.mxu0 %vm1711_vm2, %v1684_v20 }
 0x24d   : > { %4164 = vmatmul.mubr.msk.bf16.gmra.mrb[72].mxu0 %vm1711_vm2, %v1685_v43 }
 0x252   : > { %v4149_v44 = vpop.f32.mrb[60].mxu1 }
 0x253   : > { %v1658_v23 = vadd.f32 %v4149_v44, %v3749_v1  ;;  %v1649_v49 = vpop.f32.mrb[61].mxu1 }
 0x254   : > { %v1650_v13 = vadd.f32 %v3749_v1, %v1649_v49  ;;  %v4150_v50 = vpop.f32.mrb[62].mxu1 }
 0x255   : > { %v1661_v39 = vadd.f32 %v4150_v50, %v3749_v1  ;;  %v1652_v42 = vpop.f32.mrb[63].mxu1  ;;  %v1678_v52 = vmax.f32 %v1658_v23, 0.0 }
 0x256   : > { %v1653_v46 = vadd.f32 %v3749_v1, %v1652_v42  ;;  %v1676_v54 = vmax.f32 %v1650_v13, 0.0 }
 0x257   : > { %v1679_v53 = vmax.f32 %v1661_v39, 0.0 }
 0x258   : > { %v1677_v16 = vmax.f32 %v1653_v46, 0.0 }
 0x259   : > { %v1687_v55 = vpack.c.bf16 %v1679_v53, %v1678_v52 }
 0x25a   : > { %v1686_v56 = vpack.c.bf16 %v1677_v16, %v1676_v54 }
 0x25c   : > { %4167 = vmatprep.mubr.msk.bf16.mxu0 %vm1711_vm2, %v1686_v56 }
 0x25d   : > { %4168 = vmatmul.mubr.msk.bf16.gmra.mrb[76].mxu0 %vm1711_vm2, %v1687_v55 }
 0x300   : > { %v4157_v57 = vpop.f32.mrb[64].mxu0 }
 0x301   : > { %v4921_v58 = vadd.f32 %v4157_v57, %v4918_v30  ;;  %v1770_v59 = vpop.f32.mrb[65].mxu0 }
 0x302   : > { %v4924_v60 = vadd.f32 %v4918_v30, %v1770_v59  ;;  %v4158_v62 = vpop.f32.mrb[66].mxu0 }
 0x303   : > { %v1851_v63 = vand.u32 2147483647, %v4921_v58  ;;  %v4928_v1 = vadd.f32 %v4158_v62, %v4918_v30  ;;  %v1773_v3 = vpop.f32.mrb[67].mxu0  ;;  %v1835_v39 = vmax.f32 %v4921_v58, 0.0 }
 0x304   : > { %v1849_v29 = vand.u32 2147483647, %v4924_v60  ;;  %v4932_v4 = vadd.f32 %v4918_v30, %v1773_v3  ;;  %v1833_v42 = vmax.f32 %v4924_v60, 0.0 }
 0x305   : > { %v1867_v33 = vsub.f32 0.0, %v1851_v63  ;;  %v1852_v6 = vand.u32 2147483647, %v4928_v1  ;;  %v1836_v53 = vmax.f32 %v4928_v1, 0.0 }
 0x306   : > { %v1865_v8 = vsub.f32 0.0, %v1849_v29  ;;  %v1850_v45 = vand.u32 2147483647, %v4932_v4  ;;  %v1834_v54 = vmax.f32 %v4932_v4, 0.0 }
 0x307   : > { %v1885_v9 = vmul.f32 1.442695, %v1867_v33  ;;  %v1868_v10 = vsub.f32 0.0, %v1852_v6 }
 0x308   : > { %v1881_v48 = vmul.f32 1.442695, %v1865_v8  ;;  %v1866_v12 = vsub.f32 0.0, %v1850_v45 }
 0x309   : > { %4345 = vpow2.f32 %v1885_v9  ;;  %v1887_v14 = vmul.f32 1.442695, %v1868_v10 }
 0x30a   : > { %4347 = vpow2.f32 %v1881_v48  ;;  %v1883_v15 = vmul.f32 1.442695, %v1866_v12 }
 0x30b   : > { %4349 = vpow2.f32 %v1887_v14 }
 0x30c   : > { %4351 = vpow2.f32 %v1883_v15 }
 0x310   : > { %v4161_v17 = vpop.f32.mrb[68].mxu0 }
 0x311   : > { %v4940_v47 = vadd.f32 %v4161_v17, %v4918_v30  ;;  %v1786_v18 = vpop.f32.mrb[69].mxu0 }
 0x312   : > { %v4943_v19 = vadd.f32 %v4918_v30, %v1786_v18  ;;  %v4162_v51 = vpop.f32.mrb[70].mxu0 }
 0x313   : > { %v4346_v21 = vpop.eup %4345  ;;  %v4946_v22 = vadd.f32 %v4162_v51, %v4918_v30  ;;  %v1789_v24 = vpop.f32.mrb[71].mxu0  ;;  %v1855_v61 = vand.u32 2147483647, %v4940_v47  ;;  %v1839_v16 = vmax.f32 %v4940_v47, 0.0 }
 0x314   : > { %v4348_v26 = vpop.eup %4347  ;;  %v1853_v27 = vand.u32 2147483647, %v4943_v19  ;;  %v4951_v28 = vadd.f32 %v4918_v30, %v1789_v24  ;;  %v1931_v32 = vadd.f32 1.0, %v4346_v21  ;;  %v1934_v38 = vmul.f32 -0.5, %v4346_v21  ;;  %v2106_v24 = vpop.permute.xlu0 %2105 }
 0x315   : > { %v1856_v0 = vand.u32 2147483647, %v4946_v22  ;;  %v1913_v2 = vadd.f32 1.0, %v4348_v26  ;;  %v4954_v5 = vpop.eup %4349  ;;  %v1871_v35 = vsub.f32 0.0, %v1855_v61  ;;  %v1916_v43 = vmul.f32 -0.5, %v4348_v26 }
 0x316   : > { %v1869_v25 = vsub.f32 0.0, %v1853_v27  ;;  %v1854_v34 = vand.u32 2147483647, %v4951_v28  ;;  %4353 = vlog2.f32 %v1931_v32  ;;  %v4957_v31 = vpop.eup %4351  ;;  %v1940_v41 = vadd.f32 1.0, %v4954_v5 }
 0x317   : > { %4355 = vlog2.f32 %v1913_v2  ;;  %v1872_v40 = vsub.f32 0.0, %v1856_v0  ;;  %v1922_v44 = vadd.f32 1.0, %v4957_v31  ;;  %v1893_v23 = vmul.f32 1.442695, %v1871_v35 }
 0x318   : > { %v1889_v36 = vmul.f32 1.442695, %v1869_v25  ;;  %v1870_v37 = vsub.f32 0.0, %v1854_v34  ;;  %v1935_v49 = vadd.f32 1.0, %v1934_v38  ;;  %v1937_v13 = vand.u32 2147483647, %v4346_v21  ;;  %v2108_v59 = vpop.permute.xlu0 %2107 }
 0x319   : > { %v1895_v50 = vmul.f32 1.442695, %v1872_v40  ;;  %v1917_v46 = vadd.f32 1.0, %v1916_v43  ;;  %v1919_v52 = vand.u32 2147483647, %v4348_v26  ;;  %v1943_v62 = vmul.f32 -0.5, %v4954_v5  ;;  %v2110_v43 = vpop.permute.xlu1 %2109 }
 0x31a   : > { %4357 = vpow2.f32 %v1889_v36  ;;  %v1891_v20 = vmul.f32 1.442695, %v1870_v37  ;;  %v1936_v57 = vmul.f32 %v4346_v21, %v1935_v49  ;;  %vm4966_vm4 = vcmp.lt.f32.partialorder %v1937_v13, 0.0004427343 }
 0x31b   : > { %4359 = vlog2.f32 %v1940_v41  ;;  %v1925_v6 = vmul.f32 -0.5, %v4957_v31  ;;  %v1918_v9 = vmul.f32 %v4348_v26, %v1917_v46  ;;  %vm1920_vm5 = vcmp.lt.f32.partialorder %v1919_v52, 0.0004427343 }
 0x31c   : > { %4361 = vlog2.f32 %v1922_v44  ;;  %v1946_v14 = vand.u32 2147483647, %v4954_v5  ;;  %v1944_v21 = vadd.f32 1.0, %v1943_v62  ;;  %v1928_v27 = vand.u32 2147483647, %v4957_v31 }
 0x31d   : > { %4363 = vpow2.f32 %v1891_v20  ;;  %v1926_v61 = vadd.f32 1.0, %v1925_v6 }
 0x31e   : > { %4365 = vpow2.f32 %v1893_v23  ;;  %v1945_v23 = vmul.f32 %v4954_v5, %v1944_v21  ;;  %vm5004_vm6 = vcmp.lt.f32.partialorder %v1946_v14, 0.0004427343  ;;  %vm1929_vm7 = vcmp.lt.f32.partialorder %v1928_v27, 0.0004427343 }
 0x31f   : > { %4367 = vpow2.f32 %v1895_v50 }
 0x320   : > { %v4354_v55 = vpop.eup %4353  ;;  %v4165_v56 = vpop.f32.mrb[72].mxu0 }
 0x321   : > { %v4356_v63 = vpop.eup %4355  ;;  %v4972_v3 = vadd.f32 %v4165_v56, %v4918_v30  ;;  %v1802_v29 = vpop.f32.mrb[73].mxu0  ;;  %v1933_v33 = vmul.f32 0.6931472, %v4354_v55 }
 0x322   : > { %v4976_v7 = vadd.f32 %v4918_v30, %v1802_v29  ;;  %v4166_v8 = vpop.f32.mrb[74].mxu0  ;;  %v1915_v45 = vmul.f32 0.6931472, %v4356_v63 }
 0x323   : > { %v1859_v10 = vand.u32 2147483647, %v4972_v3  ;;  %v4980_v11 = vadd.f32 %v4166_v8, %v4918_v30  ;;  %v1939_v48 = vsel %vm4966_vm4, %v1936_v57, %v1933_v33  ;;  %v1805_v12 = vpop.f32.mrb[75].mxu0  ;;  %v1837_v8 = vmax.f32 %v4943_v19, 0.0 }
 0x324   : > { %v4985_v15 = vpop.eup %4357  ;;  %v1857_v17 = vand.u32 2147483647, %v4976_v7  ;;  %v4989_v18 = vadd.f32 %v4918_v30, %v1805_v12  ;;  %v1921_v51 = vsel %vm1920_vm5, %v1918_v9, %v1915_v45  ;;  %v4995_v25 = vadd.f32 %v1939_v48, %v1835_v39 }
 0x325   : > { %v4991_v26 = vadd.f32 %v1921_v51, %v1833_v42  ;;  %v1949_v32 = vadd.f32 1.0, %v4985_v15  ;;  %v1875_v0 = vsub.f32 0.0, %v1859_v10  ;;  %v4360_v35 = vpop.eup %4359  ;;  %v1860_v36 = vand.u32 2147483647, %v4980_v11  ;;  %v2112_v10 = vpop.permute.xlu1 %2111 }
 0x326   : > { %v1873_v2 = vsub.f32 0.0, %v1857_v17  ;;  %v1858_v34 = vand.u32 2147483647, %v4989_v18  ;;  %v1952_v38 = vmul.f32 -0.5, %v4985_v15  ;;  %v4362_v40 = vpop.eup %4361  ;;  %v1942_v44 = vmul.f32 0.6931472, %v4360_v35 }
 0x327   : > { %v2153_v37 = vmul.f32 %v2106_v24, %v4991_v26  ;;  %4369 = vlog2.f32 %v1949_v32  ;;  %v5002_v49 = vpop.eup %4363  ;;  %v1924_v50 = vmul.f32 0.6931472, %v4362_v40  ;;  %v1927_v39 = vmul.f32 %v4957_v31, %v1926_v61 }
 0x328   : > { %v1897_v41 = vmul.f32 1.442695, %v1873_v2  ;;  %v1874_v20 = vsub.f32 0.0, %v1858_v34  ;;  %v5010_v42 = vpop.eup %4365  ;;  %v2155_v46 = vmul.f32 %v2110_v43, %v4995_v25  ;;  %v1948_v5 = vsel %vm5004_vm6, %v1945_v23, %v1942_v44 }
 0x329   : > { %2185 = vrot.lane.b32.xlu0 %v2153_v37, %s4418_s25  ;;  %v5015_v55 = vpop.eup %4367  ;;  %v1901_v56 = vmul.f32 1.442695, %v1875_v0  ;;  %v1876_v57 = vsub.f32 0.0, %v1860_v36  ;;  %v1930_v62 = vsel %vm1929_vm7, %v1927_v39, %v1924_v50  ;;  %v1953_v31 = vadd.f32 1.0, %v1952_v38 }
 0x32a   : > { %4371 = vpow2.f32 %v1897_v41  ;;  %v1899_v52 = vmul.f32 1.442695, %v1874_v20  ;;  %v5019_v63 = vadd.f32 %v1930_v62, %v1834_v54  ;;  %v1955_v29 = vand.u32 2147483647, %v4985_v15 }
 0x32b   : > { %v1958_v33 = vadd.f32 1.0, %v5002_v49  ;;  %v5025_v6 = vadd.f32 %v1948_v5, %v1836_v53  ;;  %v1961_v45 = vmul.f32 -0.5, %v5002_v49  ;;  %v1967_v9 = vadd.f32 1.0, %v5010_v42 }
 0x32c   : > { %4373 = vpow2.f32 %v1899_v52  ;;  %v2154_v54 = vmul.f32 %v2108_v59, %v5019_v63  ;;  %v1838_v48 = vmax.f32 %v4951_v28, 0.0  ;;  %v1840_v12 = vmax.f32 %v4946_v22, 0.0  ;;  %v2114_v59 = vpop.permute.xlu0 %2113 }
 0x32d   : > { %2189 = vrot.lane.b32.xlu0 %v2155_v46, %s4418_s25  ;;  %4375 = vlog2.f32 %v1958_v33  ;;  %v1903_v14 = vmul.f32 1.442695, %v1876_v57  ;;  %v1964_v53 = vand.u32 2147483647, %v5002_v49  ;;  %v1976_v17 = vadd.f32 1.0, %v5015_v55 }
 0x32e   : > { %4377 = vlog2.f32 %v1967_v9  ;;  %2187 = vrot.lane.b32.xlu1 %v2154_v54, %s4418_s25  ;;  %v1954_v21 = vmul.f32 %v4985_v15, %v1953_v31  ;;  %vm5038_vm8 = vcmp.lt.f32.partialorder %v1955_v29, 0.0004427343  ;;  %v1970_v61 = vmul.f32 -0.5, %v5010_v42 }
 0x32f   : > { %4379 = vpow2.f32 %v1901_v56  ;;  %v2156_v32 = vmul.f32 %v2112_v10, %v5025_v6  ;;  %v1962_v34 = vadd.f32 1.0, %v1961_v45  ;;  %v1973_v37 = vand.u32 2147483647, %v5010_v42 }
 0x330   : > { %v4169_v51 = vpop.f32.mrb[76].mxu0  ;;  %4381 = vlog2.f32 %v1976_v17  ;;  %v1979_v38 = vmul.f32 -0.5, %v5015_v55  ;;  %vm5056_vm9 = vcmp.lt.f32.partialorder %v1964_v53, 0.0004427343  ;;  %v1971_v39 = vadd.f32 1.0, %v1970_v61 }
 0x331   : > { %v4370_v27 = vpop.eup %4369  ;;  %v5045_v0 = vadd.f32 %v4169_v51, %v4918_v30  ;;  %v1818_v2 = vpop.f32.mrb[77].mxu0  ;;  %4383 = vpow2.f32 %v1903_v14  ;;  %v1963_v31 = vmul.f32 %v5002_v49, %v1962_v34  ;;  %v1982_v14 = vand.u32 2147483647, %v5015_v55 }
 0x332   : > { %v1951_v35 = vmul.f32 0.6931472, %v4370_v27  ;;  %v5048_v36 = vadd.f32 %v4918_v30, %v1818_v2  ;;  %v4170_v15 = vpop.f32.mrb[78].mxu0  ;;  %2191 = vrot.lane.b32.xlu1 %v2156_v32, %s4418_s25  ;;  %v1980_v33 = vadd.f32 1.0, %v1979_v38  ;;  %v1972_v2 = vmul.f32 %v5010_v42, %v1971_v39 }
 0x333   : > { %v1863_v40 = vand.u32 2147483647, %v5045_v0  ;;  %v5054_v41 = vadd.f32 %v4170_v15, %v4918_v30  ;;  %v1821_v20 = vpop.f32.mrb[79].mxu0  ;;  %vm1974_vm10 = vcmp.lt.f32.partialorder %v1973_v37, 0.0004427343  ;;  %vm2265_vm7 = vcmask 64512  }
 0x334   : > { %v5060_v44 = vpop.eup %4371  ;;  %v1957_v23 = vsel %vm5038_vm8, %v1954_v21, %v1951_v35  ;;  %v1861_v13 = vand.u32 2147483647, %v5048_v36  ;;  %v5067_v50 = vadd.f32 %v4918_v30, %v1821_v20  ;;  %v2116_v21 = vpop.permute.xlu1 %2115  ;;  %v1981_v15 = vmul.f32 %v5015_v55, %v1980_v33 }
 0x335   : > { %v1879_v46 = vsub.f32 0.0, %v1863_v40  ;;  %v5069_v52 = vadd.f32 %v1957_v23, %v1837_v8  ;;  %v1864_v5 = vand.u32 2147483647, %v5054_v41  ;;  %v1985_v56 = vadd.f32 1.0, %v5060_v44  ;;  %v2118_v40 = vpop.permute.xlu0 %2117 }
 0x336   : > { %v5073_v57 = vpop.eup %4373  ;;  %v1877_v62 = vsub.f32 0.0, %v1861_v13  ;;  %v1862_v29 = vand.u32 2147483647, %v5067_v50  ;;  %v1988_v53 = vmul.f32 -0.5, %v5060_v44  ;;  %vm1983_vm11 = vcmp.lt.f32.partialorder %v1982_v14, 0.0004427343 }
 0x337   : > { %v1909_v45 = vmul.f32 1.442695, %v1879_v46  ;;  %v2157_v30 = vmul.f32 %v2114_v59, %v5069_v52  ;;  %v1880_v9 = vsub.f32 0.0, %v1864_v5  ;;  %4385 = vlog2.f32 %v1985_v56  ;;  %v4376_v8 = vpop.eup %4375 }
 0x338   : > { %v1905_v10 = vmul.f32 1.442695, %v1877_v62  ;;  %v1878_v54 = vsub.f32 0.0, %v1862_v29  ;;  %v4378_v17 = vpop.eup %4377  ;;  %v1960_v49 = vmul.f32 0.6931472, %v4376_v8  ;;  %v1994_v24 = vadd.f32 1.0, %v5073_v57  ;;  %v2120_v5 = vpop.permute.xlu1 %2119 }
 0x339   : > { %4387 = vpow2.f32 %v1909_v45  ;;  %v1911_v51 = vmul.f32 1.442695, %v1880_v9  ;;  %2193 = vrot.lane.b32.xlu0 %v2157_v30, %s4418_s25  ;;  %v5082_v61 = vpop.eup %4379  ;;  %v1969_v32 = vmul.f32 0.6931472, %v4378_v17  ;;  %v1989_v43 = vadd.f32 1.0, %v1988_v53 }
 0x33a   : > { %4389 = vpow2.f32 %v1905_v10  ;;  %v1907_v27 = vmul.f32 1.442695, %v1878_v54  ;;  %v4382_v34 = vpop.eup %4381  ;;  %v1966_v35 = vsel %vm5056_vm9, %v1963_v31, %v1960_v49  ;;  %v1997_v39 = vmul.f32 -0.5, %v5073_v57  ;;  %v2122_v49 = vpop.permute.xlu0 %2121 }
 0x33b   : > { %4391 = vpow2.f32 %v1911_v51  ;;  %v5090_v38 = vadd.f32 %v1966_v35, %v1838_v48  ;;  %v1975_v20 = vsel %vm1974_vm10, %v1972_v2, %v1969_v32  ;;  %v1978_v23 = vmul.f32 0.6931472, %v4382_v34  ;;  %v5092_v13 = vpop.eup %4383 }
 0x33c   : > { %4393 = vpow2.f32 %v1907_v27  ;;  %v5096_v42 = vadd.f32 %v1975_v20, %v1839_v16  ;;  %v2003_v48 = vadd.f32 1.0, %v5082_v61  ;;  %v1991_v16 = vand.u32 2147483647, %v5060_v44 }
 0x33d   : > { %4395 = vlog2.f32 %v1994_v24  ;;  %v2158_v37 = vmul.f32 %v2116_v21, %v5090_v38  ;;  %v1984_v55 = vsel %vm1983_vm11, %v1981_v15, %v1978_v23  ;;  %v2012_v59 = vadd.f32 1.0, %v5092_v13 }
 0x33e   : > { %v2159_v46 = vmul.f32 %v2118_v40, %v5096_v42  ;;  %v5104_v56 = vadd.f32 %v1984_v55, %v1840_v12  ;;  %4397 = vlog2.f32 %v2003_v48  ;;  %v1990_v31 = vmul.f32 %v5060_v44, %v1989_v43  ;;  %v2124_v43 = vpop.permute.xlu1 %2123 }
 0x33f   : > { %2195 = vrot.lane.b32.xlu1 %v2158_v37, %s4418_s25  ;;  %v1998_v45 = vadd.f32 1.0, %v1997_v39  ;;  %4399 = vlog2.f32 %v2012_v59  ;;  %v1841_v12 = vmax.f32 %v4976_v7, 0.0  ;;  %vm1992_vm12 = vcmp.lt.f32.partialorder %v1991_v16, 0.0004427343 }
 0x340   : > { %2197 = vrot.lane.b32.xlu0 %v2159_v46, %s4418_s25  ;;  %v2160_v29 = vmul.f32 %v2120_v5, %v5104_v56  ;;  %v2006_v9 = vmul.f32 -0.5, %v5082_v61  ;;  %v2015_v54 = vmul.f32 -0.5, %v5092_v13  ;;  %v2000_v17 = vand.u32 2147483647, %v5073_v57 }
 0x341   : > { %v4386_v62 = vpop.eup %4385  ;;  %v1999_v24 = vmul.f32 %v5073_v57, %v1998_v45  ;;  %v2009_v35 = vand.u32 2147483647, %v5082_v61  ;;  %v1842_v37 = vmax.f32 %v4989_v18, 0.0  ;;  %v2018_v39 = vand.u32 2147483647, %v5092_v13 }
 0x342   : > { %v1987_v33 = vmul.f32 0.6931472, %v4386_v62  ;;  %v2007_v34 = vadd.f32 1.0, %v2006_v9  ;;  %v2016_v40 = vadd.f32 1.0, %v2015_v54  ;;  %vm2001_vm13 = vcmp.lt.f32.partialorder %v2000_v17, 0.0004427343 }
 0x343   : > { %v5112_v30 = vpop.eup %4387  ;;  %2199 = vrot.lane.b32.xlu1 %v2160_v29, %s4418_s25  ;;  %v1843_v5 = vmax.f32 %v4972_v3, 0.0  ;;  %vm2010_vm14 = vcmp.lt.f32.partialorder %v2009_v35, 0.0004427343  ;;  %v1844_v17 = vmax.f32 %v4980_v11, 0.0  ;;  %vm2019_vm15 = vcmp.lt.f32.partialorder %v2018_v39, 0.0004427343 }
 0x344   : > { %v5116_v8 = vpop.eup %4389  ;;  %v1993_v10 = vsel %vm1992_vm12, %v1990_v31, %v1987_v33  ;;  %v2039_v44 = vadd.f32 1.0, %v5112_v30  ;;  %v2042_v48 = vmul.f32 -0.5, %v5112_v30  ;;  %v2008_v59 = vmul.f32 %v5082_v61, %v2007_v34 }
 0x345   : > { %v5121_v14 = vpop.eup %4391  ;;  %v5123_v53 = vadd.f32 %v1993_v10, %v1841_v12  ;;  %v2021_v51 = vadd.f32 1.0, %v5116_v8  ;;  %v2024_v20 = vmul.f32 -0.5, %v5116_v8  ;;  %v2017_v31 = vmul.f32 %v5092_v13, %v2016_v40  ;;  %v2126_v12 = vpop.permute.xlu0 %2125 }
 0x346   : > { %v5127_v21 = vpop.eup %4393  ;;  %4401 = vlog2.f32 %v2039_v44  ;;  %v2048_v27 = vadd.f32 1.0, %v5121_v14  ;;  %v2051_v54 = vmul.f32 -0.5, %v5121_v14  ;;  %v2043_v61 = vadd.f32 1.0, %v2042_v48 }
 0x347   : > { %v4396_v32 = vpop.eup %4395  ;;  %v2161_v2 = vmul.f32 %v2122_v49, %v5123_v53  ;;  %4403 = vlog2.f32 %v2021_v51  ;;  %v2030_v23 = vadd.f32 1.0, %v5127_v21  ;;  %v2025_v29 = vadd.f32 1.0, %v2024_v20  ;;  %v2128_v51 = vpop.permute.xlu1 %2127 }
 0x348   : > { %v1996_v15 = vmul.f32 0.6931472, %v4396_v32  ;;  %4405 = vlog2.f32 %v2048_v27  ;;  %v4398_v57 = vpop.eup %4397  ;;  %v2033_v33 = vmul.f32 -0.5, %v5127_v21  ;;  %v2027_v13 = vand.u32 2147483647, %v5116_v8 }
 0x349   : > { %2201 = vrot.lane.b32.xlu0 %v2161_v2, %s4418_s25  ;;  %4407 = vlog2.f32 %v2030_v23  ;;  %v2005_v16 = vmul.f32 0.6931472, %v4398_v57  ;;  %v4400_v62 = vpop.eup %4399  ;;  %v2036_v34 = vand.u32 2147483647, %v5127_v21  ;;  %v2052_v23 = vadd.f32 1.0, %v2051_v54 }
 0x34a   : > { %v2002_v55 = vsel %vm2001_vm13, %v1999_v24, %v1996_v15  ;;  %v2014_v10 = vmul.f32 0.6931472, %v4400_v62  ;;  %v2045_v24 = vand.u32 2147483647, %v5112_v30  ;;  %v2026_v15 = vmul.f32 %v5116_v8, %v2025_v29 }
 0x34b   : > { %v5139_v46 = vadd.f32 %v2002_v55, %v1842_v37  ;;  %v2011_v9 = vsel %vm2010_vm14, %v2008_v59, %v2005_v16  ;;  %v2034_v40 = vadd.f32 1.0, %v2033_v33  ;;  %v2130_v37 = vpop.permute.xlu0 %2129  ;;  %v2044_v55 = vmul.f32 %v5112_v30, %v2043_v61  ;;  %v2132_v33 = vpop.permute.xlu1 %2131 }
 0x34c   : > { %v5147_v44 = vadd.f32 %v2011_v9, %v1843_v5  ;;  %v2020_v49 = vsel %vm2019_vm15, %v2017_v31, %v2014_v10  ;;  %v2054_v39 = vand.u32 2147483647, %v5121_v14  ;;  %v1845_v5 = vmax.f32 %v5048_v36, 0.0 }
 0x34d   : > { %v2162_v45 = vmul.f32 %v2124_v43, %v5139_v46  ;;  %v5154_v2 = vadd.f32 %v2020_v49, %v1844_v17  ;;  %vm2028_vm3 = vcmp.lt.f32.partialorder %v2027_v13, 0.0004427343  ;;  %vm5163_vm4 = vcmp.lt.f32.partialorder %v2045_v24, 0.0004427343 }
 0x34e   : > { %v2163_v32 = vmul.f32 %v2126_v12, %v5147_v44  ;;  %v1847_v62 = vmax.f32 %v5045_v0, 0.0  ;;  %v2035_v12 = vmul.f32 %v5127_v21, %v2034_v40  ;;  %v2053_v9 = vmul.f32 %v5121_v14, %v2052_v23 }
 0x34f   : > { %2203 = vrot.lane.b32.xlu1 %v2162_v45, %s4418_s25  ;;  %v2164_v43 = vmul.f32 %v2128_v51, %v5154_v2  ;;  %v1846_v10 = vmax.f32 %v5067_v50, 0.0  ;;  %vm2037_vm5 = vcmp.lt.f32.partialorder %v2036_v34, 0.0004427343  ;;  %vm2055_vm6 = vcmp.lt.f32.partialorder %v2054_v39, 0.0004427343  ;;  %v2134_v13 = vpop.permute.xlu0 %2133  ;;  %v2136_v21 = vpop.permute.xlu1 %2135  ;;  %v4303_v39 = vld [vmem:[%s5950_s10] sm:$0xff]  }
 0x350   : > { %v4402_v27 = vpop.eup %4401  ;;  %2205 = vrot.lane.b32.xlu0 %v2163_v32, %s4418_s25  ;;  %v1848_v24 = vmax.f32 %v5054_v41, 0.0  ;;  %4189 = vmatprep.subr.bf16.mxu0 %v4303_v39  ;;  %vm3503_vm8 = vcmask 326656  }
 0x351   : > { %v4404_v35 = vpop.eup %4403  ;;  %v2041_v20 = vmul.f32 0.6931472, %v4402_v27  ;;  %4190 = vmatpush3.bf16.msra.mxu0 %v4303_v39 }
 0x352   : > { %v2023_v57 = vmul.f32 0.6931472, %v4404_v35  ;;  %v4406_v48 = vpop.eup %4405 }
 0x353   : > { %v4408_v8 = vpop.eup %4407  ;;  %2207 = vrot.lane.b32.xlu1 %v2164_v43, %s4418_s25  ;;  %v2047_v31 = vsel %vm5163_vm4, %v2044_v55, %v2041_v20  ;;  %v2050_v30 = vmul.f32 0.6931472, %v4406_v48 }
 0x354   : > { %v2029_v59 = vsel %vm2028_vm3, %v2026_v15, %v2023_v57  ;;  %v2032_v45 = vmul.f32 0.6931472, %v4408_v8  ;;  %v2071_v61 = vadd.f32 %v2047_v31, %v1847_v62 }
 0x355   : > { %v2069_v29 = vadd.f32 %v2029_v59, %v1845_v5  ;;  %v2056_v51 = vsel %vm2055_vm6, %v2053_v9, %v2050_v30  ;;  %v4316_v30 = vld [vmem:[%s5952_s12 + $0xc] ss:$28 sps:$4 sm:$0xff]  }
 0x356   : > { %v2038_v17 = vsel %vm2037_vm5, %v2035_v12, %v2032_v45  ;;  %v2072_v32 = vadd.f32 %v2056_v51, %v1848_v24  ;;  %v2167_v35 = vmul.f32 %v2134_v13, %v2071_v61  ;;  %v4311_v45 = vld [vmem:[%s5952_s12 + $0x70] ss:$28 sps:$4 sm:$0xff]   ;;  %v3773_v12 = vld [vmem:[%s5949_s9] ss:$0 sm:$0xff] }
 0x357   : > { %v2165_v54 = vmul.f32 %v2130_v37, %v2069_v29  ;;  %v2070_v49 = vadd.f32 %v2038_v17, %v1846_v10 }
 0x358   : > { %v2168_v14 = vmul.f32 %v2136_v21, %v2072_v32 }
 0x359   : > { %2209 = vrot.lane.b32.xlu0 %v2165_v54, %s4418_s25  ;;  %v2166_v27 = vmul.f32 %v2132_v33, %v2070_v49  ;;  %v4313_v33 = vld [vmem:[%s5952_s12 + $0x74] ss:$28 sps:$4 sm:$0xff]  }
 0x35b   : > { %2211 = vrot.lane.b32.xlu1 %v2166_v27, %s4418_s25 }
 0x35d   : > { %2213 = vrot.lane.b32.xlu0 %v2167_v35, %s4418_s25 }
 0x35f   : > { %2215 = vrot.lane.b32.xlu1 %v2168_v14, %s4418_s25 }
 0x361   : > { %3272 = vrot.lane.b32.xlu0 %v4924_v60, %s4419_s26 }
 0x363   : > { %3274 = vrot.lane.b32.xlu1 %v4932_v4, %s4419_s26 }
 0x365   : > { %3276 = vrot.lane.b32.xlu0 %v4921_v58, %s4419_s26 }
 0x367   : > { %3278 = vrot.lane.b32.xlu1 %v4928_v1, %s4419_s26 }
 0x369   : > { %3280 = vrot.lane.b32.xlu0 %v4943_v19, %s4419_s26 }
 0x36b   : > { %3282 = vrot.lane.b32.xlu1 %v4951_v28, %s4419_s26 }
 0x36d   : > { %3284 = vrot.lane.b32.xlu0 %v4940_v47, %s4419_s26 }
 0x36f   : > { %3286 = vrot.lane.b32.xlu1 %v4946_v22, %s4419_s26 }
 0x371   : > { %3288 = vrot.lane.b32.xlu0 %v4976_v7, %s4419_s26 }
 0x373   : > { %3290 = vrot.lane.b32.xlu1 %v4989_v18, %s4419_s26 }
 0x375   : > { %3292 = vrot.lane.b32.xlu0 %v4972_v3, %s4419_s26 }
 0x377   : > { %3294 = vrot.lane.b32.xlu1 %v4980_v11, %s4419_s26 }
 0x379   : > { %3296 = vrot.lane.b32.xlu0 %v5048_v36, %s4419_s26 }
 0x37b   : > { %3298 = vrot.lane.b32.xlu1 %v5067_v50, %s4419_s26 }
 0x37d   : > { %3300 = vrot.lane.b32.xlu0 %v5045_v0, %s4419_s26 }
 0x37f   : > { %3302 = vrot.lane.b32.xlu1 %v5054_v41, %s4419_s26 }
 0x381   : > { %3336 = vrot.lane.b32.xlu0 %v4991_v26, %s4419_s26 }
 0x383   : > { %3338 = vrot.lane.b32.xlu1 %v5019_v63, %s4419_s26 }
 0x385   : > { %3340 = vrot.lane.b32.xlu0 %v4995_v25, %s4419_s26 }
 0x387   : > { %3342 = vrot.lane.b32.xlu1 %v5025_v6, %s4419_s26 }
 0x389   : > { %3344 = vrot.lane.b32.xlu0 %v5069_v52, %s4419_s26 }
 0x38b   : > { %3346 = vrot.lane.b32.xlu1 %v5090_v38, %s4419_s26 }
 0x38d   : > { %3348 = vrot.lane.b32.xlu0 %v5096_v42, %s4419_s26 }
 0x38f   : > { %3350 = vrot.lane.b32.xlu1 %v5104_v56, %s4419_s26 }
 0x391   : > { %3352 = vrot.lane.b32.xlu0 %v5123_v53, %s4419_s26 }
 0x393   : > { %3354 = vrot.lane.b32.xlu1 %v5139_v46, %s4419_s26 }
 0x395   : > { %3356 = vrot.lane.b32.xlu0 %v5147_v44, %s4419_s26 }
 0x397   : > { %3358 = vrot.lane.b32.xlu1 %v5154_v2, %s4419_s26 }
 0x399   : > { %3360 = vrot.lane.b32.xlu0 %v2069_v29, %s4419_s26  ;;  %v4308_v29 = vld [vmem:[%s5952_s12 + $0x38] ss:$28 sps:$4 sm:$0xff]  }
 0x39b   : > { %v2186_v26 = vpop.permute.xlu0 %2185  ;;  %3362 = vrot.lane.b32.xlu1 %v2070_v49, %s4419_s26 }
 0x39c   : > { %v2233_v52 = vadd.f32 %v2186_v26, %v4924_v60  ;;  %v4314_v26 = vld [vmem:[%s5952_s12 + $0x8] ss:$28 sps:$4 sm:$0xff]  }
 0x39d   : > { %3364 = vrot.lane.b32.xlu0 %v2071_v61, %s4419_s26 }
 0x39f   : > { %v2190_v25 = vpop.permute.xlu0 %2189  ;;  %3366 = vrot.lane.b32.xlu1 %v2072_v32, %s4419_s26 }
 0x3a0   : > { %v2235_v63 = vadd.f32 %v2190_v25, %v4921_v58  ;;  %v2188_v6 = vpop.permute.xlu1 %2187  ;;  %v4319_v25 = vld [vmem:[%s5952_s12 + $0x44] ss:$28 sps:$4 sm:$0xff]  }
 0x3a1   : > { %v2234_v38 = vadd.f32 %v2188_v6, %v4932_v4 }
 0x3a2   : > { %3404 = vrot.lane.b32.xlu0 %v2235_v63, %s4420_s27 }
 0x3a3   : > { %v2249_v42 = vpack.c.bf16 %v2234_v38, %v2233_v52 }
 0x3a4   : > { %v2192_v56 = vpop.permute.xlu1 %2191 }
 0x3a5   : > { %v2236_v53 = vadd.f32 %v2192_v56, %v4928_v1  ;;  %4173 = vmatprep.mubr.msk.bf16.mxu1 %vm2265_vm7, %v2249_v42 }
 0x3a6   : > { %3400 = vrot.lane.b32.xlu0 %v2233_v52, %s4420_s27 }
 0x3a7   : > { %v2250_v46 = vpack.c.bf16 %v2236_v53, %v2235_v63  ;;  %3406 = vrot.lane.b32.xlu1 %v2236_v53, %s4420_s27  ;;  %v4317_v63 = vld [vmem:[%s5952_s12 + $0x40] ss:$28 sps:$4 sm:$0xff]  }
 0x3a9   : > { %4174 = vmatmul.mubr.msk.bf16.vlgmr.msra.gmra.mrb[64].mxu1 %vm2265_vm7, %v2250_v46 }
 0x3ab   : > { %3402 = vrot.lane.b32.xlu1 %v2234_v38, %s4420_s27  ;;  %v2194_v58 = vpop.permute.xlu0 %2193 }
 0x3ac   : > { %v2237_v4 = vadd.f32 %v2194_v58, %v4943_v19 }
 0x3b1   : > { %v2196_v60 = vpop.permute.xlu1 %2195 }
 0x3b2   : > { %v2238_v44 = vadd.f32 %v2196_v60, %v4951_v28  ;;  %v2198_v2 = vpop.permute.xlu0 %2197 }
 0x3b3   : > { %v2239_v34 = vadd.f32 %v2198_v2, %v4940_v47 }
 0x3b4   : > { %v2251_v15 = vpack.c.bf16 %v2238_v44, %v2237_v4 }
 0x3b5   : > { %v2200_v1 = vpop.permute.xlu1 %2199  ;;  %3412 = vrot.lane.b32.xlu0 %v2239_v34, %s4420_s27 }
 0x3b6   : > { %v2240_v40 = vadd.f32 %v2200_v1, %v4946_v22  ;;  %4177 = vmatprep.mubr.msk.bf16.mxu1 %vm2265_vm7, %v2251_v15 }
 0x3b8   : > { %v2252_v20 = vpack.c.bf16 %v2240_v40, %v2239_v34  ;;  %3414 = vrot.lane.b32.xlu1 %v2240_v40, %s4420_s27 }
 0x3b9   : > { %3408 = vrot.lane.b32.xlu0 %v2237_v4, %s4420_s27 }
 0x3ba   : > { %4178 = vmatmul.mubr.msk.bf16.gmra.mrb[68].mxu1 %vm2265_vm7, %v2252_v20 }
 0x3bb   : > { %v2202_v19 = vpop.permute.xlu0 %2201 }
 0x3bc   : > { %3410 = vrot.lane.b32.xlu1 %v2238_v44, %s4420_s27  ;;  %v2241_v47 = vadd.f32 %v2202_v19, %v4976_v7  ;;  %v4304_v7 = vld [vmem:[%s5950_s10 + $0x8] sm:$0xff]  }
 0x3bd   : > { %4191 = vmatprep.subr.bf16.mxu0 %v4304_v7 }
 0x3be   : > { %4192 = vmatpush3.bf16.msra.mxu0 %v4304_v7 }
 0x3bf   : > { %2933 = vmatprep.subr.bf16.mxu0 %v4316_v30  ;;  %v4320_v30 = vld [vmem:[%s5952_s12 + $0xa8] ss:$28 sps:$4 sm:$0xff]  }
 0x3c1   : > { %v2204_v28 = vpop.permute.xlu1 %2203 }
 0x3c2   : > { %v2242_v23 = vadd.f32 %v2204_v28, %v4989_v18  ;;  %v2206_v37 = vpop.permute.xlu0 %2205 }
 0x3c3   : > { %v2243_v22 = vadd.f32 %v2206_v37, %v4972_v3 }
 0x3c4   : > { %v2253_v43 = vpack.c.bf16 %v2242_v23, %v2241_v47 }
 0x3c5   : > { %v2208_v57 = vpop.permute.xlu1 %2207  ;;  %3420 = vrot.lane.b32.xlu0 %v2243_v22, %s4420_s27 }
 0x3c6   : > { %4181 = vmatprep.mubr.msk.bf16.mxu1 %vm2265_vm7, %v2253_v43  ;;  %v2244_v55 = vadd.f32 %v2208_v57, %v4980_v11 }
 0x3c8   : > { %v2254_v18 = vpack.c.bf16 %v2244_v55, %v2243_v22  ;;  %3422 = vrot.lane.b32.xlu1 %v2244_v55, %s4420_s27 }
 0x3c9   : > { %3416 = vrot.lane.b32.xlu0 %v2241_v47, %s4420_s27 }
 0x3ca   : > { %4182 = vmatmul.mubr.msk.bf16.gmra.mrb[72].mxu1 %vm2265_vm7, %v2254_v18 }
 0x3cb   : > { %v2210_v3 = vpop.permute.xlu0 %2209 }
 0x3cc   : > { %v2245_v11 = vadd.f32 %v2210_v3, %v5048_v36  ;;  %3418 = vrot.lane.b32.xlu1 %v2242_v23, %s4420_s27 }
 0x3cd   : > { %v2212_v48 = vpop.permute.xlu1 %2211 }
 0x3ce   : > { %v2246_v5 = vadd.f32 %v2212_v48, %v5067_v50  ;;  %3424 = vrot.lane.b32.xlu0 %v2245_v11, %s4420_s27  ;;  %v4305_v50 = vld [vmem:[%s5952_s12] ss:$28 sps:$4 sm:$0xff]  }
 0x3cf   : > { %v2214_v16 = vpop.permute.xlu0 %2213 }
 0x3d0   : > { %v2247_v8 = vadd.f32 %v2214_v16, %v5045_v0  ;;  %v2255_v59 = vpack.c.bf16 %v2246_v5, %v2245_v11  ;;  %3426 = vrot.lane.b32.xlu1 %v2246_v5, %s4420_s27  ;;  %v4307_v0 = vld [vmem:[%s5952_s12 + $0x4] ss:$28 sps:$4 sm:$0xff]  }
 0x3d1   : > { %v2216_v62 = vpop.permute.xlu1 %2215  ;;  %2820 = vmatprep.subr.bf16.mxu1 %v4307_v0 }
 0x3d2   : > { %v2248_v31 = vadd.f32 %v2216_v62, %v5054_v41  ;;  %4185 = vmatprep.mubr.msk.bf16.mxu1 %vm2265_vm7, %v2255_v59  ;;  %3428 = vrot.lane.b32.xlu0 %v2247_v8, %s4420_s27  ;;  %v4310_v41 = vld [vmem:[%s5952_s12 + $0x3c] ss:$28 sps:$4 sm:$0xff]  }
 0x3d3   : > { %2821 = vmatpush1.bf16.msra.mxu1 %v4305_v50 }
 0x3d4   : > { %v2256_v36 = vpack.c.bf16 %v2248_v31, %v2247_v8  ;;  %3430 = vrot.lane.b32.xlu1 %v2248_v31, %s4420_s27  ;;  %2822 = vmatprep.subr.bf16.mxu1 %v4310_v41 }
 0x3d6   : > { %4186 = vmatmul.mubr.msk.bf16.gmra.mrb[76].mxu1 %vm2265_vm7, %v2256_v36 }
 0x3d7   : > { %2823 = vmatpush1.bf16.msra.mxu1 %v4308_v29  ;;  %v4322_v29 = vld [vmem:[%s5952_s12 + $0xac] ss:$28 sps:$4 sm:$0xff]  }
 0x3d8   : > { %2824 = vmatprep.subr.bf16.mxu1 %v4313_v33  ;;  %v4323_v33 = vld [vmem:[%s5952_s12 + $0x78] ss:$28 sps:$4 sm:$0xff]  }
 0x3db   : > { %2825 = vmatpush1.bf16.msra.mxu1 %v4311_v45  ;;  %v4325_v45 = vld [vmem:[%s5952_s12 + $0x7c] ss:$28 sps:$4 sm:$0xff]  }
 0x3dc   : > { %2826 = vmatprep.subr.bf16.mxu1 %v4322_v29 }
 0x3df   : > { %2827 = vmatpush1.bf16.msra.mxu1 %v4320_v30 }
 0x47c   : > { %v4175_v9 = vpop.f32.mrb[64].mxu1 }
 0x47d   : > { %v2337_v10 = vadd.f32 %v4175_v9, %v3773_v12  ;;  %v2328_v54 = vpop.f32.mrb[65].mxu1  ;;  %v4331_v9 = vld [vmem:[%s5952_s12 + $0x14] ss:$28 sps:$4 sm:$0xff]  }
 0x47e   : > { %v2329_v17 = vadd.f32 %v3773_v12, %v2328_v54  ;;  %v4176_v61 = vpop.f32.mrb[66].mxu1  ;;  %v4421_v54 = vmov 0   ;;  %3046 = vmatprep.subr.bf16.mxu1 %v4331_v9 }
 0x47f   : > { %v2340_v51 = vadd.f32 %v4176_v61, %v3773_v12  ;;  %v2331_v49 = vpop.f32.mrb[67].mxu1  ;;  %v2393_v24 = vmax.f32 %v2337_v10, 0.0  ;;  %v4326_v10 = vld [vmem:[%s5952_s12 + $0xb0] ss:$28 sps:$4 sm:$0xff]   ;;  %2852 = vmatprep.mubr.bf16.mxu1 %v4421_v54  ;;  %v5355_v61 = vld [vmem:[%s5951_s11] ss:$0 sm:$0xff] }
 0x480   : > { %v2332_v13 = vadd.f32 %v3773_v12, %v2331_v49  ;;  %v2391_v32 = vmax.f32 %v2329_v17, 0.0  ;;  %v4335_v17 = vld [vmem:[%s5952_s12 + $0x18] ss:$28 sps:$4 sm:$0xff]  }
 0x481   : > { %v2394_v27 = vmax.f32 %v2340_v51, 0.0 }
 0x482   : > { %v2392_v35 = vmax.f32 %v2332_v13, 0.0 }
 0x483   : > { %v2408_v21 = vpack.c.bf16 %v2394_v27, %v2393_v24 }
 0x484   : > { %v2407_v14 = vpack.c.bf16 %v2392_v35, %v2391_v32 }
 0x486   : > { %4193 = vmatprep.mubr.msk.bf16.mxu0 %vm1711_vm2, %v2407_v14 }
 0x487   : > { %4194 = vmatmul.mubr.msk.bf16.vlgmr.msra.gmra.mrb[80].mxu0 %vm1711_vm2, %v2408_v21 }
 0x488   : > { %2934 = vmatpush1.bf16.msra.mxu0 %v4314_v26 }
 0x489   : > { %2935 = vmatprep.subr.bf16.mxu0 %v4319_v25 }
 0x48c   : > { %2936 = vmatpush1.bf16.msra.mxu0 %v4317_v63 }
 0x48d   : > { %v4179_v6 = vpop.f32.mrb[68].mxu1  ;;  %2937 = vmatprep.subr.bf16.mxu0 %v4325_v45 }
 0x48e   : > { %v2353_v52 = vadd.f32 %v4179_v6, %v3773_v12  ;;  %v2344_v38 = vpop.f32.mrb[69].mxu1 }
 0x48f   : > { %v2345_v42 = vadd.f32 %v3773_v12, %v2344_v38  ;;  %v4180_v56 = vpop.f32.mrb[70].mxu1 }
 0x490   : > { %v2356_v53 = vadd.f32 %v4180_v56, %v3773_v12  ;;  %v2347_v46 = vpop.f32.mrb[71].mxu1  ;;  %v2397_v60 = vmax.f32 %v2353_v52, 0.0  ;;  %2938 = vmatpush1.bf16.msra.mxu0 %v4323_v33  ;;  %v4329_v52 = vld [vmem:[%s5952_s12 + $0x10] ss:$28 sps:$4 sm:$0xff]  }
 0x491   : > { %v2348_v58 = vadd.f32 %v3773_v12, %v2347_v46  ;;  %v2395_v44 = vmax.f32 %v2345_v42, 0.0  ;;  %v4334_v42 = vld [vmem:[%s5952_s12 + $0x4c] ss:$28 sps:$4 sm:$0xff]   ;;  %v4338_v46 = vld [vmem:[%s5952_s12 + $0x84] ss:$28 sps:$4 sm:$0xff]  }
 0x492   : > { %v2398_v4 = vmax.f32 %v2356_v53, 0.0  ;;  %v4339_v56 = vld [vmem:[%s5952_s12 + $0x50] ss:$28 sps:$4 sm:$0xff]   ;;  %v4332_v53 = vld [vmem:[%s5952_s12 + $0x48] ss:$28 sps:$4 sm:$0xff]  }
 0x493   : > { %v2396_v2 = vmax.f32 %v2348_v58, 0.0 }
 0x494   : > { %v2410_v34 = vpack.c.bf16 %v2398_v4, %v2397_v60  ;;  %v4336_v60 = vld [vmem:[%s5952_s12 + $0x80] ss:$28 sps:$4 sm:$0xff]   ;;  %v4343_v4 = vld [vmem:[%s5952_s12 + $0x88] ss:$28 sps:$4 sm:$0xff]  }
 0x495   : > { %v2409_v15 = vpack.c.bf16 %v2396_v2, %v2395_v44 }
 0x497   : > { %4197 = vmatprep.mubr.msk.bf16.mxu0 %vm1711_vm2, %v2409_v15 }
 0x498   : > { %4198 = vmatmul.mubr.msk.bf16.gmra.mrb[84].mxu0 %vm1711_vm2, %v2410_v34  ;;  %v4342_v34 = vld [vmem:[%s5952_s12 + $0xbc] ss:$28 sps:$4 sm:$0xff]  }
 0x49d   : > { %v4183_v1 = vpop.f32.mrb[72].mxu1 }
 0x49e   : > { %v2369_v40 = vadd.f32 %v4183_v1, %v3773_v12  ;;  %v2360_v20 = vpop.f32.mrb[73].mxu1 }
 0x49f   : > { %v2361_v19 = vadd.f32 %v3773_v12, %v2360_v20  ;;  %v4184_v28 = vpop.f32.mrb[74].mxu1 }
 0x4a0   : > { %v2372_v47 = vadd.f32 %v4184_v28, %v3773_v12  ;;  %v2363_v23 = vpop.f32.mrb[75].mxu1  ;;  %v2401_v37 = vmax.f32 %v2369_v40, 0.0  ;;  %v4344_v40 = vld [vmem:[%s5952_s12 + $0xc0] ss:$28 sps:$4 sm:$0xff]  }
 0x4a1   : > { %v2364_v43 = vadd.f32 %v3773_v12, %v2363_v23  ;;  %v2399_v57 = vmax.f32 %v2361_v19, 0.0 }
 0x4a2   : > { %v2402_v22 = vmax.f32 %v2372_v47, 0.0  ;;  %v4340_v47 = vld [vmem:[%s5952_s12 + $0xb8] ss:$28 sps:$4 sm:$0xff]  }
 0x4a3   : > { %v2400_v55 = vmax.f32 %v2364_v43, 0.0 }
 0x4a4   : > { %v2412_v39 = vpack.c.bf16 %v2402_v22, %v2401_v37 }
 0x4a5   : > { %v2411_v7 = vpack.c.bf16 %v2400_v55, %v2399_v57 }
 0x4a7   : > { %4201 = vmatprep.mubr.msk.bf16.mxu0 %vm1711_vm2, %v2411_v7 }
 0x4a8   : > { %4202 = vmatmul.mubr.msk.bf16.gmra.mrb[88].mxu0 %vm1711_vm2, %v2412_v39 }
 0x4a9   : > { %v4187_v18 = vpop.f32.mrb[76].mxu1 }
 0x4aa   : > { %v2385_v3 = vadd.f32 %v4187_v18, %v3773_v12  ;;  %v2376_v11 = vpop.f32.mrb[77].mxu1 }
 0x4ab   : > { %v2377_v48 = vadd.f32 %v3773_v12, %v2376_v11  ;;  %v4188_v5 = vpop.f32.mrb[78].mxu1 }
 0x4ac   : > { %v2388_v16 = vadd.f32 %v4188_v5, %v3773_v12  ;;  %v2379_v8 = vpop.f32.mrb[79].mxu1  ;;  %v2405_v62 = vmax.f32 %v2385_v3, 0.0 }
 0x4ad   : > { %v2380_v59 = vadd.f32 %v3773_v12, %v2379_v8  ;;  %v2403_v36 = vmax.f32 %v2377_v48, 0.0  ;;  %v4328_v12 = vld [vmem:[%s5952_s12 + $0xb4] ss:$28 sps:$4 sm:$0xff]  }
 0x4ae   : > { %v2406_v31 = vmax.f32 %v2388_v16, 0.0  ;;  %2939 = vmatprep.subr.bf16.mxu0 %v4328_v12 }
 0x4af   : > { %v2404_v50 = vmax.f32 %v2380_v59, 0.0  ;;  %2940 = vmatpush1.bf16.msra.mxu0 %v4326_v10 }
 0x4b0   : > { %v2414_v0 = vpack.c.bf16 %v2406_v31, %v2405_v62  ;;  %4209 = vmatprep.subr.bf16.mxu0 %v4335_v17 }
 0x4b1   : > { %v2413_v41 = vpack.c.bf16 %v2404_v50, %v2403_v36 }
 0x4b3   : > { %4205 = vmatprep.mubr.msk.bf16.mxu0 %vm1711_vm2, %v2413_v41 }
 0x4b4   : > { %4206 = vmatmul.mubr.msk.bf16.gmra.mrb[92].mxu0 %vm1711_vm2, %v2414_v0 }
 0x4b5   : > { %2965 = vmatprep.mubr.bf16.mxu0 %v4421_v54 }
 0x55a   : > { %v4195_v51 = vpop.f32.mrb[80].mxu0 }
 0x55b   : > { %v2505_v49 = vadd.f32 %v4195_v51, %v5355_v61  ;;  %v2496_v13 = vpop.f32.mrb[81].mxu0 }
 0x55c   : > { %v2497_v24 = vadd.f32 %v5355_v61, %v2496_v13  ;;  %v4196_v27 = vpop.f32.mrb[82].mxu0 }
 0x55d   : > { %v2508_v32 = vadd.f32 %v4196_v27, %v5355_v61  ;;  %v2499_v35 = vpop.f32.mrb[83].mxu0  ;;  %v2561_v14 = vmax.f32 %v2505_v49, 0.0  ;;  %v5483_v27 = vpop.permute.xlu1 %3274 }
 0x55e   : > { %v2500_v21 = vadd.f32 %v5355_v61, %v2499_v35  ;;  %v2559_v25 = vmax.f32 %v2497_v24, 0.0 }
 0x55f   : > { %v2562_v26 = vmax.f32 %v2508_v32, 0.0 }
 0x560   : > { %v2560_v63 = vmax.f32 %v2500_v21, 0.0 }
 0x561   : > { %v5361_v6 = vpack.c.bf16 %v2562_v26, %v2561_v14  ;;  %v5487_v35 = vpop.permute.xlu1 %3278 }
 0x562   : > { %v5366_v38 = vpack.c.bf16 %v2560_v63, %v2559_v25 }
 0x564   : > { %3821 = vmatmul.mubr.msk.bf16.vlgmr.msra.gmra.mrb[80].mxu1 %vm1542_vm1, %v5366_v38  ;;  %3829 = vmatmul.mubr.msk.bf16.vlgmr.msra.gmra.mrb[96].mxu0 %vm1542_vm1, %v5366_v38 }
 0x565   : > { %3047 = vmatpush1.bf16.msra.mxu1 %v4329_v52  ;;  %2862 = vmatprep.mubr.bf16.mxu1 %v4421_v54  ;;  %v5491_v14 = vpop.permute.xlu1 %3282 }
 0x566   : > { %2975 = vmatprep.mubr.bf16.mxu0 %v4421_v54  ;;  %3048 = vmatprep.subr.bf16.mxu1 %v4334_v42 }
 0x567   : > { %4210 = vmatpush3.bf16.msra.mxu0 %v4335_v17 }
 0x568   : > { %4211 = vmatprep.subr.bf16.mxu0 %v4339_v56 }
 0x569   : > { %3049 = vmatpush1.bf16.msra.mxu1 %v4332_v53  ;;  %v5495_v25 = vpop.permute.xlu1 %3286 }
 0x56a   : > { %3050 = vmatprep.subr.bf16.mxu1 %v4338_v46 }
 0x56b   : > { %v4199_v58 = vpop.f32.mrb[84].mxu0  ;;  %4212 = vmatpush3.bf16.msra.mxu0 %v4339_v56 }
 0x56c   : > { %v2521_v44 = vadd.f32 %v4199_v58, %v5355_v61  ;;  %v2512_v2 = vpop.f32.mrb[85].mxu0  ;;  %3822 = vmatmul.mubr.msk.bf16.gmra.mrb[84].mxu1 %vm1542_vm1, %v5361_v6  ;;  %3830 = vmatmul.mubr.msk.bf16.gmra.mrb[100].mxu0 %vm1542_vm1, %v5361_v6 }
 0x56d   : > { %v2513_v15 = vadd.f32 %v5355_v61, %v2512_v2  ;;  %v4200_v1 = vpop.f32.mrb[86].mxu0  ;;  %2872 = vmatprep.mubr.bf16.mxu1 %v4421_v54  ;;  %2985 = vmatprep.mubr.bf16.mxu0 %v4421_v54 }
 0x56e   : > { %v2524_v20 = vadd.f32 %v4200_v1, %v5355_v61  ;;  %v2515_v19 = vpop.f32.mrb[87].mxu0  ;;  %3051 = vmatpush1.bf16.msra.mxu1 %v4336_v60  ;;  %4213 = vmatprep.subr.bf16.mxu0 %v4343_v4  ;;  %v2565_v23 = vmax.f32 %v2521_v44, 0.0  ;;  %v2617_v60 = vlaneseq }
 0x56f   : > { %v2516_v28 = vadd.f32 %v5355_v61, %v2515_v19  ;;  %3052 = vmatprep.subr.bf16.mxu1 %v4342_v34  ;;  %4214 = vmatpush3.bf16.msra.mxu0 %v4343_v4  ;;  %v2563_v37 = vmax.f32 %v2513_v15, 0.0 }
 0x570   : > { %v2566_v43 = vmax.f32 %v2524_v20, 0.0  ;;  %4215 = vmatprep.subr.bf16.mxu0 %v4344_v40  ;;  %v5521_v2 = vshrl.u32 %v2617_v60, 7  ;;  %v5532_v20 = vld [vmem:[%s5953_s13] sm:$0x7f] }
 0x571   : > { %v2564_v22 = vmax.f32 %v2516_v28, 0.0 }
 0x572   : > { %v5411_v57 = vpack.c.bf16 %v2566_v43, %v2565_v23  ;;  %3053 = vmatpush1.bf16.msra.mxu1 %v4340_v47  ;;  %v2619_v1 = vsub.s32 0, %v5521_v2  ;;  %v2623_v19 = vsub.s32 1, %v5521_v2  ;;  %v2631_v28 = vsub.s32 3, %v5521_v2 }
 0x573   : > { %v5413_v55 = vpack.c.bf16 %v2564_v22, %v2563_v37  ;;  %4216 = vmatpush3.bf16.msra.mxu0 %v4344_v40  ;;  %v2627_v40 = vsub.s32 2, %v5521_v2 }
 0x574   : > { %v5537_v47 = vrot.slane %v5532_v20, %v2619_v1  ;;  %v5543_v43 = vrot.slane %v5532_v20, %v2623_v19  ;;  %v5546_v37 = vrot.slane %v5532_v20, %v2631_v28 }
 0x575   : > { %3823 = vmatmul.mubr.msk.bf16.gmra.mrb[88].mxu1 %vm1542_vm1, %v5413_v55  ;;  %3831 = vmatmul.mubr.msk.bf16.gmra.mrb[104].mxu0 %vm1542_vm1, %v5413_v55  ;;  %v5540_v23 = vrot.slane %v5532_v20, %v2627_v40 }
 0x576   : > { %2882 = vmatprep.mubr.bf16.mxu1 %v4421_v54  ;;  %2995 = vmatprep.mubr.bf16.mxu0 %v4421_v54 }
 0x57b   : > { %v4203_v39 = vpop.f32.mrb[88].mxu0 }
 0x57c   : > { %v2537_v7 = vadd.f32 %v4203_v39, %v5355_v61  ;;  %v2528_v18 = vpop.f32.mrb[89].mxu0 }
 0x57d   : > { %v2529_v3 = vadd.f32 %v5355_v61, %v2528_v18  ;;  %v4204_v11 = vpop.f32.mrb[90].mxu0  ;;  %3824 = vmatmul.mubr.msk.bf16.gmra.mrb[92].mxu1 %vm1542_vm1, %v5411_v57  ;;  %3832 = vmatmul.mubr.msk.bf16.gmra.mrb[108].mxu0 %vm1542_vm1, %v5411_v57 }
 0x57e   : > { %v2540_v48 = vadd.f32 %v4204_v11, %v5355_v61  ;;  %v2531_v5 = vpop.f32.mrb[91].mxu0  ;;  %2892 = vmatprep.mubr.bf16.mxu1 %v4421_v54  ;;  %3005 = vmatprep.mubr.bf16.mxu0 %v4421_v54  ;;  %v2569_v8 = vmax.f32 %v2537_v7, 0.0 }
 0x57f   : > { %v2532_v16 = vadd.f32 %v5355_v61, %v2531_v5  ;;  %v2567_v62 = vmax.f32 %v2529_v3, 0.0 }
 0x580   : > { %v2570_v59 = vmax.f32 %v2540_v48, 0.0 }
 0x581   : > { %v2568_v31 = vmax.f32 %v2532_v16, 0.0 }
 0x582   : > { %v2580_v36 = vpack.c.bf16 %v2570_v59, %v2569_v8 }
 0x583   : > { %v2579_v50 = vpack.c.bf16 %v2568_v31, %v2567_v62 }
 0x585   : > { %3825 = vmatmul.mubr.msk.bf16.gmra.mrb[96].mxu1 %vm1542_vm1, %v2579_v50  ;;  %3833 = vmatmul.mubr.msk.bf16.gmra.mrb[112].mxu0 %vm1542_vm1, %v2579_v50 }
 0x586   : > { %2902 = vmatprep.mubr.bf16.mxu1 %v4421_v54  ;;  %3015 = vmatprep.mubr.bf16.mxu0 %v4421_v54 }
 0x587   : > { %v4207_v0 = vpop.f32.mrb[92].mxu0 }
 0x588   : > { %v2553_v41 = vadd.f32 %v4207_v0, %v5355_v61  ;;  %v2544_v30 = vpop.f32.mrb[93].mxu0 }
 0x589   : > { %v2545_v29 = vadd.f32 %v5355_v61, %v2544_v30  ;;  %v4208_v33 = vpop.f32.mrb[94].mxu0 }
 0x58a   : > { %v2556_v45 = vadd.f32 %v4208_v33, %v5355_v61  ;;  %v2547_v12 = vpop.f32.mrb[95].mxu0  ;;  %v2573_v10 = vmax.f32 %v2553_v41, 0.0 }
 0x58b   : > { %v2548_v9 = vadd.f32 %v5355_v61, %v2547_v12  ;;  %v2571_v51 = vmax.f32 %v2545_v29, 0.0  ;;  %v5481_v61 = vpop.permute.xlu0 %3272 }
 0x58c   : > { %v2574_v17 = vmax.f32 %v2556_v45, 0.0 }
 0x58d   : > { %3826 = vmatmul.mubr.msk.bf16.gmra.mrb[100].mxu1 %vm1542_vm1, %v2580_v36  ;;  %3834 = vmatmul.mubr.msk.bf16.gmra.mrb[116].mxu0 %vm1542_vm1, %v2580_v36  ;;  %v2572_v49 = vmax.f32 %v2548_v9, 0.0 }
 0x58e   : > { %v2582_v13 = vpack.c.bf16 %v2574_v17, %v2573_v10  ;;  %2912 = vmatprep.mubr.bf16.mxu1 %v4421_v54  ;;  %3025 = vmatprep.mubr.bf16.mxu0 %v4421_v54 }
 0x58f   : > { %v2581_v24 = vpack.c.bf16 %v2572_v49, %v2571_v51  ;;  %v5485_v32 = vpop.permute.xlu0 %3276 }
 0x593   : > { %v5489_v21 = vpop.permute.xlu0 %3280 }
 0x595   : > { %3827 = vmatmul.mubr.msk.bf16.gmra.mrb[104].mxu1 %vm1542_vm1, %v2581_v24  ;;  %3835 = vmatmul.mubr.msk.bf16.gmra.mrb[120].mxu0 %vm1542_vm1, %v2581_v24 }
 0x596   : > { %2922 = vmatprep.mubr.bf16.mxu1 %v4421_v54  ;;  %3035 = vmatprep.mubr.bf16.mxu0 %v4421_v54 }
 0x597   : > { %v5493_v26 = vpop.permute.xlu0 %3284 }
 0x59b   : > { %v5497_v63 = vpop.permute.xlu0 %3288 }
 0x59d   : > { %3828 = vmatmul.mubr.msk.bf16.gmra.mrb[108].mxu1 %vm1542_vm1, %v2582_v13  ;;  %3836 = vmatmul.mubr.msk.bf16.gmra.mrb[124].mxu0 %vm1542_vm1, %v2582_v13 }
 0x59e   : > { %4217 = vmatprep.mubr.msk.bf16.mxu0 %vm1542_vm1, %v5366_v38  ;;  %3078 = vmatprep.mubr.bf16.mxu1 %v4421_v54 }
 0x5a5   : > { %3837 = vmatmul.mubr.msk.bf16.vlgmr.msra.gmra.mrb[112].mxu1 %vm1542_vm1, %v5366_v38  ;;  %4218 = vmatmul.mubr.msk.bf16.vlgmr.msra.gmra.mrb[128].mxu0 %vm1542_vm1, %v5361_v6 }
 0x5a6   : > { %4221 = vmatprep.mubr.msk.bf16.mxu0 %vm1542_vm1, %v5413_v55  ;;  %3088 = vmatprep.mubr.bf16.mxu1 %v4421_v54 }
 0x5ad   : > { %3838 = vmatmul.mubr.msk.bf16.gmra.mrb[116].mxu1 %vm1542_vm1, %v5361_v6  ;;  %4222 = vmatmul.mubr.msk.bf16.gmra.mrb[132].mxu0 %vm1542_vm1, %v5411_v57  ;;  %v5501_v6 = vpop.permute.xlu0 %3292 }
 0x5ae   : > { %4225 = vmatprep.mubr.msk.bf16.mxu0 %vm1542_vm1, %v2579_v50  ;;  %3098 = vmatprep.mubr.bf16.mxu1 %v4421_v54 }
 0x5b1   : > { %v5505_v38 = vpop.permute.xlu0 %3296 }
 0x5b5   : > { %3839 = vmatmul.mubr.msk.bf16.gmra.mrb[120].mxu1 %vm1542_vm1, %v5413_v55  ;;  %4226 = vmatmul.mubr.msk.bf16.gmra.mrb[136].mxu0 %vm1542_vm1, %v2580_v36  ;;  %v5509_v56 = vpop.permute.xlu0 %3300 }
 0x5b6   : > { %4229 = vmatprep.mubr.msk.bf16.mxu0 %vm1542_vm1, %v2581_v24  ;;  %3108 = vmatprep.mubr.bf16.mxu1 %v4421_v54 }
 0x5b9   : > { %v5513_v46 = vpop.permute.xlu0 %3336 }
 0x5bd   : > { %3840 = vmatmul.mubr.msk.bf16.gmra.mrb[124].mxu1 %vm1542_vm1, %v5411_v57  ;;  %4230 = vmatmul.mubr.msk.bf16.gmra.mrb[140].mxu0 %vm1542_vm1, %v2582_v13  ;;  %v5517_v4 = vpop.permute.xlu0 %3340 }
 0x5be   : > { %3118 = vmatprep.mubr.bf16.mxu1 %v4421_v54 }
 0x5c1   : > { %v5523_v34 = vpop.permute.xlu0 %3344 }
 0x5c5   : > { %3841 = vmatmul.mubr.msk.bf16.gmra.mrb[128].mxu1 %vm1542_vm1, %v2579_v50  ;;  %v5548_v22 = vpop.permute.xlu0 %3348 }
 0x5c6   : > { %3128 = vmatprep.mubr.bf16.mxu1 %v4421_v54 }
 0x5c9   : > { %v5575_v41 = vpop.permute.xlu0 %3352 }
 0x5cd   : > { %3842 = vmatmul.mubr.msk.bf16.gmra.mrb[132].mxu1 %vm1542_vm1, %v2580_v36 }
 0x5ce   : > { %3138 = vmatprep.mubr.bf16.mxu1 %v4421_v54 }
 0x5d5   : > { %3843 = vmatmul.mubr.msk.bf16.gmra.mrb[136].mxu1 %vm1542_vm1, %v2581_v24 }
 0x5d6   : > { %3148 = vmatprep.mubr.bf16.mxu1 %v4421_v54  ;;  %v5499_v54 = vpop.permute.xlu1 %3290 }
 0x5da   : > { %v5503_v52 = vpop.permute.xlu1 %3294 }
 0x5dd   : > { %3844 = vmatmul.mubr.msk.bf16.gmra.mrb[140].mxu1 %vm1542_vm1, %v2582_v13  ;;  %vm3464_vm1 = vcmask 195584  }
 0x5de   : > { %v5507_v42 = vpop.permute.xlu1 %3298 }
 0x5e2   : > { %v5511_v53 = vpop.permute.xlu1 %3302 }
 0x5e6   : > { %v5515_v58 = vpop.permute.xlu1 %3338 }
 0x5ea   : > { %v5519_v44 = vpop.permute.xlu1 %3342 }
 0x5ee   : > { %v5525_v15 = vpop.permute.xlu1 %3346 }
 0x5f2   : > { %v5550_v57 = vpop.permute.xlu1 %3350 }
 0x5f6   : > { %v5577_v30 = vpop.permute.xlu1 %3354 }
 0x637   : > { %v2854_v55 = vpop.f32.mrb[80].mxu1  ;;  %v2967_v39 = vpop.f32.mrb[96].mxu0 }
 0x638   : > { %v2855_v7 = vadd.f32 %v2854_v55, %v5537_v47  ;;  %v2968_v18 = vadd.f32 %v2967_v39, %v5540_v23  ;;  %v2856_v3 = vpop.f32.mrb[81].mxu1  ;;  %v2969_v11 = vpop.f32.mrb[97].mxu0 }
 0x639   : > { %v2857_v48 = vadd.f32 %v2856_v3, %v5543_v43  ;;  %v2970_v5 = vadd.f32 %v2969_v11, %v5546_v37  ;;  %v2858_v16 = vpop.f32.mrb[82].mxu1  ;;  %v2971_v8 = vpop.f32.mrb[98].mxu0 }
 0x63a   : > { %3497 = vst [vmem:[%s5557_s18] sm:$0xff] %v2855_v7  ;;  %3499 = vst [vmem:[%s5557_s18 + $0x10] sm:$0xff] %v2968_v18  ;;  %v2859_v59 = vadd.f32 %v2858_v16, %v5537_v47  ;;  %v2972_v62 = vadd.f32 %v2971_v8, %v5540_v23  ;;  %v2860_v31 = vpop.f32.mrb[83].mxu1  ;;  %v2973_v36 = vpop.f32.mrb[99].mxu0 }
 0x63b   : > { %3498 = vst [vmem:[%s5557_s18 + $0x8] sm:$0xff] %v2857_v48  ;;  %3500 = vst [vmem:[%s5557_s18 + $0x18] sm:$0xff] %v2970_v5  ;;  %v2861_v50 = vadd.f32 %v2860_v31, %v5543_v43  ;;  %v2974_v0 = vadd.f32 %v2973_v36, %v5546_v37  ;;  %v5595_v55 = vpop.permute.xlu0 %3356  ;;  %v5597_v39 = vpop.permute.xlu1 %3358 }
 0x63c   : > { %3505 = vst [vmem:[%s5557_s18 + $0x38] sm:$0xff] %v2859_v59  ;;  %3507 = vst [vmem:[%s5557_s18 + $0x48] sm:$0xff] %v2972_v62 }
 0x63d   : > { %3506 = vst [vmem:[%s5557_s18 + $0x40] sm:$0xff] %v2861_v50  ;;  %3508 = vst [vmem:[%s5557_s18 + $0x50] sm:$0xff] %v2974_v0 }
 0x63f   : > { %v2864_v29 = vpop.f32.mrb[84].mxu1  ;;  %v2977_v33 = vpop.f32.mrb[100].mxu0 }
 0x640   : > { %v2865_v45 = vadd.f32 %v2864_v29, %v5537_v47  ;;  %v2978_v12 = vadd.f32 %v2977_v33, %v5540_v23  ;;  %v2866_v9 = vpop.f32.mrb[85].mxu1  ;;  %v2979_v10 = vpop.f32.mrb[101].mxu0 }
 0x641   : > { %v2867_v17 = vadd.f32 %v2866_v9, %v5543_v43  ;;  %v2980_v51 = vadd.f32 %v2979_v10, %v5546_v37  ;;  %v2868_v49 = vpop.f32.mrb[86].mxu1  ;;  %v2981_v13 = vpop.f32.mrb[102].mxu0 }
 0x642   : > { %3512 = vst [vmem:[%s5557_s18 + $0x70] sm:$0xff] %v2865_v45  ;;  %3514 = vst [vmem:[%s5557_s18 + $0x80] sm:$0xff] %v2978_v12  ;;  %v2869_v24 = vadd.f32 %v2868_v49, %v5537_v47  ;;  %v2982_v60 = vadd.f32 %v2981_v13, %v5540_v23  ;;  %v2870_v1 = vpop.f32.mrb[87].mxu1  ;;  %v2983_v40 = vpop.f32.mrb[103].mxu0 }
 0x643   : > { %3513 = vst [vmem:[%s5557_s18 + $0x78] sm:$0xff] %v2867_v17  ;;  %3515 = vst [vmem:[%s5557_s18 + $0x88] sm:$0xff] %v2980_v51  ;;  %v2871_v19 = vadd.f32 %v2870_v1, %v5543_v43  ;;  %v2984_v28 = vadd.f32 %v2983_v40, %v5546_v37  ;;  %v5615_v45 = vpop.permute.xlu0 %3360  ;;  %v5617_v12 = vpop.permute.xlu1 %3362 }
 0x644   : > { %3519 = vst [vmem:[%s5557_s18 + $0xa8] sm:$0xff] %v2869_v24  ;;  %3521 = vst [vmem:[%s5557_s18 + $0xb8] sm:$0xff] %v2982_v60 }
 0x645   : > { %3520 = vst [vmem:[%s5557_s18 + $0xb0] sm:$0xff] %v2871_v19  ;;  %3522 = vst [vmem:[%s5557_s18 + $0xc0] sm:$0xff] %v2984_v28 }
 0x648   : > { %v2874_v7 = vpop.f32.mrb[88].mxu1  ;;  %v2987_v18 = vpop.f32.mrb[104].mxu0 }
 0x649   : > { %v2875_v3 = vadd.f32 %v2874_v7, %v5537_v47  ;;  %v2988_v11 = vadd.f32 %v2987_v18, %v5540_v23  ;;  %v2876_v48 = vpop.f32.mrb[89].mxu1  ;;  %v2989_v5 = vpop.f32.mrb[105].mxu0 }
 0x64a   : > { %v2877_v16 = vadd.f32 %v2876_v48, %v5543_v43  ;;  %v2990_v8 = vadd.f32 %v2989_v5, %v5546_v37  ;;  %v2878_v59 = vpop.f32.mrb[90].mxu1  ;;  %v2991_v62 = vpop.f32.mrb[106].mxu0 }
 0x64b   : > { %3526 = vst [vmem:[%s5557_s18 + $0xe0] sm:$0xff] %v2875_v3  ;;  %3528 = vst [vmem:[%s5557_s18 + $0xf0] sm:$0xff] %v2988_v11  ;;  %v2879_v31 = vadd.f32 %v2878_v59, %v5537_v47  ;;  %v2992_v36 = vadd.f32 %v2991_v62, %v5540_v23  ;;  %v2880_v50 = vpop.f32.mrb[91].mxu1  ;;  %v2993_v0 = vpop.f32.mrb[107].mxu0 }
 0x64c   : > { %3527 = vst [vmem:[%s5557_s18 + $0xe8] sm:$0xff] %v2877_v16  ;;  %3529 = vst [vmem:[%s5557_s18 + $0xf8] sm:$0xff] %v2990_v8  ;;  %v2881_v29 = vadd.f32 %v2880_v50, %v5543_v43  ;;  %v2994_v33 = vadd.f32 %v2993_v0, %v5546_v37  ;;  %v5635_v48 = vpop.permute.xlu0 %3364  ;;  %v5637_v5 = vpop.permute.xlu1 %3366 }
 0x64d   : > { %3533 = vst [vmem:[%s5557_s18 + $0x118] sm:$0xff] %v2879_v31  ;;  %3535 = vst [vmem:[%s5557_s18 + $0x128] sm:$0xff] %v2992_v36 }
 0x64e   : > { %3534 = vst [vmem:[%s5557_s18 + $0x120] sm:$0xff] %v2881_v29  ;;  %3536 = vst [vmem:[%s5557_s18 + $0x130] sm:$0xff] %v2994_v33 }
 0x650   : > { %v2884_v9 = vpop.f32.mrb[92].mxu1  ;;  %v2997_v10 = vpop.f32.mrb[108].mxu0 }
 0x651   : > { %v2885_v17 = vadd.f32 %v2884_v9, %v5537_v47  ;;  %v2998_v51 = vadd.f32 %v2997_v10, %v5540_v23  ;;  %v2886_v49 = vpop.f32.mrb[93].mxu1  ;;  %v2999_v13 = vpop.f32.mrb[109].mxu0 }
 0x652   : > { %v2887_v24 = vadd.f32 %v2886_v49, %v5543_v43  ;;  %v3000_v60 = vadd.f32 %v2999_v13, %v5546_v37  ;;  %v2888_v1 = vpop.f32.mrb[94].mxu1  ;;  %v3001_v40 = vpop.f32.mrb[110].mxu0 }
 0x653   : > { %3540 = vst [vmem:[%s5557_s18 + $0x150] sm:$0xff] %v2885_v17  ;;  %3542 = vst [vmem:[%s5557_s18 + $0x160] sm:$0xff] %v2998_v51  ;;  %v2889_v19 = vadd.f32 %v2888_v1, %v5537_v47  ;;  %v3002_v28 = vadd.f32 %v3001_v40, %v5540_v23  ;;  %v2890_v7 = vpop.f32.mrb[95].mxu1  ;;  %v3003_v18 = vpop.f32.mrb[111].mxu0 }
 0x654   : > { %3541 = vst [vmem:[%s5557_s18 + $0x158] sm:$0xff] %v2887_v24  ;;  %3543 = vst [vmem:[%s5557_s18 + $0x168] sm:$0xff] %v3000_v60  ;;  %v2891_v3 = vadd.f32 %v2890_v7, %v5543_v43  ;;  %v3004_v11 = vadd.f32 %v3003_v18, %v5546_v37  ;;  %v5655_v24 = vpop.permute.xlu0 %3404  ;;  %v5657_v60 = vpop.permute.xlu1 %3406 }
 0x655   : > { %3547 = vst [vmem:[%s5557_s18 + $0x188] sm:$0xff] %v2889_v19  ;;  %3549 = vst [vmem:[%s5557_s18 + $0x198] sm:$0xff] %v3002_v28 }
 0x656   : > { %3548 = vst [vmem:[%s5557_s18 + $0x190] sm:$0xff] %v2891_v3  ;;  %3550 = vst [vmem:[%s5557_s18 + $0x1a0] sm:$0xff] %v3004_v11 }
 0x658   : > { %v2894_v16 = vpop.f32.mrb[96].mxu1  ;;  %v3007_v8 = vpop.f32.mrb[112].mxu0 }
 0x659   : > { %v2895_v59 = vadd.f32 %v2894_v16, %v5537_v47  ;;  %v3008_v62 = vadd.f32 %v3007_v8, %v5540_v23  ;;  %v2896_v31 = vpop.f32.mrb[97].mxu1  ;;  %v3009_v36 = vpop.f32.mrb[113].mxu0 }
 0x65a   : > { %v2897_v50 = vadd.f32 %v2896_v31, %v5543_v43  ;;  %v3010_v0 = vadd.f32 %v3009_v36, %v5546_v37  ;;  %v2898_v29 = vpop.f32.mrb[98].mxu1  ;;  %v3011_v33 = vpop.f32.mrb[114].mxu0 }
 0x65b   : > { %3554 = vst [vmem:[%s5557_s18 + $0x1c0] sm:$0xff] %v2895_v59  ;;  %3556 = vst [vmem:[%s5557_s18 + $0x1d0] sm:$0xff] %v3008_v62  ;;  %v2899_v9 = vadd.f32 %v2898_v29, %v5537_v47  ;;  %v3012_v10 = vadd.f32 %v3011_v33, %v5540_v23  ;;  %v2900_v17 = vpop.f32.mrb[99].mxu1  ;;  %v3013_v51 = vpop.f32.mrb[115].mxu0 }
 0x65c   : > { %3555 = vst [vmem:[%s5557_s18 + $0x1c8] sm:$0xff] %v2897_v50  ;;  %3557 = vst [vmem:[%s5557_s18 + $0x1d8] sm:$0xff] %v3010_v0  ;;  %v2901_v49 = vadd.f32 %v2900_v17, %v5543_v43  ;;  %v3014_v13 = vadd.f32 %v3013_v51, %v5546_v37  ;;  %v5675_v29 = vpop.permute.xlu0 %3400  ;;  %v5677_v33 = vpop.permute.xlu1 %3402 }
 0x65d   : > { %3561 = vst [vmem:[%s5557_s18 + $0x1f8] sm:$0xff] %v2899_v9  ;;  %3563 = vst [vmem:[%s5557_s18 + $0x208] sm:$0xff] %v3012_v10 }
 0x65e   : > { %3562 = vst [vmem:[%s5557_s18 + $0x200] sm:$0xff] %v2901_v49  ;;  %3564 = vst [vmem:[%s5557_s18 + $0x210] sm:$0xff] %v3014_v13 }
 0x660   : > { %v2904_v1 = vpop.f32.mrb[100].mxu1  ;;  %v3017_v40 = vpop.f32.mrb[116].mxu0 }
 0x661   : > { %v2905_v19 = vadd.f32 %v2904_v1, %v5537_v47  ;;  %v3018_v28 = vadd.f32 %v3017_v40, %v5540_v23  ;;  %v2906_v7 = vpop.f32.mrb[101].mxu1  ;;  %v3019_v18 = vpop.f32.mrb[117].mxu0 }
 0x662   : > { %v2907_v3 = vadd.f32 %v2906_v7, %v5543_v43  ;;  %v3020_v11 = vadd.f32 %v3019_v18, %v5546_v37  ;;  %v2908_v16 = vpop.f32.mrb[102].mxu1  ;;  %v3021_v8 = vpop.f32.mrb[118].mxu0 }
 0x663   : > { %3568 = vst [vmem:[%s5557_s18 + $0x230] sm:$0xff] %v2905_v19  ;;  %3570 = vst [vmem:[%s5557_s18 + $0x240] sm:$0xff] %v3018_v28  ;;  %v2909_v59 = vadd.f32 %v2908_v16, %v5537_v47  ;;  %v3022_v62 = vadd.f32 %v3021_v8, %v5540_v23  ;;  %v2910_v31 = vpop.f32.mrb[103].mxu1  ;;  %v3023_v36 = vpop.f32.mrb[119].mxu0 }
 0x664   : > { %3569 = vst [vmem:[%s5557_s18 + $0x238] sm:$0xff] %v2907_v3  ;;  %3571 = vst [vmem:[%s5557_s18 + $0x248] sm:$0xff] %v3020_v11  ;;  %v2911_v50 = vadd.f32 %v2910_v31, %v5543_v43  ;;  %v3024_v0 = vadd.f32 %v3023_v36, %v5546_v37 }
 0x665   : > { %3575 = vst [vmem:[%s5557_s18 + $0x268] sm:$0xff] %v2909_v59  ;;  %3577 = vst [vmem:[%s5557_s18 + $0x278] sm:$0xff] %v3022_v62  ;;  %v5695_v59 = vpop.permute.xlu0 %3412  ;;  %v5697_v62 = vpop.permute.xlu1 %3414 }
 0x666   : > { %3576 = vst [vmem:[%s5557_s18 + $0x270] sm:$0xff] %v2911_v50  ;;  %3578 = vst [vmem:[%s5557_s18 + $0x280] sm:$0xff] %v3024_v0 }
 0x668   : > { %v2914_v9 = vpop.f32.mrb[104].mxu1  ;;  %v3027_v10 = vpop.f32.mrb[120].mxu0 }
 0x669   : > { %v2915_v17 = vadd.f32 %v2914_v9, %v5537_v47  ;;  %v3028_v51 = vadd.f32 %v3027_v10, %v5540_v23  ;;  %v2916_v49 = vpop.f32.mrb[105].mxu1  ;;  %v3029_v13 = vpop.f32.mrb[121].mxu0 }
 0x66a   : > { %v2917_v1 = vadd.f32 %v2916_v49, %v5543_v43  ;;  %v3030_v40 = vadd.f32 %v3029_v13, %v5546_v37  ;;  %v2918_v19 = vpop.f32.mrb[106].mxu1  ;;  %v3031_v28 = vpop.f32.mrb[122].mxu0 }
 0x66b   : > { %3582 = vst [vmem:[%s5557_s18 + $0x2a0] sm:$0xff] %v2915_v17  ;;  %3584 = vst [vmem:[%s5557_s18 + $0x2b0] sm:$0xff] %v3028_v51  ;;  %v2919_v7 = vadd.f32 %v2918_v19, %v5537_v47  ;;  %v3032_v18 = vadd.f32 %v3031_v28, %v5540_v23  ;;  %v2920_v3 = vpop.f32.mrb[107].mxu1  ;;  %v3033_v11 = vpop.f32.mrb[123].mxu0  ;;  %v2635_v17 = vsub.s32 4, %v5521_v2  ;;  %v2643_v51 = vsub.s32 6, %v5521_v2 }
 0x66c   : > { %3583 = vst [vmem:[%s5557_s18 + $0x2a8] sm:$0xff] %v2917_v1  ;;  %3585 = vst [vmem:[%s5557_s18 + $0x2b8] sm:$0xff] %v3030_v40  ;;  %v2921_v16 = vadd.f32 %v2920_v3, %v5543_v43  ;;  %v3034_v8 = vadd.f32 %v3033_v11, %v5546_v37  ;;  %v2639_v19 = vsub.s32 5, %v5521_v2 }
 0x66d   : > { %3589 = vst [vmem:[%s5557_s18 + $0x2d8] sm:$0xff] %v2919_v7  ;;  %3591 = vst [vmem:[%s5557_s18 + $0x2e8] sm:$0xff] %v3032_v18  ;;  %v5720_v2 = vrot.slane %v5532_v20, %v2643_v51 }
 0x66e   : > { %3590 = vst [vmem:[%s5557_s18 + $0x2e0] sm:$0xff] %v2921_v16  ;;  %3592 = vst [vmem:[%s5557_s18 + $0x2f0] sm:$0xff] %v3034_v8  ;;  %v5717_v8 = vrot.slane %v5532_v20, %v2635_v17 }
 0x670   : > { %v2924_v31 = vpop.f32.mrb[108].mxu1  ;;  %v3037_v36 = vpop.f32.mrb[124].mxu0 }
 0x671   : > { %v2925_v50 = vadd.f32 %v2924_v31, %v5537_v47  ;;  %v3038_v0 = vadd.f32 %v3037_v36, %v5540_v23  ;;  %v2926_v9 = vpop.f32.mrb[109].mxu1  ;;  %v3039_v10 = vpop.f32.mrb[125].mxu0 }
 0x672   : > { %v2927_v49 = vadd.f32 %v2926_v9, %v5543_v43  ;;  %v3040_v13 = vadd.f32 %v3039_v10, %v5546_v37  ;;  %v2928_v1 = vpop.f32.mrb[110].mxu1  ;;  %v3041_v40 = vpop.f32.mrb[126].mxu0 }
 0x673   : > { %3596 = vst [vmem:[%s5557_s18 + $0x310] sm:$0xff] %v2925_v50  ;;  %3598 = vst [vmem:[%s5557_s18 + $0x320] sm:$0xff] %v3038_v0  ;;  %v2929_v28 = vadd.f32 %v2928_v1, %v5537_v47  ;;  %v3042_v7 = vadd.f32 %v3041_v40, %v5540_v23  ;;  %v2930_v18 = vpop.f32.mrb[111].mxu1  ;;  %v3043_v3 = vpop.f32.mrb[127].mxu0  ;;  %v5725_v47 = vrot.slane %v5532_v20, %v2639_v19 }
 0x674   : > { %3597 = vst [vmem:[%s5557_s18 + $0x318] sm:$0xff] %v2927_v49  ;;  %3599 = vst [vmem:[%s5557_s18 + $0x328] sm:$0xff] %v3040_v13  ;;  %v2931_v11 = vadd.f32 %v2930_v18, %v5543_v43  ;;  %v3044_v16 = vadd.f32 %v3043_v3, %v5546_v37  ;;  %v5727_v23 = vpop.permute.xlu0 %3408  ;;  %v5729_v31 = vpop.permute.xlu1 %3410 }
 0x675   : > { %3603 = vst [vmem:[%s5557_s18 + $0x348] sm:$0xff] %v2929_v28  ;;  %3605 = vst [vmem:[%s5557_s18 + $0x358] sm:$0xff] %v3042_v7 }
 0x676   : > { %3604 = vst [vmem:[%s5557_s18 + $0x350] sm:$0xff] %v2931_v11  ;;  %3606 = vst [vmem:[%s5557_s18 + $0x360] sm:$0xff] %v3044_v16 }
 0x678   : > { %v3080_v43 = vpop.f32.mrb[112].mxu1  ;;  %v4219_v37 = vpop.f32.mrb[128].mxu0 }
 0x679   : > { %v3081_v36 = vadd.f32 %v3080_v43, %v5717_v8  ;;  %v3202_v50 = vadd.f32 %v4219_v37, %v5720_v2  ;;  %v3082_v0 = vpop.f32.mrb[113].mxu1  ;;  %v3193_v9 = vpop.f32.mrb[129].mxu0 }
 0x67a   : > { %v3083_v10 = vadd.f32 %v3082_v0, %v5725_v47  ;;  %v3194_v17 = vadd.f32 %v3193_v9, %v5720_v2  ;;  %v3084_v20 = vpop.f32.mrb[114].mxu1  ;;  %v4220_v51 = vpop.f32.mrb[130].mxu0 }
 0x67b   : > { %3501 = vst [vmem:[%s5557_s18 + $0x20] sm:$0xff] %v3081_v36  ;;  %v3450_v49 = vsel %vm1066_vm0, %v3202_v50, %v5485_v32  ;;  %v3085_v13 = vadd.f32 %v3084_v20, %v5717_v8  ;;  %v3205_v1 = vadd.f32 %v4220_v51, %v5720_v2  ;;  %v3086_v40 = vpop.f32.mrb[115].mxu1  ;;  %v3196_v19 = vpop.f32.mrb[131].mxu0 }
 0x67c   : > { %v3467_v28 = vsel %vm3464_vm1, %v3450_v49, %v5517_v4  ;;  %3502 = vst [vmem:[%s5557_s18 + $0x28] sm:$0xff] %v3083_v10  ;;  %v3448_v7 = vsel %vm1066_vm0, %v3194_v17, %v5481_v61  ;;  %v3087_v18 = vadd.f32 %v3086_v40, %v5725_v47  ;;  %v3197_v32 = vadd.f32 %v3196_v19, %v5720_v2  ;;  %v5763_v43 = vpop.permute.xlu0 %3420 }
 0x67d   : > { %v3483_v3 = vsel %vm1711_vm2, %v3467_v28, %v5655_v24  ;;  %v3465_v11 = vsel %vm3464_vm1, %v3448_v7, %v5513_v46  ;;  %3509 = vst [vmem:[%s5557_s18 + $0x58] sm:$0xff] %v3085_v13  ;;  %v3451_v4 = vsel %vm1066_vm0, %v3205_v1, %v5487_v35  ;;  %v5765_v46 = vpop.permute.xlu1 %3422 }
 0x67e   : > { %3518 = vst.msk [vmem:[%s5557_s18 + $0xa0] sm:$0xff] %vm3503_vm8, %v3483_v3  ;;  %v3481_v61 = vsel %vm1711_vm2, %v3465_v11, %v5675_v29  ;;  %v3468_v16 = vsel %vm3464_vm1, %v3451_v4, %v5519_v44  ;;  %3510 = vst [vmem:[%s5557_s18 + $0x60] sm:$0xff] %v3087_v18  ;;  %v3449_v24 = vsel %vm1066_vm0, %v3197_v32, %v5483_v27 }
 0x67f   : > { %3504 = vst.msk [vmem:[%s5557_s18 + $0x30] sm:$0xff] %vm3503_vm8, %v3481_v61  ;;  %v3484_v35 = vsel %vm1711_vm2, %v3468_v16, %v5657_v60  ;;  %v3466_v29 = vsel %vm3464_vm1, %v3449_v24, %v5515_v58 }
 0x680   : > { %3525 = vst.msk [vmem:[%s5557_s18 + $0xd8] sm:$0xff] %vm3503_vm8, %v3484_v35  ;;  %v3482_v44 = vsel %vm1711_vm2, %v3466_v29, %v5677_v33  ;;  %v3090_v37 = vpop.f32.mrb[116].mxu1  ;;  %v4223_v27 = vpop.f32.mrb[132].mxu0 }
 0x681   : > { %3511 = vst.msk [vmem:[%s5557_s18 + $0x68] sm:$0xff] %vm3503_vm8, %v3482_v44  ;;  %v3091_v36 = vadd.f32 %v3090_v37, %v5717_v8  ;;  %v3218_v50 = vadd.f32 %v4223_v27, %v5720_v2  ;;  %v3092_v0 = vpop.f32.mrb[117].mxu1  ;;  %v3209_v9 = vpop.f32.mrb[133].mxu0 }
 0x682   : > { %v3093_v60 = vadd.f32 %v3092_v0, %v5725_v47  ;;  %v3210_v58 = vadd.f32 %v3209_v9, %v5720_v2  ;;  %v3094_v10 = vpop.f32.mrb[118].mxu1  ;;  %v4224_v17 = vpop.f32.mrb[134].mxu0 }
 0x683   : > { %3516 = vst [vmem:[%s5557_s18 + $0x90] sm:$0xff] %v3091_v36  ;;  %v3454_v33 = vsel %vm1066_vm0, %v3218_v50, %v5493_v26  ;;  %v3095_v20 = vadd.f32 %v3094_v10, %v5717_v8  ;;  %v3221_v51 = vadd.f32 %v4224_v17, %v5720_v2  ;;  %v3096_v49 = vpop.f32.mrb[119].mxu1  ;;  %v3212_v13 = vpop.f32.mrb[135].mxu0 }
 0x684   : > { %v3471_v1 = vsel %vm3464_vm1, %v3454_v33, %v5548_v22  ;;  %3517 = vst [vmem:[%s5557_s18 + $0x98] sm:$0xff] %v3093_v60  ;;  %v3452_v40 = vsel %vm1066_vm0, %v3210_v58, %v5489_v21  ;;  %v3097_v19 = vadd.f32 %v3096_v49, %v5725_v47  ;;  %v3213_v26 = vadd.f32 %v3212_v13, %v5720_v2  ;;  %v3417_v32 = vpop.permute.xlu0 %3416  ;;  %v3419_v3 = vpop.permute.xlu1 %3418 }
 0x685   : > { %v3487_v28 = vsel %vm1711_vm2, %v3471_v1, %v5695_v59  ;;  %v3469_v7 = vsel %vm3464_vm1, %v3452_v40, %v5523_v34  ;;  %3523 = vst [vmem:[%s5557_s18 + $0xc8] sm:$0xff] %v3095_v20  ;;  %v3455_v22 = vsel %vm1066_vm0, %v3221_v51, %v5495_v25 }
 0x686   : > { %3546 = vst.msk [vmem:[%s5557_s18 + $0x180] sm:$0xff] %vm3503_vm8, %v3487_v28  ;;  %v3485_v21 = vsel %vm1711_vm2, %v3469_v7, %v5727_v23  ;;  %v3472_v18 = vsel %vm3464_vm1, %v3455_v22, %v5550_v57  ;;  %3524 = vst [vmem:[%s5557_s18 + $0xd0] sm:$0xff] %v3097_v19  ;;  %v3453_v59 = vsel %vm1066_vm0, %v3213_v26, %v5491_v14 }
 0x687   : > { %3532 = vst.msk [vmem:[%s5557_s18 + $0x110] sm:$0xff] %vm3503_vm8, %v3485_v21  ;;  %v3488_v25 = vsel %vm1711_vm2, %v3472_v18, %v5697_v62  ;;  %v3470_v34 = vsel %vm3464_vm1, %v3453_v59, %v5525_v15 }
 0x688   : > { %3553 = vst.msk [vmem:[%s5557_s18 + $0x1b8] sm:$0xff] %vm3503_vm8, %v3488_v25  ;;  %v3486_v57 = vsel %vm1711_vm2, %v3470_v34, %v5729_v31  ;;  %v3100_v23 = vpop.f32.mrb[120].mxu1  ;;  %v4227_v11 = vpop.f32.mrb[136].mxu0 }
 0x689   : > { %3539 = vst.msk [vmem:[%s5557_s18 + $0x148] sm:$0xff] %vm3503_vm8, %v3486_v57  ;;  %v3101_v14 = vadd.f32 %v3100_v23, %v5717_v8  ;;  %v3234_v4 = vadd.f32 %v4227_v11, %v5720_v2  ;;  %v3102_v61 = vpop.f32.mrb[121].mxu1  ;;  %v3225_v16 = vpop.f32.mrb[137].mxu0 }
 0x68a   : > { %v3103_v62 = vadd.f32 %v3102_v61, %v5725_v47  ;;  %v3226_v15 = vadd.f32 %v3225_v16, %v5720_v2  ;;  %v3104_v24 = vpop.f32.mrb[122].mxu1  ;;  %v4228_v35 = vpop.f32.mrb[138].mxu0 }
 0x68b   : > { %3530 = vst [vmem:[%s5557_s18 + $0x100] sm:$0xff] %v3101_v14  ;;  %v3458_v31 = vsel %vm1066_vm0, %v3234_v4, %v5501_v6  ;;  %v3105_v29 = vadd.f32 %v3104_v24, %v5717_v8  ;;  %v3237_v44 = vadd.f32 %v4228_v35, %v5720_v2  ;;  %v3106_v37 = vpop.f32.mrb[123].mxu1  ;;  %v3228_v27 = vpop.f32.mrb[139].mxu0 }
 0x68c   : > { %v3475_v36 = vsel %vm3464_vm1, %v3458_v31, %v5595_v55  ;;  %3531 = vst [vmem:[%s5557_s18 + $0x108] sm:$0xff] %v3103_v62  ;;  %v3456_v50 = vsel %vm1066_vm0, %v3226_v15, %v5497_v63  ;;  %v3107_v0 = vadd.f32 %v3106_v37, %v5725_v47  ;;  %v3229_v6 = vadd.f32 %v3228_v27, %v5720_v2  ;;  %v3425_v58 = vpop.permute.xlu0 %3424  ;;  %v3427_v17 = vpop.permute.xlu1 %3426 }
 0x68d   : > { %v3491_v9 = vsel %vm1711_vm2, %v3475_v36, %v5763_v43  ;;  %v3473_v60 = vsel %vm3464_vm1, %v3456_v50, %v5575_v41  ;;  %3537 = vst [vmem:[%s5557_s18 + $0x138] sm:$0xff] %v3105_v29  ;;  %v3459_v55 = vsel %vm1066_vm0, %v3237_v44, %v5503_v52 }
 0x68e   : > { %3574 = vst.msk [vmem:[%s5557_s18 + $0x260] sm:$0xff] %vm3503_vm8, %v3491_v9  ;;  %v3489_v63 = vsel %vm1711_vm2, %v3473_v60, %v3417_v32  ;;  %v3476_v10 = vsel %vm3464_vm1, %v3459_v55, %v5597_v39  ;;  %3538 = vst [vmem:[%s5557_s18 + $0x140] sm:$0xff] %v3107_v0  ;;  %v3457_v43 = vsel %vm1066_vm0, %v3229_v6, %v5499_v54 }
 0x68f   : > { %3560 = vst.msk [vmem:[%s5557_s18 + $0x1f0] sm:$0xff] %vm3503_vm8, %v3489_v63  ;;  %v3492_v41 = vsel %vm1711_vm2, %v3476_v10, %v5765_v46  ;;  %v3474_v52 = vsel %vm3464_vm1, %v3457_v43, %v5577_v30 }
 0x690   : > { %3581 = vst.msk [vmem:[%s5557_s18 + $0x298] sm:$0xff] %vm3503_vm8, %v3492_v41  ;;  %v3490_v33 = vsel %vm1711_vm2, %v3474_v52, %v3419_v3  ;;  %v3110_v20 = vpop.f32.mrb[124].mxu1  ;;  %v4231_v39 = vpop.f32.mrb[140].mxu0 }
 0x691   : > { %3567 = vst.msk [vmem:[%s5557_s18 + $0x228] sm:$0xff] %vm3503_vm8, %v3490_v33  ;;  %v3111_v54 = vadd.f32 %v3110_v20, %v5717_v8  ;;  %v3250_v51 = vadd.f32 %v4231_v39, %v5720_v2  ;;  %v3112_v49 = vpop.f32.mrb[125].mxu1  ;;  %v3241_v13 = vpop.f32.mrb[141].mxu0 }
 0x692   : > { %v3113_v46 = vadd.f32 %v3112_v49, %v5725_v47  ;;  %v3242_v1 = vadd.f32 %v3241_v13, %v5720_v2  ;;  %v3114_v30 = vpop.f32.mrb[126].mxu1  ;;  %v4232_v40 = vpop.f32.mrb[142].mxu0 }
 0x693   : > { %3544 = vst [vmem:[%s5557_s18 + $0x170] sm:$0xff] %v3111_v54  ;;  %v3462_v19 = vsel %vm1066_vm0, %v3250_v51, %v5509_v56  ;;  %v3115_v26 = vadd.f32 %v3114_v30, %v5717_v8  ;;  %v3253_v28 = vadd.f32 %v4232_v40, %v5720_v2  ;;  %v3116_v7 = vpop.f32.mrb[127].mxu1  ;;  %v3244_v22 = vpop.f32.mrb[143].mxu0 }
 0x694   : > { %v3429_v21 = vpop.permute.xlu0 %3428  ;;  %v3479_v18 = vsel %vm3464_vm1, %v3462_v19, %v5635_v48  ;;  %3545 = vst [vmem:[%s5557_s18 + $0x178] sm:$0xff] %v3113_v46  ;;  %v3460_v59 = vsel %vm1066_vm0, %v3242_v1, %v5505_v38  ;;  %v3117_v56 = vadd.f32 %v3116_v7, %v5725_v47  ;;  %v3245_v32 = vadd.f32 %v3244_v22, %v5720_v2  ;;  %v3431_v48 = vpop.permute.xlu1 %3430 }
 0x695   : > { %v3495_v3 = vsel %vm1711_vm2, %v3479_v18, %v3429_v21  ;;  %v3477_v25 = vsel %vm3464_vm1, %v3460_v59, %v5615_v45  ;;  %3551 = vst [vmem:[%s5557_s18 + $0x1a8] sm:$0xff] %v3115_v26  ;;  %v3463_v34 = vsel %vm1066_vm0, %v3253_v28, %v5511_v53 }
 0x696   : > { %3602 = vst.msk [vmem:[%s5557_s18 + $0x340] sm:$0xff] %vm3503_vm8, %v3495_v3  ;;  %v3493_v38 = vsel %vm1711_vm2, %v3477_v25, %v3425_v58  ;;  %v3480_v57 = vsel %vm3464_vm1, %v3463_v34, %v5637_v5  ;;  %3552 = vst [vmem:[%s5557_s18 + $0x1b0] sm:$0xff] %v3117_v56  ;;  %v3461_v2 = vsel %vm1066_vm0, %v3245_v32, %v5507_v42 }
 0x697   : > { %3588 = vst.msk [vmem:[%s5557_s18 + $0x2d0] sm:$0xff] %vm3503_vm8, %v3493_v38  ;;  %v3496_v45 = vsel %vm1711_vm2, %v3480_v57, %v3431_v48  ;;  %v3478_v53 = vsel %vm3464_vm1, %v3461_v2, %v5617_v12 }
 0x698   : > { %3609 = vst.msk [vmem:[%s5557_s18 + $0x378] sm:$0xff] %vm3503_vm8, %v3496_v45  ;;  %v3494_v23 = vsel %vm1711_vm2, %v3478_v53, %v3427_v17  ;;  %v3120_v11 = vpop.f32.mrb[128].mxu1 }
 0x699   : > { %3595 = vst.msk [vmem:[%s5557_s18 + $0x308] sm:$0xff] %vm3503_vm8, %v3494_v23  ;;  %v3121_v5 = vadd.f32 %v3120_v11, %v5717_v8  ;;  %v3122_v42 = vpop.f32.mrb[129].mxu1 }
 0x69a   : > { %v3123_v14 = vadd.f32 %v3122_v42, %v5725_v47  ;;  %v3124_v4 = vpop.f32.mrb[130].mxu1 }
 0x69b   : > { %3558 = vst [vmem:[%s5557_s18 + $0x1e0] sm:$0xff] %v3121_v5  ;;  %v3125_v61 = vadd.f32 %v3124_v4, %v5717_v8  ;;  %v3126_v12 = vpop.f32.mrb[131].mxu1 }
 0x69c   : > { %3559 = vst [vmem:[%s5557_s18 + $0x1e8] sm:$0xff] %v3123_v14  ;;  %v3127_v16 = vadd.f32 %v3126_v12, %v5725_v47 }
 0x69d   : > { %3565 = vst [vmem:[%s5557_s18 + $0x218] sm:$0xff] %v3125_v61 }
 0x69e   : > { %3566 = vst [vmem:[%s5557_s18 + $0x220] sm:$0xff] %v3127_v16 }
 0x6a0   : > { %v3130_v62 = vpop.f32.mrb[132].mxu1 }
 0x6a1   : > { %v3131_v15 = vadd.f32 %v3130_v62, %v5717_v8  ;;  %v3132_v24 = vpop.f32.mrb[133].mxu1 }
 0x6a2   : > { %v3133_v35 = vadd.f32 %v3132_v24, %v5725_v47  ;;  %v3134_v31 = vpop.f32.mrb[134].mxu1 }
 0x6a3   : > { %3572 = vst [vmem:[%s5557_s18 + $0x250] sm:$0xff] %v3131_v15  ;;  %v3135_v29 = vadd.f32 %v3134_v31, %v5717_v8  ;;  %v3136_v44 = vpop.f32.mrb[135].mxu1 }
 0x6a4   : > { %3573 = vst [vmem:[%s5557_s18 + $0x258] sm:$0xff] %v3133_v35  ;;  %v3137_v37 = vadd.f32 %v3136_v44, %v5725_v47 }
 0x6a5   : > { %3579 = vst [vmem:[%s5557_s18 + $0x288] sm:$0xff] %v3135_v29 }
 0x6a6   : > { %3580 = vst [vmem:[%s5557_s18 + $0x290] sm:$0xff] %v3137_v37 }
 0x6a8   : > { %v3140_v27 = vpop.f32.mrb[136].mxu1 }
 0x6a9   : > { %v3141_v36 = vadd.f32 %v3140_v27, %v5717_v8  ;;  %v3142_v50 = vpop.f32.mrb[137].mxu1 }
 0x6aa   : > { %v3143_v0 = vadd.f32 %v3142_v50, %v5725_v47  ;;  %v3144_v6 = vpop.f32.mrb[138].mxu1 }
 0x6ab   : > { %3586 = vst [vmem:[%s5557_s18 + $0x2c0] sm:$0xff] %v3141_v36  ;;  %v3145_v9 = vadd.f32 %v3144_v6, %v5717_v8  ;;  %v3146_v60 = vpop.f32.mrb[139].mxu1 }
 0x6ac   : > { %3587 = vst [vmem:[%s5557_s18 + $0x2c8] sm:$0xff] %v3143_v0  ;;  %v3147_v55 = vadd.f32 %v3146_v60, %v5725_v47 }
 0x6ad   : > { %3593 = vst [vmem:[%s5557_s18 + $0x2f8] sm:$0xff] %v3145_v9 }
 0x6ae   : > { %3594 = vst [vmem:[%s5557_s18 + $0x300] sm:$0xff] %v3147_v55 }
 0x6b0   : > { %v3150_v58 = vpop.f32.mrb[140].mxu1 }
 0x6b1   : > { %v3151_v63 = vadd.f32 %v3150_v58, %v5717_v8  ;;  %v3152_v10 = vpop.f32.mrb[141].mxu1 }
 0x6b2   : > { %v3153_v43 = vadd.f32 %v3152_v10, %v5725_v47  ;;  %v3154_v17 = vpop.f32.mrb[142].mxu1 }
 0x6b3   : > { %3600 = vst [vmem:[%s5557_s18 + $0x330] sm:$0xff] %v3151_v63  ;;  %v3155_v41 = vadd.f32 %v3154_v17, %v5717_v8  ;;  %v3156_v52 = vpop.f32.mrb[143].mxu1 }
 0x6b4   : > { %3601 = vst [vmem:[%s5557_s18 + $0x338] sm:$0xff] %v3153_v43  ;;  %v3157_v33 = vadd.f32 %v3156_v52, %v5725_v47 }
 0x6b5   : > { %3607 = vst [vmem:[%s5557_s18 + $0x368] sm:$0xff] %v3155_v41 }
 0x6b6   : > { %3608 = vst [vmem:[%s5557_s18 + $0x370] sm:$0xff] %v3157_v33 }
 0x6b7 PF: > { %s24_s29 = sadd.s32 1, %s4415_s29  }
 0x6b8   : > { %p21_p4 = scmp.ge.s32.totalorder %s24_s29, 4  }
 0x6ba   :  { %23 = sbr.rel (!%p21_p4) target bundleno = 1 (0x1), region = 109 }

</bundles_post_ra>
